<compile_context>
chip_gen: v7x
topology: tpu7x:2x2x1
jax: 0.10.0
libtpu: 0.0.40
codegen_flags: <defaults>
</compile_context>

<pallas_src>
import functools

import jax
import jax.numpy as jnp
from jax import lax
from jax.experimental import pallas as pl
from jax.experimental.pallas import tpu as pltpu

EPS = 1e-5  # nn.InstanceNorm2d default


def _pick_row_chunk(H, W):
    """Largest divisor of H such that chunk rows * W ~ 256 matrix rows."""
    target = max(1, 256 // max(W, 1))
    th = min(target, H)
    while H % th:
        th -= 1
    return th


def _residual_block_kernel(x_ref, w1_ref, w2_ref, p_ref, o_ref,
                           pad_ref, acc_ref, *, compute_dtype, row_chunk):
    # x_ref/o_ref : [1, H, W, C]   (channels-last; C on the lane axis)
    # w*_ref      : [3, 3*C_in, C_out]  (dx fused into the contraction axis)
    # p_ref       : [6, C] f32  rows = (b1, g1, bt1, b2, g2, bt2)
    # pad_ref     : VMEM [H+2, W+2, C] compute-dtype scratch (reused by both convs)
    # acc_ref     : VMEM [H*W, C] f32 conv output buffer (one store per chunk)
    _, H, W, C = x_ref.shape
    HW = H * W
    TH = row_chunk          # output rows per chunk
    CH = TH * W             # rows of the (HW, C) matrix per chunk
    n_chunks = H // TH

    def reflect_edges():
        # pad_ref interior (rows 1..H, cols 1..W) must already hold the image.
        # Columns first, then full rows, so the corners pick up the reflected
        # columns (matches nn.ReflectionPad2d(1), corner = x[1, 1]).
        pad_ref[1:H + 1, 0:1, :] = pad_ref[1:H + 1, 2:3, :]
        pad_ref[1:H + 1, W + 1:W + 2, :] = pad_ref[1:H + 1, W - 1:W, :]
        pad_ref[0:1, :, :] = pad_ref[2:3, :, :]
        pad_ref[H + 1:H + 2, :, :] = pad_ref[H - 1:H, :, :]

    def conv3x3(w_ref, bias):
        # 3x3 "valid" conv of pad_ref. dx taps fused into one K=3C matmul per
        # dy; bias folded into the first tap; register accumulation with a
        # single VMEM store per chunk; per-chunk sum / sum-of-squares carried
        # for the one-pass instance-norm statistics. Returns (sum, sumsq).
        def tap(r0, dy):
            slab = jnp.concatenate(
                [pad_ref[pl.ds(r0 + dy, TH), dx:dx + W, :] for dx in range(3)],
                axis=-1).reshape(CH, 3 * C)
            return jnp.dot(slab, w_ref[dy], preferred_element_type=jnp.float32)

        def chunk(ci, carry):
            s, sq = carry
            r0 = pl.multiple_of(ci * TH, TH)
            acc = tap(r0, 0) + bias            # bias (1, C) broadcasts; no zero-init
            acc = acc + tap(r0, 1)
            acc = acc + tap(r0, 2)
            acc_ref[pl.ds(pl.multiple_of(ci * CH, CH), CH), :] = acc
            s = s + jnp.sum(acc, axis=0, keepdims=True)
            sq = sq + jnp.sum(acc * acc, axis=0, keepdims=True)
            return s, sq

        zero = jnp.zeros((1, C), jnp.float32)
        return lax.fori_loop(0, n_chunks, chunk, (zero, zero),
                             unroll=n_chunks <= 4)

    def norm_coeffs(stats, gamma, beta):
        s, sq = stats
        mean = s * (1.0 / HW)
        var = jnp.maximum(sq * (1.0 / HW) - mean * mean, 0.0)   # f32, clamped
        scale = gamma * lax.rsqrt(var + EPS)
        shift = beta - mean * scale
        return scale, shift

    # ---- conv1 -> IN1 -> ReLU (epilogue written straight into pad_ref) ----
    pad_ref[1:H + 1, 1:W + 1, :] = x_ref[0].astype(compute_dtype)
    reflect_edges()
    sc1, sh1 = norm_coeffs(conv3x3(w1_ref, p_ref[0:1, :]),
                           p_ref[1:2, :], p_ref[2:3, :])
    y = jnp.maximum(acc_ref[...] * sc1 + sh1, 0.0)
    pad_ref[1:H + 1, 1:W + 1, :] = y.reshape(H, W, C).astype(compute_dtype)
    reflect_edges()

    # ---- conv2 -> IN2 -> residual add (written straight into o_ref) ----
    sc2, sh2 = norm_coeffs(conv3x3(w2_ref, p_ref[3:4, :]),
                           p_ref[4:5, :], p_ref[5:6, :])
    z = acc_ref[...] * sc2 + sh2
    o_ref[0] = (z.reshape(H, W, C)
                + x_ref[0].astype(jnp.float32)).astype(o_ref.dtype)


def residual_block(x, params, *, compute_dtype=jnp.bfloat16):
    """x: [B, C, H, W] (PyTorch NCHW). params: dict, see init_params."""
    B, C, H, W = x.shape
    assert H >= 2 and W >= 2, "ReflectionPad2d(1) requires H, W >= 2"

    # Layout plumbing in plain JAX: NCHW -> NHWC so C sits on the lane axis.
    x_nhwc = jnp.transpose(x, (0, 2, 3, 1))

    # Conv weights OIHW -> (kh, kw, Cin, Cout) -> fused-dx (3, 3*Cin, Cout).
    w1 = jnp.transpose(params["w1"], (2, 3, 1, 0)).reshape(3, 3 * C, C)
    w2 = jnp.transpose(params["w2"], (2, 3, 1, 0)).reshape(3, 3 * C, C)
    w1 = w1.astype(compute_dtype)
    w2 = w2.astype(compute_dtype)

    # All six per-channel vectors packed as lane-aligned rows: [6, C] f32.
    pvec = jnp.stack([params["b1"], params["g1"], params["bt1"],
                      params["b2"], params["g2"], params["bt2"]],
                     axis=0).astype(jnp.float32)

    row_chunk = _pick_row_chunk(H, W)

    cd_size = jnp.dtype(compute_dtype).itemsize
    x_size = x.dtype.itemsize
    blk_bytes = H * W * C * x_size
    w_bytes = 2 * 9 * C * C * cd_size + 6 * C * 4
    scratch_bytes = (H + 2) * (W + 2) * C * cd_size + H * W * C * 4
    # in/out blocks double-buffered + constant operands + scratch, with headroom;
    # never request the whole physical VMEM (v7x only has 64 MiB).
    vmem_needed = 4 * blk_bytes + 2 * w_bytes + scratch_bytes
    vmem_limit = int(min(max(vmem_needed * 5 // 4 + (4 << 20), 32 << 20), 96 << 20))

    cost = pl.CostEstimate(
        flops=B * 2 * (2 * 9 * C * C * H * W),
        transcendentals=B * 2 * C,
        bytes_accessed=(2 * B * H * W * C * x_size
                        + 2 * 9 * C * C * cd_size + 6 * C * 4),
    )

    kernel = functools.partial(_residual_block_kernel,
                               compute_dtype=compute_dtype,
                               row_chunk=row_chunk)

    out_nhwc = pl.pallas_call(
        kernel,
        out_shape=jax.ShapeDtypeStruct((B, H, W, C), x.dtype),
        grid_spec=pltpu.PrefetchScalarGridSpec(
            num_scalar_prefetch=0,
            grid=(B,),
            in_specs=[
                pl.BlockSpec((1, H, W, C), lambda b: (b, 0, 0, 0)),
                pl.BlockSpec((3, 3 * C, C), lambda b: (0, 0, 0)),
                pl.BlockSpec((3, 3 * C, C), lambda b: (0, 0, 0)),
                pl.BlockSpec((6, C), lambda b: (0, 0)),
            ],
            out_specs=pl.BlockSpec((1, H, W, C), lambda b: (b, 0, 0, 0)),
            scratch_shapes=[
                pltpu.VMEM((H + 2, W + 2, C), compute_dtype),  # padded image
                pltpu.VMEM((H * W, C), jnp.float32),           # conv output
            ],
        ),
        compiler_params=pltpu.CompilerParams(
            dimension_semantics=("parallel",),
            vmem_limit_bytes=vmem_limit,
        ),
        cost_estimate=cost,
    )(x_nhwc, w1, w2, pvec)

    return jnp.transpose(out_nhwc, (0, 3, 1, 2))


# ------------------------- reference (plain JAX) -------------------------

def _ref_conv(x, w, b):
    xp = jnp.pad(x, ((0, 0), (0, 0), (1, 1), (1, 1)), mode="reflect")
    y = lax.conv_general_dilated(
        xp, w, window_strides=(1, 1), padding="VALID",
        dimension_numbers=("NCHW", "OIHW", "NCHW"))
    return y + b[None, :, None, None]


def _ref_in(x, g, b):
    mean = jnp.mean(x, axis=(2, 3), keepdims=True)
    var = jnp.mean((x - mean) ** 2, axis=(2, 3), keepdims=True)
    return (x - mean) * lax.rsqrt(var + EPS) * g[None, :, None, None] \
        + b[None, :, None, None]


def residual_block_ref(x, p):
    y = jnp.maximum(_ref_in(_ref_conv(x, p["w1"], p["b1"]), p["g1"], p["bt1"]), 0.0)
    z = _ref_in(_ref_conv(y, p["w2"], p["b2"]), p["g2"], p["bt2"])
    return z + x


def init_params(key, channels):
    ks = jax.random.split(key, 4)
    scale = 0.1
    return {
        "w1": scale * jax.random.normal(ks[0], (channels, channels, 3, 3), jnp.float32),
        "b1": scale * jax.random.normal(ks[1], (channels,), jnp.float32),
        "g1": jnp.ones((channels,), jnp.float32),
        "bt1": jnp.zeros((channels,), jnp.float32),
        "w2": scale * jax.random.normal(ks[2], (channels, channels, 3, 3), jnp.float32),
        "b2": scale * jax.random.normal(ks[3], (channels,), jnp.float32),
        "g2": jnp.ones((channels,), jnp.float32),
        "bt2": jnp.zeros((channels,), jnp.float32),
    }


if __name__ == "__main__":
    B, C, H, W = 2, 4, 16, 16
    key = jax.random.PRNGKey(0)
    kx, kp = jax.random.split(key)
    x = jax.random.normal(kx, (B, C, H, W), jnp.float32)
    params = init_params(kp, C)

    ref = jax.block_until_ready(residual_block_ref(x, params))

    # Exact-path check: f32 MXU operands, must match the f32 JAX reference.
    out_f32 = jax.block_until_ready(
        residual_block(x, params, compute_dtype=jnp.float32))
    assert out_f32.shape == (B, C, H, W)
    assert jnp.max(jnp.abs(out_f32 - ref)) < 1e-4, "f32 mismatch vs JAX reference"

    # Production mixed-precision path (bf16 MXU operands, f32 accumulation /
    # instance-norm stats): loose tolerance — intermediates are bf16-quantized.
    out_bf16 = jax.block_until_ready(residual_block(x, params))
    assert jnp.max(jnp.abs(out_bf16 - ref)) < 1.5e-1, "bf16 path sanity check"

    print("KERNEL_OK")
</pallas_src>

<mosaic_0001>
module attributes {stable_mosaic.version = 11 : i64} {
  func.func @_residual_block_kernel(%arg0: i32, %arg1: memref<1x16x16x4xf32, #tpu.memory_space<vmem>>, %arg2: memref<3x12x4xf32, #tpu.memory_space<vmem>>, %arg3: memref<3x12x4xf32, #tpu.memory_space<vmem>>, %arg4: memref<6x4xf32, #tpu.memory_space<vmem>>, %arg5: memref<1x16x16x4xf32, #tpu.memory_space<vmem>>, %arg6: memref<18x18x4xf32, #tpu.memory_space<vmem>>, %arg7: memref<256x4xf32, #tpu.memory_space<vmem>>) attributes {dimension_semantics = [#tpu.dimension_semantics<parallel>], iteration_bounds = array<i64: 2>, scalar_prefetch = 0 : i64, scratch_operands = 2 : i64, tpu.core_type = #tpu.core_type<tc>, window_params = [{transform_indices = @transform_0, window_bounds = array<i64: 1, 16, 16, 4>}, {pipeline_mode = #tpu.pipeline_mode<synchronous>, transform_indices = @transform_1, window_bounds = array<i64: 3, 12, 4>}, {pipeline_mode = #tpu.pipeline_mode<synchronous>, transform_indices = @transform_2, window_bounds = array<i64: 3, 12, 4>}, {pipeline_mode = #tpu.pipeline_mode<synchronous>, transform_indices = @transform_3, window_bounds = array<i64: 6, 4>}, {transform_indices = @transform_4, window_bounds = array<i64: 1, 16, 16, 4>}]} {
    %c0 = arith.constant 0 : index
    %c0_0 = arith.constant 0 : index
    %c0_1 = arith.constant 0 : index
    %c0_2 = arith.constant 0 : index
    %0 = vector.load %arg1[%c0, %c0_0, %c0_1, %c0_2] : memref<1x16x16x4xf32, #tpu.memory_space<vmem>>, vector<1x16x16x4xf32>
    %1 = vector.shape_cast %0 : vector<1x16x16x4xf32> to vector<16x16x4xf32>
    %c1 = arith.constant 1 : index
    %c1_3 = arith.constant 1 : index
    %c0_4 = arith.constant 0 : index
    %2 = vector.load %arg6[%c1, %c1_3, %c0_4] : memref<18x18x4xf32, #tpu.memory_space<vmem>>, vector<16x16x4xf32>
    tpu.vector_store %arg6[%c1, %c1_3, %c0_4], %1 {strides = array<i32>} : memref<18x18x4xf32, #tpu.memory_space<vmem>>, vector<16x16x4xf32>,
    %c1_5 = arith.constant 1 : index
    %c2 = arith.constant 2 : index
    %c0_6 = arith.constant 0 : index
    %3 = vector.load %arg6[%c1_5, %c2, %c0_6] : memref<18x18x4xf32, #tpu.memory_space<vmem>>, vector<16x1x4xf32>
    %c1_7 = arith.constant 1 : index
    %c0_8 = arith.constant 0 : index
    %c0_9 = arith.constant 0 : index
    %4 = vector.load %arg6[%c1_7, %c0_8, %c0_9] : memref<18x18x4xf32, #tpu.memory_space<vmem>>, vector<16x1x4xf32>
    tpu.vector_store %arg6[%c1_7, %c0_8, %c0_9], %3 {strides = array<i32>} : memref<18x18x4xf32, #tpu.memory_space<vmem>>, vector<16x1x4xf32>,
    %c1_10 = arith.constant 1 : index
    %c15 = arith.constant 15 : index
    %c0_11 = arith.constant 0 : index
    %5 = vector.load %arg6[%c1_10, %c15, %c0_11] : memref<18x18x4xf32, #tpu.memory_space<vmem>>, vector<16x1x4xf32>
    %c1_12 = arith.constant 1 : index
    %c17 = arith.constant 17 : index
    %c0_13 = arith.constant 0 : index
    %6 = vector.load %arg6[%c1_12, %c17, %c0_13] : memref<18x18x4xf32, #tpu.memory_space<vmem>>, vector<16x1x4xf32>
    tpu.vector_store %arg6[%c1_12, %c17, %c0_13], %5 {strides = array<i32>} : memref<18x18x4xf32, #tpu.memory_space<vmem>>, vector<16x1x4xf32>,
    %c2_14 = arith.constant 2 : index
    %c0_15 = arith.constant 0 : index
    %c0_16 = arith.constant 0 : index
    %7 = vector.load %arg6[%c2_14, %c0_15, %c0_16] : memref<18x18x4xf32, #tpu.memory_space<vmem>>, vector<1x18x4xf32>
    %c0_17 = arith.constant 0 : index
    %c0_18 = arith.constant 0 : index
    %c0_19 = arith.constant 0 : index
    %8 = vector.load %arg6[%c0_17, %c0_18, %c0_19] : memref<18x18x4xf32, #tpu.memory_space<vmem>>, vector<1x18x4xf32>
    tpu.vector_store %arg6[%c0_17, %c0_18, %c0_19], %7 {strides = array<i32>} : memref<18x18x4xf32, #tpu.memory_space<vmem>>, vector<1x18x4xf32>,
    %c15_20 = arith.constant 15 : index
    %c0_21 = arith.constant 0 : index
    %c0_22 = arith.constant 0 : index
    %9 = vector.load %arg6[%c15_20, %c0_21, %c0_22] : memref<18x18x4xf32, #tpu.memory_space<vmem>>, vector<1x18x4xf32>
    %c17_23 = arith.constant 17 : index
    %c0_24 = arith.constant 0 : index
    %c0_25 = arith.constant 0 : index
    %10 = vector.load %arg6[%c17_23, %c0_24, %c0_25] : memref<18x18x4xf32, #tpu.memory_space<vmem>>, vector<1x18x4xf32>
    tpu.vector_store %arg6[%c17_23, %c0_24, %c0_25], %9 {strides = array<i32>} : memref<18x18x4xf32, #tpu.memory_space<vmem>>, vector<1x18x4xf32>,
    %c0_26 = arith.constant 0 : index
    %c0_27 = arith.constant 0 : index
    %11 = vector.load %arg4[%c0_26, %c0_27] : memref<6x4xf32, #tpu.memory_space<vmem>>, vector<1x4xf32>
    %cst = arith.constant 0.000000e+00 : f32
    %12 = vector.broadcast %cst : f32 to vector<1x4xf32>
    %c0_i32 = arith.constant 0 : i32
    %c16_i32 = arith.constant 16 : i32
    %13 = arith.muli %c0_i32, %c16_i32 : i32
    %14 = tpu.assume_multiple %13, 16 : i32
    %c0_i32_28 = arith.constant 0 : i32
    %15 = arith.addi %14, %c0_i32_28 : i32
    %16 = arith.index_cast %15 : i32 to index
    %c0_29 = arith.constant 0 : index
    %c0_30 = arith.constant 0 : index
    %17 = vector.load %arg6[%16, %c0_29, %c0_30] : memref<18x18x4xf32, #tpu.memory_space<vmem>>, vector<16x16x4xf32>
    %c0_i32_31 = arith.constant 0 : i32
    %18 = arith.addi %14, %c0_i32_31 : i32
    %19 = arith.index_cast %18 : i32 to index
    %c1_32 = arith.constant 1 : index
    %c0_33 = arith.constant 0 : index
    %20 = vector.load %arg6[%19, %c1_32, %c0_33] : memref<18x18x4xf32, #tpu.memory_space<vmem>>, vector<16x16x4xf32>
    %c0_i32_34 = arith.constant 0 : i32
    %21 = arith.addi %14, %c0_i32_34 : i32
    %22 = arith.index_cast %21 : i32 to index
    %c2_35 = arith.constant 2 : index
    %c0_36 = arith.constant 0 : index
    %23 = vector.load %arg6[%22, %c2_35, %c0_36] : memref<18x18x4xf32, #tpu.memory_space<vmem>>, vector<16x16x4xf32>
    %24 = tpu.concatenate %17, %20, %23 in 2 : vector<16x16x4xf32>, vector<16x16x4xf32>, vector<16x16x4xf32> -> vector<16x16x12xf32>
    %25 = vector.shape_cast %24 : vector<16x16x12xf32> to vector<256x12xf32>
    %c0_37 = arith.constant 0 : index
    %c0_38 = arith.constant 0 : index
    %c0_39 = arith.constant 0 : index
    %26 = vector.load %arg2[%c0_37, %c0_38, %c0_39] : memref<3x12x4xf32, #tpu.memory_space<vmem>>, vector<1x12x4xf32>
    %27 = vector.shape_cast %26 : vector<1x12x4xf32> to vector<12x4xf32>
    %cst_40 = arith.constant dense<0.000000e+00> : vector<256x4xf32>
    %28 = tpu.matmul %25, %27, %cst_40 {dimension_numbers = #tpu.dot_dimension_numbers<[1], [0], [0], [1], [0, 0, 1, 1], [], []>} : vector<256x12xf32>, vector<12x4xf32>, vector<256x4xf32> -> vector<256x4xf32>
    %29 = vector.broadcast %11 : vector<1x4xf32> to vector<256x4xf32>
    %30 = arith.addf %28, %29 : vector<256x4xf32>
    %c1_i32 = arith.constant 1 : i32
    %31 = arith.addi %14, %c1_i32 : i32
    %32 = arith.index_cast %31 : i32 to index
    %c0_41 = arith.constant 0 : index
    %c0_42 = arith.constant 0 : index
    %33 = vector.load %arg6[%32, %c0_41, %c0_42] : memref<18x18x4xf32, #tpu.memory_space<vmem>>, vector<16x16x4xf32>
    %c1_i32_43 = arith.constant 1 : i32
    %34 = arith.addi %14, %c1_i32_43 : i32
    %35 = arith.index_cast %34 : i32 to index
    %c1_44 = arith.constant 1 : index
    %c0_45 = arith.constant 0 : index
    %36 = vector.load %arg6[%35, %c1_44, %c0_45] : memref<18x18x4xf32, #tpu.memory_space<vmem>>, vector<16x16x4xf32>
    %c1_i32_46 = arith.constant 1 : i32
    %37 = arith.addi %14, %c1_i32_46 : i32
    %38 = arith.index_cast %37 : i32 to index
    %c2_47 = arith.constant 2 : index
    %c0_48 = arith.constant 0 : index
    %39 = vector.load %arg6[%38, %c2_47, %c0_48] : memref<18x18x4xf32, #tpu.memory_space<vmem>>, vector<16x16x4xf32>
    %40 = tpu.concatenate %33, %36, %39 in 2 : vector<16x16x4xf32>, vector<16x16x4xf32>, vector<16x16x4xf32> -> vector<16x16x12xf32>
    %41 = vector.shape_cast %40 : vector<16x16x12xf32> to vector<256x12xf32>
    %c1_49 = arith.constant 1 : index
    %c0_50 = arith.constant 0 : index
    %c0_51 = arith.constant 0 : index
    %42 = vector.load %arg2[%c1_49, %c0_50, %c0_51] : memref<3x12x4xf32, #tpu.memory_space<vmem>>, vector<1x12x4xf32>
    %43 = vector.shape_cast %42 : vector<1x12x4xf32> to vector<12x4xf32>
    %cst_52 = arith.constant dense<0.000000e+00> : vector<256x4xf32>
    %44 = tpu.matmul %41, %43, %cst_52 {dimension_numbers = #tpu.dot_dimension_numbers<[1], [0], [0], [1], [0, 0, 1, 1], [], []>} : vector<256x12xf32>, vector<12x4xf32>, vector<256x4xf32> -> vector<256x4xf32>
    %45 = arith.addf %30, %44 : vector<256x4xf32>
    %c2_i32 = arith.constant 2 : i32
    %46 = arith.addi %14, %c2_i32 : i32
    %47 = arith.index_cast %46 : i32 to index
    %c0_53 = arith.constant 0 : index
    %c0_54 = arith.constant 0 : index
    %48 = vector.load %arg6[%47, %c0_53, %c0_54] : memref<18x18x4xf32, #tpu.memory_space<vmem>>, vector<16x16x4xf32>
    %c2_i32_55 = arith.constant 2 : i32
    %49 = arith.addi %14, %c2_i32_55 : i32
    %50 = arith.index_cast %49 : i32 to index
    %c1_56 = arith.constant 1 : index
    %c0_57 = arith.constant 0 : index
    %51 = vector.load %arg6[%50, %c1_56, %c0_57] : memref<18x18x4xf32, #tpu.memory_space<vmem>>, vector<16x16x4xf32>
    %c2_i32_58 = arith.constant 2 : i32
    %52 = arith.addi %14, %c2_i32_58 : i32
    %53 = arith.index_cast %52 : i32 to index
    %c2_59 = arith.constant 2 : index
    %c0_60 = arith.constant 0 : index
    %54 = vector.load %arg6[%53, %c2_59, %c0_60] : memref<18x18x4xf32, #tpu.memory_space<vmem>>, vector<16x16x4xf32>
    %55 = tpu.concatenate %48, %51, %54 in 2 : vector<16x16x4xf32>, vector<16x16x4xf32>, vector<16x16x4xf32> -> vector<16x16x12xf32>
    %56 = vector.shape_cast %55 : vector<16x16x12xf32> to vector<256x12xf32>
    %c2_61 = arith.constant 2 : index
    %c0_62 = arith.constant 0 : index
    %c0_63 = arith.constant 0 : index
    %57 = vector.load %arg2[%c2_61, %c0_62, %c0_63] : memref<3x12x4xf32, #tpu.memory_space<vmem>>, vector<1x12x4xf32>
    %58 = vector.shape_cast %57 : vector<1x12x4xf32> to vector<12x4xf32>
    %cst_64 = arith.constant dense<0.000000e+00> : vector<256x4xf32>
    %59 = tpu.matmul %56, %58, %cst_64 {dimension_numbers = #tpu.dot_dimension_numbers<[1], [0], [0], [1], [0, 0, 1, 1], [], []>} : vector<256x12xf32>, vector<12x4xf32>, vector<256x4xf32> -> vector<256x4xf32>
    %60 = arith.addf %45, %59 : vector<256x4xf32>
    %c256_i32 = arith.constant 256 : i32
    %61 = arith.muli %c0_i32, %c256_i32 : i32
    %62 = tpu.assume_multiple %61, 256 : i32
    %63 = arith.index_cast %62 : i32 to index
    %c0_65 = arith.constant 0 : index
    %64 = vector.load %arg7[%63, %c0_65] : memref<256x4xf32, #tpu.memory_space<vmem>>, vector<256x4xf32>
    tpu.vector_store %arg7[%63, %c0_65], %60 {strides = array<i32>} : memref<256x4xf32, #tpu.memory_space<vmem>>, vector<256x4xf32>,
    %cst_66 = arith.constant dense<0.000000e+00> : vector<4xf32>
    %65 = vector.multi_reduction <add>, %60, %cst_66 [0] : vector<256x4xf32> to vector<4xf32>
    %66 = vector.shape_cast %65 : vector<4xf32> to vector<1x4xf32>
    %67 = arith.addf %12, %66 : vector<1x4xf32>
    %68 = arith.mulf %60, %60 : vector<256x4xf32>
    %cst_67 = arith.constant dense<0.000000e+00> : vector<4xf32>
    %69 = vector.multi_reduction <add>, %68, %cst_67 [0] : vector<256x4xf32> to vector<4xf32>
    %70 = vector.shape_cast %69 : vector<4xf32> to vector<1x4xf32>
    %71 = arith.addf %12, %70 : vector<1x4xf32>
    %c1_i32_68 = arith.constant 1 : i32
    %c1_69 = arith.constant 1 : index
    %c0_70 = arith.constant 0 : index
    %72 = vector.load %arg4[%c1_69, %c0_70] : memref<6x4xf32, #tpu.memory_space<vmem>>, vector<1x4xf32>
    %c2_71 = arith.constant 2 : index
    %c0_72 = arith.constant 0 : index
    %73 = vector.load %arg4[%c2_71, %c0_72] : memref<6x4xf32, #tpu.memory_space<vmem>>, vector<1x4xf32>
    %cst_73 = arith.constant 3.906250e-03 : f32
    %74 = vector.broadcast %cst_73 : f32 to vector<1x4xf32>
    %75 = arith.mulf %67, %74 : vector<1x4xf32>
    %cst_74 = arith.constant 3.906250e-03 : f32
    %76 = vector.broadcast %cst_74 : f32 to vector<1x4xf32>
    %77 = arith.mulf %71, %76 : vector<1x4xf32>
    %78 = arith.mulf %75, %75 : vector<1x4xf32>
    %79 = arith.subf %77, %78 : vector<1x4xf32>
    %cst_75 = arith.constant 0.000000e+00 : f32
    %80 = vector.broadcast %cst_75 : f32 to vector<1x4xf32>
    %81 = arith.maximumf %79, %80 : vector<1x4xf32>
    %cst_76 = arith.constant 9.99999974E-6 : f32
    %82 = vector.broadcast %cst_76 : f32 to vector<1x4xf32>
    %83 = arith.addf %81, %82 : vector<1x4xf32>
    %84 = math.rsqrt %83 : vector<1x4xf32>
    %85 = arith.mulf %72, %84 : vector<1x4xf32>
    %86 = arith.mulf %75, %85 : vector<1x4xf32>
    %87 = arith.subf %73, %86 : vector<1x4xf32>
    %c0_77 = arith.constant 0 : index
    %c0_78 = arith.constant 0 : index
    %88 = vector.load %arg7[%c0_77, %c0_78] : memref<256x4xf32, #tpu.memory_space<vmem>>, vector<256x4xf32>
    %89 = vector.broadcast %85 : vector<1x4xf32> to vector<256x4xf32>
    %90 = arith.mulf %88, %89 : vector<256x4xf32>
    %91 = vector.broadcast %87 : vector<1x4xf32> to vector<256x4xf32>
    %92 = arith.addf %90, %91 : vector<256x4xf32>
    %cst_79 = arith.constant 0.000000e+00 : f32
    %93 = vector.broadcast %cst_79 : f32 to vector<256x4xf32>
    %94 = arith.maximumf %92, %93 : vector<256x4xf32>
    %95 = vector.shape_cast %94 : vector<256x4xf32> to vector<16x16x4xf32>
    %c1_80 = arith.constant 1 : index
    %c1_81 = arith.constant 1 : index
    %c0_82 = arith.constant 0 : index
    %96 = vector.load %arg6[%c1_80, %c1_81, %c0_82] : memref<18x18x4xf32, #tpu.memory_space<vmem>>, vector<16x16x4xf32>
    tpu.vector_store %arg6[%c1_80, %c1_81, %c0_82], %95 {strides = array<i32>} : memref<18x18x4xf32, #tpu.memory_space<vmem>>, vector<16x16x4xf32>,
    %c1_83 = arith.constant 1 : index
    %c2_84 = arith.constant 2 : index
    %c0_85 = arith.constant 0 : index
    %97 = vector.load %arg6[%c1_83, %c2_84, %c0_85] : memref<18x18x4xf32, #tpu.memory_space<vmem>>, vector<16x1x4xf32>
    %c1_86 = arith.constant 1 : index
    %c0_87 = arith.constant 0 : index
    %c0_88 = arith.constant 0 : index
    %98 = vector.load %arg6[%c1_86, %c0_87, %c0_88] : memref<18x18x4xf32, #tpu.memory_space<vmem>>, vector<16x1x4xf32>
    tpu.vector_store %arg6[%c1_86, %c0_87, %c0_88], %97 {strides = array<i32>} : memref<18x18x4xf32, #tpu.memory_space<vmem>>, vector<16x1x4xf32>,
    %c1_89 = arith.constant 1 : index
    %c15_90 = arith.constant 15 : index
    %c0_91 = arith.constant 0 : index
    %99 = vector.load %arg6[%c1_89, %c15_90, %c0_91] : memref<18x18x4xf32, #tpu.memory_space<vmem>>, vector<16x1x4xf32>
    %c1_92 = arith.constant 1 : index
    %c17_93 = arith.constant 17 : index
    %c0_94 = arith.constant 0 : index
    %100 = vector.load %arg6[%c1_92, %c17_93, %c0_94] : memref<18x18x4xf32, #tpu.memory_space<vmem>>, vector<16x1x4xf32>
    tpu.vector_store %arg6[%c1_92, %c17_93, %c0_94], %99 {strides = array<i32>} : memref<18x18x4xf32, #tpu.memory_space<vmem>>, vector<16x1x4xf32>,
    %c2_95 = arith.constant 2 : index
    %c0_96 = arith.constant 0 : index
    %c0_97 = arith.constant 0 : index
    %101 = vector.load %arg6[%c2_95, %c0_96, %c0_97] : memref<18x18x4xf32, #tpu.memory_space<vmem>>, vector<1x18x4xf32>
    %c0_98 = arith.constant 0 : index
    %c0_99 = arith.constant 0 : index
    %c0_100 = arith.constant 0 : index
    %102 = vector.load %arg6[%c0_98, %c0_99, %c0_100] : memref<18x18x4xf32, #tpu.memory_space<vmem>>, vector<1x18x4xf32>
    tpu.vector_store %arg6[%c0_98, %c0_99, %c0_100], %101 {strides = array<i32>} : memref<18x18x4xf32, #tpu.memory_space<vmem>>, vector<1x18x4xf32>,
    %c15_101 = arith.constant 15 : index
    %c0_102 = arith.constant 0 : index
    %c0_103 = arith.constant 0 : index
    %103 = vector.load %arg6[%c15_101, %c0_102, %c0_103] : memref<18x18x4xf32, #tpu.memory_space<vmem>>, vector<1x18x4xf32>
    %c17_104 = arith.constant 17 : index
    %c0_105 = arith.constant 0 : index
    %c0_106 = arith.constant 0 : index
    %104 = vector.load %arg6[%c17_104, %c0_105, %c0_106] : memref<18x18x4xf32, #tpu.memory_space<vmem>>, vector<1x18x4xf32>
    tpu.vector_store %arg6[%c17_104, %c0_105, %c0_106], %103 {strides = array<i32>} : memref<18x18x4xf32, #tpu.memory_space<vmem>>, vector<1x18x4xf32>,
    %c3 = arith.constant 3 : index
    %c0_107 = arith.constant 0 : index
    %105 = vector.load %arg4[%c3, %c0_107] : memref<6x4xf32, #tpu.memory_space<vmem>>, vector<1x4xf32>
    %cst_108 = arith.constant 0.000000e+00 : f32
    %106 = vector.broadcast %cst_108 : f32 to vector<1x4xf32>
    %c0_i32_109 = arith.constant 0 : i32
    %c16_i32_110 = arith.constant 16 : i32
    %107 = arith.muli %c0_i32_109, %c16_i32_110 : i32
    %108 = tpu.assume_multiple %107, 16 : i32
    %c0_i32_111 = arith.constant 0 : i32
    %109 = arith.addi %108, %c0_i32_111 : i32
    %110 = arith.index_cast %109 : i32 to index
    %c0_112 = arith.constant 0 : index
    %c0_113 = arith.constant 0 : index
    %111 = vector.load %arg6[%110, %c0_112, %c0_113] : memref<18x18x4xf32, #tpu.memory_space<vmem>>, vector<16x16x4xf32>
    %c0_i32_114 = arith.constant 0 : i32
    %112 = arith.addi %108, %c0_i32_114 : i32
    %113 = arith.index_cast %112 : i32 to index
    %c1_115 = arith.constant 1 : index
    %c0_116 = arith.constant 0 : index
    %114 = vector.load %arg6[%113, %c1_115, %c0_116] : memref<18x18x4xf32, #tpu.memory_space<vmem>>, vector<16x16x4xf32>
    %c0_i32_117 = arith.constant 0 : i32
    %115 = arith.addi %108, %c0_i32_117 : i32
    %116 = arith.index_cast %115 : i32 to index
    %c2_118 = arith.constant 2 : index
    %c0_119 = arith.constant 0 : index
    %117 = vector.load %arg6[%116, %c2_118, %c0_119] : memref<18x18x4xf32, #tpu.memory_space<vmem>>, vector<16x16x4xf32>
    %118 = tpu.concatenate %111, %114, %117 in 2 : vector<16x16x4xf32>, vector<16x16x4xf32>, vector<16x16x4xf32> -> vector<16x16x12xf32>
    %119 = vector.shape_cast %118 : vector<16x16x12xf32> to vector<256x12xf32>
    %c0_120 = arith.constant 0 : index
    %c0_121 = arith.constant 0 : index
    %c0_122 = arith.constant 0 : index
    %120 = vector.load %arg3[%c0_120, %c0_121, %c0_122] : memref<3x12x4xf32, #tpu.memory_space<vmem>>, vector<1x12x4xf32>
    %121 = vector.shape_cast %120 : vector<1x12x4xf32> to vector<12x4xf32>
    %cst_123 = arith.constant dense<0.000000e+00> : vector<256x4xf32>
    %122 = tpu.matmul %119, %121, %cst_123 {dimension_numbers = #tpu.dot_dimension_numbers<[1], [0], [0], [1], [0, 0, 1, 1], [], []>} : vector<256x12xf32>, vector<12x4xf32>, vector<256x4xf32> -> vector<256x4xf32>
    %123 = vector.broadcast %105 : vector<1x4xf32> to vector<256x4xf32>
    %124 = arith.addf %122, %123 : vector<256x4xf32>
    %c1_i32_124 = arith.constant 1 : i32
    %125 = arith.addi %108, %c1_i32_124 : i32
    %126 = arith.index_cast %125 : i32 to index
    %c0_125 = arith.constant 0 : index
    %c0_126 = arith.constant 0 : index
    %127 = vector.load %arg6[%126, %c0_125, %c0_126] : memref<18x18x4xf32, #tpu.memory_space<vmem>>, vector<16x16x4xf32>
    %c1_i32_127 = arith.constant 1 : i32
    %128 = arith.addi %108, %c1_i32_127 : i32
    %129 = arith.index_cast %128 : i32 to index
    %c1_128 = arith.constant 1 : index
    %c0_129 = arith.constant 0 : index
    %130 = vector.load %arg6[%129, %c1_128, %c0_129] : memref<18x18x4xf32, #tpu.memory_space<vmem>>, vector<16x16x4xf32>
    %c1_i32_130 = arith.constant 1 : i32
    %131 = arith.addi %108, %c1_i32_130 : i32
    %132 = arith.index_cast %131 : i32 to index
    %c2_131 = arith.constant 2 : index
    %c0_132 = arith.constant 0 : index
    %133 = vector.load %arg6[%132, %c2_131, %c0_132] : memref<18x18x4xf32, #tpu.memory_space<vmem>>, vector<16x16x4xf32>
    %134 = tpu.concatenate %127, %130, %133 in 2 : vector<16x16x4xf32>, vector<16x16x4xf32>, vector<16x16x4xf32> -> vector<16x16x12xf32>
    %135 = vector.shape_cast %134 : vector<16x16x12xf32> to vector<256x12xf32>
    %c1_133 = arith.constant 1 : index
    %c0_134 = arith.constant 0 : index
    %c0_135 = arith.constant 0 : index
    %136 = vector.load %arg3[%c1_133, %c0_134, %c0_135] : memref<3x12x4xf32, #tpu.memory_space<vmem>>, vector<1x12x4xf32>
    %137 = vector.shape_cast %136 : vector<1x12x4xf32> to vector<12x4xf32>
    %cst_136 = arith.constant dense<0.000000e+00> : vector<256x4xf32>
    %138 = tpu.matmul %135, %137, %cst_136 {dimension_numbers = #tpu.dot_dimension_numbers<[1], [0], [0], [1], [0, 0, 1, 1], [], []>} : vector<256x12xf32>, vector<12x4xf32>, vector<256x4xf32> -> vector<256x4xf32>
    %139 = arith.addf %124, %138 : vector<256x4xf32>
    %c2_i32_137 = arith.constant 2 : i32
    %140 = arith.addi %108, %c2_i32_137 : i32
    %141 = arith.index_cast %140 : i32 to index
    %c0_138 = arith.constant 0 : index
    %c0_139 = arith.constant 0 : index
    %142 = vector.load %arg6[%141, %c0_138, %c0_139] : memref<18x18x4xf32, #tpu.memory_space<vmem>>, vector<16x16x4xf32>
    %c2_i32_140 = arith.constant 2 : i32
    %143 = arith.addi %108, %c2_i32_140 : i32
    %144 = arith.index_cast %143 : i32 to index
    %c1_141 = arith.constant 1 : index
    %c0_142 = arith.constant 0 : index
    %145 = vector.load %arg6[%144, %c1_141, %c0_142] : memref<18x18x4xf32, #tpu.memory_space<vmem>>, vector<16x16x4xf32>
    %c2_i32_143 = arith.constant 2 : i32
    %146 = arith.addi %108, %c2_i32_143 : i32
    %147 = arith.index_cast %146 : i32 to index
    %c2_144 = arith.constant 2 : index
    %c0_145 = arith.constant 0 : index
    %148 = vector.load %arg6[%147, %c2_144, %c0_145] : memref<18x18x4xf32, #tpu.memory_space<vmem>>, vector<16x16x4xf32>
    %149 = tpu.concatenate %142, %145, %148 in 2 : vector<16x16x4xf32>, vector<16x16x4xf32>, vector<16x16x4xf32> -> vector<16x16x12xf32>
    %150 = vector.shape_cast %149 : vector<16x16x12xf32> to vector<256x12xf32>
    %c2_146 = arith.constant 2 : index
    %c0_147 = arith.constant 0 : index
    %c0_148 = arith.constant 0 : index
    %151 = vector.load %arg3[%c2_146, %c0_147, %c0_148] : memref<3x12x4xf32, #tpu.memory_space<vmem>>, vector<1x12x4xf32>
    %152 = vector.shape_cast %151 : vector<1x12x4xf32> to vector<12x4xf32>
    %cst_149 = arith.constant dense<0.000000e+00> : vector<256x4xf32>
    %153 = tpu.matmul %150, %152, %cst_149 {dimension_numbers = #tpu.dot_dimension_numbers<[1], [0], [0], [1], [0, 0, 1, 1], [], []>} : vector<256x12xf32>, vector<12x4xf32>, vector<256x4xf32> -> vector<256x4xf32>
    %154 = arith.addf %139, %153 : vector<256x4xf32>
    %c256_i32_150 = arith.constant 256 : i32
    %155 = arith.muli %c0_i32_109, %c256_i32_150 : i32
    %156 = tpu.assume_multiple %155, 256 : i32
    %157 = arith.index_cast %156 : i32 to index
    %c0_151 = arith.constant 0 : index
    %158 = vector.load %arg7[%157, %c0_151] : memref<256x4xf32, #tpu.memory_space<vmem>>, vector<256x4xf32>
    tpu.vector_store %arg7[%157, %c0_151], %154 {strides = array<i32>} : memref<256x4xf32, #tpu.memory_space<vmem>>, vector<256x4xf32>,
    %cst_152 = arith.constant dense<0.000000e+00> : vector<4xf32>
    %159 = vector.multi_reduction <add>, %154, %cst_152 [0] : vector<256x4xf32> to vector<4xf32>
    %160 = vector.shape_cast %159 : vector<4xf32> to vector<1x4xf32>
    %161 = arith.addf %106, %160 : vector<1x4xf32>
    %162 = arith.mulf %154, %154 : vector<256x4xf32>
    %cst_153 = arith.constant dense<0.000000e+00> : vector<4xf32>
    %163 = vector.multi_reduction <add>, %162, %cst_153 [0] : vector<256x4xf32> to vector<4xf32>
    %164 = vector.shape_cast %163 : vector<4xf32> to vector<1x4xf32>
    %165 = arith.addf %106, %164 : vector<1x4xf32>
    %c1_i32_154 = arith.constant 1 : i32
    %c4 = arith.constant 4 : index
    %c0_155 = arith.constant 0 : index
    %166 = vector.load %arg4[%c4, %c0_155] : memref<6x4xf32, #tpu.memory_space<vmem>>, vector<1x4xf32>
    %c5 = arith.constant 5 : index
    %c0_156 = arith.constant 0 : index
    %167 = vector.load %arg4[%c5, %c0_156] : memref<6x4xf32, #tpu.memory_space<vmem>>, vector<1x4xf32>
    %cst_157 = arith.constant 3.906250e-03 : f32
    %168 = vector.broadcast %cst_157 : f32 to vector<1x4xf32>
    %169 = arith.mulf %161, %168 : vector<1x4xf32>
    %cst_158 = arith.constant 3.906250e-03 : f32
    %170 = vector.broadcast %cst_158 : f32 to vector<1x4xf32>
    %171 = arith.mulf %165, %170 : vector<1x4xf32>
    %172 = arith.mulf %169, %169 : vector<1x4xf32>
    %173 = arith.subf %171, %172 : vector<1x4xf32>
    %cst_159 = arith.constant 0.000000e+00 : f32
    %174 = vector.broadcast %cst_159 : f32 to vector<1x4xf32>
    %175 = arith.maximumf %173, %174 : vector<1x4xf32>
    %cst_160 = arith.constant 9.99999974E-6 : f32
    %176 = vector.broadcast %cst_160 : f32 to vector<1x4xf32>
    %177 = arith.addf %175, %176 : vector<1x4xf32>
    %178 = math.rsqrt %177 : vector<1x4xf32>
    %179 = arith.mulf %166, %178 : vector<1x4xf32>
    %180 = arith.mulf %169, %179 : vector<1x4xf32>
    %181 = arith.subf %167, %180 : vector<1x4xf32>
    %c0_161 = arith.constant 0 : index
    %c0_162 = arith.constant 0 : index
    %182 = vector.load %arg7[%c0_161, %c0_162] : memref<256x4xf32, #tpu.memory_space<vmem>>, vector<256x4xf32>
    %183 = vector.broadcast %179 : vector<1x4xf32> to vector<256x4xf32>
    %184 = arith.mulf %182, %183 : vector<256x4xf32>
    %185 = vector.broadcast %181 : vector<1x4xf32> to vector<256x4xf32>
    %186 = arith.addf %184, %185 : vector<256x4xf32>
    %187 = vector.shape_cast %186 : vector<256x4xf32> to vector<16x16x4xf32>
    %c0_163 = arith.constant 0 : index
    %c0_164 = arith.constant 0 : index
    %c0_165 = arith.constant 0 : index
    %c0_166 = arith.constant 0 : index
    %188 = vector.load %arg1[%c0_163, %c0_164, %c0_165, %c0_166] : memref<1x16x16x4xf32, #tpu.memory_space<vmem>>, vector<1x16x16x4xf32>
    %189 = vector.shape_cast %188 : vector<1x16x16x4xf32> to vector<16x16x4xf32>
    %190 = arith.addf %187, %189 : vector<16x16x4xf32>
    %c0_167 = arith.constant 0 : index
    %c0_168 = arith.constant 0 : index
    %c0_169 = arith.constant 0 : index
    %c0_170 = arith.constant 0 : index
    %191 = vector.load %arg5[%c0_167, %c0_168, %c0_169, %c0_170] : memref<1x16x16x4xf32, #tpu.memory_space<vmem>>, vector<1x16x16x4xf32>
    %192 = vector.shape_cast %191 : vector<1x16x16x4xf32> to vector<16x16x4xf32>
    %193 = vector.shape_cast %190 : vector<16x16x4xf32> to vector<1x16x16x4xf32>
    tpu.vector_store %arg5[%c0_167, %c0_168, %c0_169, %c0_170], %193 {strides = array<i32>} : memref<1x16x16x4xf32, #tpu.memory_space<vmem>>, vector<1x16x16x4xf32>,
    return
  }
  func.func @transform_0(%arg0: i32) -> (i32, i32, i32, i32) {
    %c0_i32 = arith.constant 0 : i32
    %c0_i32_0 = arith.constant 0 : i32
    %c0_i32_1 = arith.constant 0 : i32
    %c0_i32_2 = arith.constant 0 : i32
    return %arg0, %c0_i32, %c0_i32_0, %c0_i32_1 : i32, i32, i32, i32
  }
  func.func @transform_1(%arg0: i32) -> (i32, i32, i32) {
    %c0_i32 = arith.constant 0 : i32
    %c0_i32_0 = arith.constant 0 : i32
    %c0_i32_1 = arith.constant 0 : i32
    %c0_i32_2 = arith.constant 0 : i32
    return %c0_i32, %c0_i32_0, %c0_i32_1 : i32, i32, i32
  }
  func.func @transform_2(%arg0: i32) -> (i32, i32, i32) {
    %c0_i32 = arith.constant 0 : i32
    %c0_i32_0 = arith.constant 0 : i32
    %c0_i32_1 = arith.constant 0 : i32
    %c0_i32_2 = arith.constant 0 : i32
    return %c0_i32, %c0_i32_0, %c0_i32_1 : i32, i32, i32
  }
  func.func @transform_3(%arg0: i32) -> (i32, i32) {
    %c0_i32 = arith.constant 0 : i32
    %c0_i32_0 = arith.constant 0 : i32
    %c0_i32_1 = arith.constant 0 : i32
    return %c0_i32, %c0_i32_0 : i32, i32
  }
  func.func @transform_4(%arg0: i32) -> (i32, i32, i32, i32) {
    %c0_i32 = arith.constant 0 : i32
    %c0_i32_0 = arith.constant 0 : i32
    %c0_i32_1 = arith.constant 0 : i32
    %c0_i32_2 = arith.constant 0 : i32
    return %arg0, %c0_i32, %c0_i32_0, %c0_i32_1 : i32, i32, i32, i32
  }
}

</mosaic_0001>

<bundles_post_ra>
// kernel: tpu_custom_call.1
= control target key start
LH: loop header
LB: loop body
LE: loop exit
PB: predicated region body
PF: predicated region fallthrough
CT: control target
= control target key end

     0   :  { %s6899_s15 = smov 0   ;;  %s9964_s0 = inlined_call_operand.vmem [shape: f32[2,16,16,4], index: 0, kind: input, shape index: {}]   ;;  %s9965_s1 = inlined_call_operand.vmem [shape: f32[3,12,4], index: 1, kind: input, shape index: {}]   ;;  %s9966_s2 = inlined_call_operand.vmem [shape: f32[3,12,4], index: 2, kind: input, shape index: {}]   ;;  %s9967_s3 = inlined_call_operand.vmem [shape: f32[6,4], index: 3, kind: input, shape index: {}]   ;;  %s9968_s4 = inlined_call_operand.vmem [shape: f32[2,16,16,4], index: 4, kind: output, shape index: {}]  }
   0x1 LB: > { %s5883_s16 = sadd.s32 4294967295, %s6869_s15   ;;  %p5887_p0 = scmp.ge.s32.totalorder %s6869_s15, 1  ;;  %s6869_s15 = sphi %s6899_s15, %s14_s15  }
   0x2   : > { %p162_p1 = scmp.lt.s32.totalorder %s6869_s15, 3 }
   0x4   : > { %p163_p2 = pnand %p5887_p0, %p162_p1 }
   0x6   : > { %166 = sbr.rel (%p163_p2) target bundleno = 1601 (0x641), region = 36 }
   0xd   : > { %p188_p3 = scmp.lt.s32.totalorder %s5883_s16, 1  ;;  %vm231_vm0 = vcmask 31744   ;;  %vm280_vm1 = vcmask 24576   ;;  %s6871_s21 = smov 4   ;;  %vm335_vm2 = vcmask 25600   ;;  %vm868_vm3 = vcmask 1043456  }
   0xe   : > { %s6872_s22 = smov 8   ;;  %v765_v62 = vld [vmem:[%s9965_s1] sm:$0xff]  ;;  %vm6873_vm4 = vmmov 1   ;;  %vm771_vm6 = vcmask 97280   ;;  %vm732_vm7 = vcmask 64512  }
   0xf   : > { %s10168_s16 = smov (!%p188_p3, %s5883_s16), 1  ;;  %vm7057_vm5 = vmpackc.low %vm868_vm3, %vm6873_vm4 }
  0x10   : > { %s6102_s17 = sshll.u32 %s10168_s16, 8 }
  0x11   : > { %s6915_s20 = scalar_lea.vmem %s9964_s0, %s6102_s17  ;;  %s9849_s13 = scalar_lea.vmem %s9968_s4, %s6102_s17 }
  0x12   : > { %v199_v0 = vld [vmem:[%s6915_s20 + $0x8] sm:$0xff]  ;;  %v198_v1 = vld [vmem:[%s6915_s20] sm:$0xff]  ;;  %v201_v2 = vld [vmem:[%s6915_s20 + $0x18] sm:$0xff] }
  0x13   : > { %233 = vst.msk [vmem:[#allocation2 + $0x21] sm:$0xff] %vm231_vm0, %v199_v0  ;;  %232 = vst.msk [vmem:[#allocation2 + $0x19] sm:$0xff] %vm231_vm0, %v198_v1  ;;  %v203_v3 = vld [vmem:[%s6915_s20 + $0x28] sm:$0xff]  ;;  %v200_v4 = vld [vmem:[%s6915_s20 + $0x10] sm:$0xff] }
  0x14   : > { %235 = vst.msk [vmem:[#allocation2 + $0x39] sm:$0xff] %vm231_vm0, %v201_v2  ;;  %v202_v5 = vld [vmem:[%s6915_s20 + $0x20] sm:$0xff]  ;;  %237 = vst.msk [vmem:[#allocation2 + $0x51] sm:$0xff] %vm231_vm0, %v203_v3  ;;  %v205_v6 = vld [vmem:[%s6915_s20 + $0x38] sm:$0xff] }
  0x15   : > { %234 = vst.msk [vmem:[#allocation2 + $0x31] sm:$0xff] %vm231_vm0, %v200_v4  ;;  %236 = vst.msk [vmem:[#allocation2 + $0x49] sm:$0xff] %vm231_vm0, %v202_v5  ;;  %v204_v7 = vld [vmem:[%s6915_s20 + $0x30] sm:$0xff]  ;;  %v207_v8 = vld [vmem:[%s6915_s20 + $0x48] sm:$0xff] }
  0x16   : > { %239 = vst.msk [vmem:[#allocation2 + $0x69] sm:$0xff] %vm231_vm0, %v205_v6  ;;  %238 = vst.msk [vmem:[#allocation2 + $0x61] sm:$0xff] %vm231_vm0, %v204_v7  ;;  %v206_v9 = vld [vmem:[%s6915_s20 + $0x40] sm:$0xff]  ;;  %v209_v10 = vld [vmem:[%s6915_s20 + $0x58] sm:$0xff] }
  0x17   : > { %241 = vst.msk [vmem:[#allocation2 + $0x81] sm:$0xff] %vm231_vm0, %v207_v8  ;;  %v208_v11 = vld [vmem:[%s6915_s20 + $0x50] sm:$0xff]  ;;  %240 = vst.msk [vmem:[#allocation2 + $0x79] sm:$0xff] %vm231_vm0, %v206_v9  ;;  %v211_v12 = vld [vmem:[%s6915_s20 + $0x68] sm:$0xff] }
  0x18   : > { %243 = vst.msk [vmem:[#allocation2 + $0x99] sm:$0xff] %vm231_vm0, %v209_v10  ;;  %242 = vst.msk [vmem:[#allocation2 + $0x91] sm:$0xff] %vm231_vm0, %v208_v11  ;;  %v210_v13 = vld [vmem:[%s6915_s20 + $0x60] sm:$0xff]  ;;  %v213_v14 = vld [vmem:[%s6915_s20 + $0x78] sm:$0xff] }
  0x19   : > { %245 = vst.msk [vmem:[#allocation2 + $0xb1] sm:$0xff] %vm231_vm0, %v211_v12  ;;  %244 = vst.msk [vmem:[#allocation2 + $0xa9] sm:$0xff] %vm231_vm0, %v210_v13  ;;  %v212_v15 = vld [vmem:[%s6915_s20 + $0x70] sm:$0xff]  ;;  %v215_v16 = vld [vmem:[%s6915_s20 + $0x88] sm:$0xff] }
  0x1a   : > { %247 = vst.msk [vmem:[#allocation2 + $0xc9] sm:$0xff] %vm231_vm0, %v213_v14  ;;  %v214_v17 = vld [vmem:[%s6915_s20 + $0x80] sm:$0xff]  ;;  %246 = vst.msk [vmem:[#allocation2 + $0xc1] sm:$0xff] %vm231_vm0, %v212_v15  ;;  %v217_v18 = vld [vmem:[%s6915_s20 + $0x98] sm:$0xff] }
  0x1b   : > { %249 = vst.msk [vmem:[#allocation2 + $0xe1] sm:$0xff] %vm231_vm0, %v215_v16  ;;  %248 = vst.msk [vmem:[#allocation2 + $0xd9] sm:$0xff] %vm231_vm0, %v214_v17  ;;  %v216_v19 = vld [vmem:[%s6915_s20 + $0x90] sm:$0xff]  ;;  %v219_v20 = vld [vmem:[%s6915_s20 + $0xa8] sm:$0xff] }
  0x1c   : > { %251 = vst.msk [vmem:[#allocation2 + $0xf9] sm:$0xff] %vm231_vm0, %v217_v18  ;;  %250 = vst.msk [vmem:[#allocation2 + $0xf1] sm:$0xff] %vm231_vm0, %v216_v19  ;;  %v218_v21 = vld [vmem:[%s6915_s20 + $0xa0] sm:$0xff]  ;;  %v221_v22 = vld [vmem:[%s6915_s20 + $0xb8] sm:$0xff] }
  0x1d   : > { %253 = vst.msk [vmem:[#allocation2 + $0x111] sm:$0xff] %vm231_vm0, %v219_v20  ;;  %v220_v23 = vld [vmem:[%s6915_s20 + $0xb0] sm:$0xff]  ;;  %v6962_v24 = vld [vmem:[#allocation2 + $0x21] sm:$0xff]  ;;  %v6964_v25 = vld [vmem:[#allocation2 + $0x19] sm:$0xff] }
  0x1e   : > { %252 = vst.msk [vmem:[#allocation2 + $0x109] sm:$0xff] %vm231_vm0, %v218_v21  ;;  %255 = vst.msk [vmem:[#allocation2 + $0x129] sm:$0xff] %vm231_vm0, %v221_v22  ;;  %482 = vrot.lane.b32.xlu1 %v6962_v24, %s6871_s21  ;;  %480 = vrot.lane.b32.xlu0 %v6964_v25, %s6871_s21  ;;  %v265_v26 = vld [vmem:[#allocation2 + $0x32] sm:$0x1]  ;;  %v6973_v27 = vld [vmem:[#allocation2 + $0x39] sm:$0xff] }
  0x1f   : > { %254 = vst.msk [vmem:[#allocation2 + $0x121] sm:$0xff] %vm231_vm0, %v220_v23  ;;  %v6975_v28 = vld [vmem:[#allocation2 + $0x1a] sm:$0xff]  ;;  %v297_v29 = vld [vmem:[#allocation2 + $0x27] sm:$0x1]  ;;  %v299_v31 = vld [vmem:[#allocation2 + $0x57] sm:$0x1] }
  0x20   : > { %282 = vst.msk [vmem:[#allocation2 + $0x30] sm:$0x1] %vm280_vm1, %v265_v26  ;;  %313 = vst.msk [vmem:[#allocation2 + $0x29] sm:$0x1] %vm280_vm1, %v297_v29  ;;  %v298_v30 = vld [vmem:[#allocation2 + $0x3f] sm:$0x1] }
  0x21   : > { %314 = vst.msk [vmem:[#allocation2 + $0x41] sm:$0x1] %vm280_vm1, %v298_v30  ;;  %315 = vst.msk [vmem:[#allocation2 + $0x59] sm:$0x1] %vm280_vm1, %v299_v31  ;;  %v6981_v32 = vld [vmem:[#allocation2 + $0x38] sm:$0xff]  ;;  %v7017_v45 = vld [vmem:[#allocation2 + $0x49] sm:$0xff] }
  0x22   : > { %486 = vrot.lane.b32.xlu1 %v6973_v27, %s6871_s21  ;;  %608 = vrot.lane.b32.xlu0 %v6975_v28, %s6872_s22  ;;  %334 = vst.msk [vmem:[#allocation2 + $0x8] sm:$0xff] %vm231_vm0, %v6981_v32  ;;  %v300_v33 = vld [vmem:[#allocation2 + $0x6f] sm:$0x1]  ;;  %v6989_v34 = vld [vmem:[#allocation2 + $0x51] sm:$0xff]  ;;  %v301_v36 = vld [vmem:[#allocation2 + $0x87] sm:$0x1] }
  0x23   : > { %v6991_v35 = vld [vmem:[#allocation2 + $0x31] sm:$0xff]  ;;  %316 = vst.msk [vmem:[#allocation2 + $0x71] sm:$0x1] %vm280_vm1, %v300_v33  ;;  %317 = vst.msk [vmem:[#allocation2 + $0x89] sm:$0x1] %vm280_vm1, %v301_v36  ;;  %v223_v53 = vld [vmem:[%s6915_s20 + $0xc8] sm:$0xff] }
  0x24   : > { %v302_v37 = vld [vmem:[#allocation2 + $0x9f] sm:$0x1]  ;;  %v303_v39 = vld [vmem:[#allocation2 + $0xb7] sm:$0x1]  ;;  %v304_v43 = vld [vmem:[#allocation2 + $0xcf] sm:$0x1] }
  0x25   : > { %318 = vst.msk [vmem:[#allocation2 + $0xa1] sm:$0x1] %vm280_vm1, %v302_v37  ;;  %v7004_v41 = vld [vmem:[#allocation2 + $0x32] sm:$0xff]  ;;  %319 = vst.msk [vmem:[#allocation2 + $0xb9] sm:$0x1] %vm280_vm1, %v303_v39  ;;  %v7027_v49 = vld [vmem:[#allocation2 + $0x4a] sm:$0xff] }
  0x26   : > { %490 = vrot.lane.b32.xlu1 %v6989_v34, %s6871_s21  ;;  %484 = vrot.lane.b32.xlu0 %v6991_v35, %s6871_s21  ;;  %320 = vst.msk [vmem:[#allocation2 + $0xd1] sm:$0x1] %vm280_vm1, %v304_v43  ;;  %v305_v46 = vld [vmem:[#allocation2 + $0xe7] sm:$0x1]  ;;  %v306_v47 = vld [vmem:[#allocation2 + $0xff] sm:$0x1] }
  0x27   : > { %v6999_v38 = vld [vmem:[#allocation2 + $0x30] sm:$0xff]  ;;  %v7002_v40 = vld [vmem:[#allocation2 + $0x22] sm:$0xff]  ;;  %321 = vst.msk [vmem:[#allocation2 + $0xe9] sm:$0x1] %vm280_vm1, %v305_v46  ;;  %322 = vst.msk [vmem:[#allocation2 + $0x101] sm:$0x1] %vm280_vm1, %v306_v47 }
  0x28   : > { %333 = vst.msk [vmem:[#allocation2] sm:$0xff] %vm231_vm0, %v6999_v38  ;;  %v332_v42 = vld [vmem:[#allocation2 + $0x40] sm:$0x3]  ;;  %v7025_v48 = vld [vmem:[#allocation2 + $0x52] sm:$0xff]  ;;  %v308_v51 = vld [vmem:[#allocation2 + $0x12f] sm:$0x1] }
  0x29   : > { %336 = vst.msk [vmem:[#allocation2 + $0x10] sm:$0x3] %vm335_vm2, %v332_v42  ;;  %v7015_v44 = vld [vmem:[#allocation2 + $0x3a] sm:$0xff]  ;;  %v307_v50 = vld [vmem:[#allocation2 + $0x117] sm:$0x1]  ;;  %v227_v59 = vld [vmem:[%s6915_s20 + $0xe8] sm:$0xff] }
  0x2a   : > { %610 = vrot.lane.b32.xlu1 %v7002_v40, %s6872_s22  ;;  %612 = vrot.lane.b32.xlu0 %v7004_v41, %s6872_s22  ;;  %323 = vst.msk [vmem:[#allocation2 + $0x119] sm:$0x1] %vm280_vm1, %v307_v50  ;;  %324 = vst.msk [vmem:[#allocation2 + $0x131] sm:$0x1] %vm280_vm1, %v308_v51  ;;  %v222_v54 = vld [vmem:[%s6915_s20 + $0xc0] sm:$0xff]  ;;  %v225_v56 = vld [vmem:[%s6915_s20 + $0xd8] sm:$0xff] }
  0x2b   : > { %257 = vst.msk [vmem:[#allocation2 + $0x141] sm:$0xff] %vm231_vm0, %v223_v53  ;;  %256 = vst.msk [vmem:[#allocation2 + $0x139] sm:$0xff] %vm231_vm0, %v222_v54  ;;  %v224_v57 = vld [vmem:[%s6915_s20 + $0xd0] sm:$0xff]  ;;  %v264_v58 = vld [vmem:[#allocation2 + $0x1a] sm:$0x1] }
  0x2c   : > { %259 = vst.msk [vmem:[#allocation2 + $0x159] sm:$0xff] %vm231_vm0, %v225_v56  ;;  %258 = vst.msk [vmem:[#allocation2 + $0x151] sm:$0xff] %vm231_vm0, %v224_v57  ;;  %v226_v60 = vld [vmem:[%s6915_s20 + $0xe0] sm:$0xff]  ;;  %v266_v61 = vld [vmem:[#allocation2 + $0x4a] sm:$0x1] }
  0x2d   : > { %281 = vst.msk [vmem:[#allocation2 + $0x18] sm:$0x1] %vm280_vm1, %v264_v58  ;;  %283 = vst.msk [vmem:[#allocation2 + $0x48] sm:$0x1] %vm280_vm1, %v266_v61  ;;  %v766_v1 = vld [vmem:[%s9965_s1 + $0x8] sm:$0xf] }
  0x2e   : > { %614 = vrot.lane.b32.xlu1 %v7015_v44, %s6872_s22  ;;  %488 = vrot.lane.b32.xlu0 %v7017_v45, %s6871_s21  ;;  %261 = vst.msk [vmem:[#allocation2 + $0x171] sm:$0xff] %vm231_vm0, %v227_v59  ;;  %260 = vst.msk [vmem:[#allocation2 + $0x169] sm:$0xff] %vm231_vm0, %v226_v60  ;;  %v6620_v2 = vpack.c.bf16 %v766_v1, %v765_v62  ;;  %v267_v4 = vld [vmem:[#allocation2 + $0x62] sm:$0x1]  ;;  %v268_v5 = vld [vmem:[#allocation2 + $0x7a] sm:$0x1] }
  0x2f   : > { %v412_v52 = vld [vmem:[#allocation2 + $0x2] sm:$0xff]  ;;  %284 = vst.msk [vmem:[#allocation2 + $0x60] sm:$0x1] %vm280_vm1, %v267_v4  ;;  %285 = vst.msk [vmem:[#allocation2 + $0x78] sm:$0x1] %vm280_vm1, %v268_v5  ;;  %v7080_v12 = vld [vmem:[#allocation2 + $0x6a] sm:$0xff] }
  0x30   : > { %v380_v55 = vld [vmem:[#allocation2 + $0x1] sm:$0xff]  ;;  %v413_v63 = vld [vmem:[#allocation2 + $0xa] sm:$0xff]  ;;  %6622 = vmatprep.subr.msk.bf16.mxu0 %vm7057_vm5, %v6620_v2  ;;  %v269_v11 = vld [vmem:[#allocation2 + $0x92] sm:$0x1] }
  0x31   : > { %v381_v0 = vld [vmem:[#allocation2 + $0x9] sm:$0xff]  ;;  %v7067_v8 = vld [vmem:[#allocation2 + $0x61] sm:$0xff]  ;;  %6625 = vmatpush3.bf16.msk.msra.mxu0 %vm7057_vm5, %v6620_v2  ;;  %286 = vst.msk [vmem:[#allocation2 + $0x90] sm:$0x1] %vm280_vm1, %v269_v11  ;;  %v7092_v16 = vld [vmem:[#allocation2 + $0x79] sm:$0xff] }
  0x32   : > { %618 = vrot.lane.b32.xlu1 %v7025_v48, %s6872_s22  ;;  %616 = vrot.lane.b32.xlu0 %v7027_v49, %s6872_s22  ;;  %v309_v6 = vld [vmem:[#allocation2 + $0x147] sm:$0x1]  ;;  %v7065_v7 = vld [vmem:[#allocation2 + $0x69] sm:$0xff]  ;;  %v7100_v18 = vld [vmem:[#allocation2 + $0x7a] sm:$0xff] }
  0x33   : > { %325 = vst.msk [vmem:[#allocation2 + $0x149] sm:$0x1] %vm280_vm1, %v309_v6  ;;  %v310_v9 = vld [vmem:[#allocation2 + $0x15f] sm:$0x1]  ;;  %v7082_v13 = vld [vmem:[#allocation2 + $0x62] sm:$0xff]  ;;  %v7109_v21 = vld [vmem:[#allocation2 + $0x91] sm:$0xff] }
  0x34   : > { %326 = vst.msk [vmem:[#allocation2 + $0x161] sm:$0x1] %vm280_vm1, %v310_v9  ;;  %v270_v14 = vld [vmem:[#allocation2 + $0xaa] sm:$0x1]  ;;  %v7090_v15 = vld [vmem:[#allocation2 + $0x81] sm:$0xff]  ;;  %v7107_v20 = vld [vmem:[#allocation2 + $0x99] sm:$0xff] }
  0x35   : > { %v311_v10 = vld [vmem:[#allocation2 + $0x177] sm:$0x1]  ;;  %287 = vst.msk [vmem:[#allocation2 + $0xa8] sm:$0x1] %vm280_vm1, %v270_v14  ;;  %v7098_v17 = vld [vmem:[#allocation2 + $0x82] sm:$0xff]  ;;  %v7115_v22 = vld [vmem:[#allocation2 + $0x9a] sm:$0xff] }
  0x36   : > { %604 = vrot.lane.b32.xlu1 %v412_v52, %s6872_s22  ;;  %476 = vrot.lane.b32.xlu0 %v380_v55, %s6871_s21  ;;  %327 = vst.msk [vmem:[#allocation2 + $0x179] sm:$0x1] %vm280_vm1, %v311_v10  ;;  %v271_v19 = vld [vmem:[#allocation2 + $0xc2] sm:$0x1]  ;;  %v7117_v23 = vld [vmem:[#allocation2 + $0x92] sm:$0xff]  ;;  %v7126_v30 = vld [vmem:[#allocation2 + $0xa9] sm:$0xff] }
  0x37   : > { %288 = vst.msk [vmem:[#allocation2 + $0xc0] sm:$0x1] %vm280_vm1, %v271_v19  ;;  %v272_v26 = vld [vmem:[#allocation2 + $0xda] sm:$0x1]  ;;  %v7124_v29 = vld [vmem:[#allocation2 + $0xb1] sm:$0xff]  ;;  %v7141_v37 = vld [vmem:[#allocation2 + $0xc9] sm:$0xff] }
  0x38   : > { %289 = vst.msk [vmem:[#allocation2 + $0xd8] sm:$0x1] %vm280_vm1, %v272_v26  ;;  %v7132_v31 = vld [vmem:[#allocation2 + $0xb2] sm:$0xff]  ;;  %v7134_v33 = vld [vmem:[#allocation2 + $0xaa] sm:$0xff]  ;;  %v7143_v39 = vld [vmem:[#allocation2 + $0xc1] sm:$0xff] }
  0x39   : > { %v273_v36 = vld [vmem:[#allocation2 + $0xf2] sm:$0x1]  ;;  %v7149_v42 = vld [vmem:[#allocation2 + $0xca] sm:$0xff]  ;;  %v7151_v43 = vld [vmem:[#allocation2 + $0xc2] sm:$0xff] }
  0x3a   : > { %606 = vrot.lane.b32.xlu1 %v413_v63, %s6872_s22  ;;  %478 = vrot.lane.b32.xlu0 %v381_v0, %s6871_s21  ;;  %290 = vst.msk [vmem:[#allocation2 + $0xf0] sm:$0x1] %vm280_vm1, %v273_v36  ;;  %v274_v46 = vld [vmem:[#allocation2 + $0x10a] sm:$0x1]  ;;  %v7158_v47 = vld [vmem:[#allocation2 + $0xe1] sm:$0xff]  ;;  %v7160_v50 = vld [vmem:[#allocation2 + $0xd9] sm:$0xff] }
  0x3b   : > { %291 = vst.msk [vmem:[#allocation2 + $0x108] sm:$0x1] %vm280_vm1, %v274_v46  ;;  %v7166_v51 = vld [vmem:[#allocation2 + $0xe2] sm:$0xff]  ;;  %v7168_v52 = vld [vmem:[#allocation2 + $0xda] sm:$0xff]  ;;  %v7177_v55 = vld [vmem:[#allocation2 + $0xf1] sm:$0xff] }
  0x3c   : > { %v275_v53 = vld [vmem:[#allocation2 + $0x122] sm:$0x1]  ;;  %v7175_v54 = vld [vmem:[#allocation2 + $0xf9] sm:$0xff]  ;;  %v7192_v59 = vld [vmem:[#allocation2 + $0x111] sm:$0xff] }
  0x3d   : > { %292 = vst.msk [vmem:[#allocation2 + $0x120] sm:$0x1] %vm280_vm1, %v275_v53  ;;  %v7183_v56 = vld [vmem:[#allocation2 + $0xfa] sm:$0xff]  ;;  %v7185_v57 = vld [vmem:[#allocation2 + $0xf2] sm:$0xff]  ;;  %v7194_v60 = vld [vmem:[#allocation2 + $0x109] sm:$0xff] }
  0x3e   : > { %494 = vrot.lane.b32.xlu1 %v7065_v7, %s6871_s21  ;;  %492 = vrot.lane.b32.xlu0 %v7067_v8, %s6871_s21  ;;  %v276_v58 = vld [vmem:[#allocation2 + $0x13a] sm:$0x1]  ;;  %v7200_v61 = vld [vmem:[#allocation2 + $0x112] sm:$0xff]  ;;  %v7202_v62 = vld [vmem:[#allocation2 + $0x10a] sm:$0xff] }
  0x3f   : > { %293 = vst.msk [vmem:[#allocation2 + $0x138] sm:$0x1] %vm280_vm1, %v276_v58  ;;  %10001 = vst [vmem:[#allocation4_spill] sm:$0xff] %v7202_v62  ;;  %v277_v63 = vld [vmem:[#allocation2 + $0x152] sm:$0x1]  ;;  %v7209_v0 = vld [vmem:[#allocation2 + $0x129] sm:$0xff] }
  0x40   : > { %294 = vst.msk [vmem:[#allocation2 + $0x150] sm:$0x1] %vm280_vm1, %v277_v63  ;;  %10002 = vst [vmem:[#allocation5_spill] sm:$0xff] %v7209_v0  ;;  %v7211_v1 = vld [vmem:[#allocation2 + $0x121] sm:$0xff]  ;;  %v7217_v2 = vld [vmem:[#allocation2 + $0x12a] sm:$0xff] }
  0x41   : > { %10003 = vst [vmem:[#allocation6_spill] sm:$0xff] %v7211_v1  ;;  %10004 = vst [vmem:[#allocation7_spill] sm:$0xff] %v7217_v2  ;;  %v7219_v4 = vld [vmem:[#allocation2 + $0x122] sm:$0xff]  ;;  %v278_v5 = vld [vmem:[#allocation2 + $0x16a] sm:$0x1] }
  0x42   : > { %622 = vrot.lane.b32.xlu1 %v7080_v12, %s6872_s22  ;;  %620 = vrot.lane.b32.xlu0 %v7082_v13, %s6872_s22  ;;  %10005 = vst [vmem:[#allocation8_spill] sm:$0xff] %v7219_v4  ;;  %295 = vst.msk [vmem:[#allocation2 + $0x168] sm:$0x1] %vm280_vm1, %v278_v5  ;;  %v7226_v6 = vld [vmem:[#allocation2 + $0x141] sm:$0xff]  ;;  %v7228_v9 = vld [vmem:[#allocation2 + $0x139] sm:$0xff] }
  0x43   : > { %10006 = vst [vmem:[#allocation9_spill] sm:$0xff] %v7226_v6  ;;  %10007 = vst [vmem:[#allocation10_spill] sm:$0xff] %v7228_v9  ;;  %v7234_v10 = vld [vmem:[#allocation2 + $0x142] sm:$0xff]  ;;  %v7236_v11 = vld [vmem:[#allocation2 + $0x13a] sm:$0xff] }
  0x44   : > { %10008 = vst [vmem:[#allocation11_spill] sm:$0xff] %v7234_v10  ;;  %10009 = vst [vmem:[#allocation12_spill] sm:$0xff] %v7236_v11  ;;  %v7238_v14 = vld [vmem:[#allocation2 + $0x170] sm:$0xff]  ;;  %v229_v26 = vld [vmem:[%s6915_s20 + $0xf8] sm:$0xff] }
  0x45   : > { %10010 = vst [vmem:[#allocation13_spill] sm:$0xff] %v7238_v14  ;;  %343 = vst.msk [vmem:[#allocation2 + $0x1a0] sm:$0xff] %vm231_vm0, %v7238_v14  ;;  %v7251_v36 = vld [vmem:[#allocation2 + $0x159] sm:$0xff]  ;;  %v7253_v46 = vld [vmem:[#allocation2 + $0x151] sm:$0xff] }
  0x46   : > { %498 = vrot.lane.b32.xlu1 %v7090_v15, %s6871_s21  ;;  %496 = vrot.lane.b32.xlu0 %v7092_v16, %s6871_s21  ;;  %10012 = vst [vmem:[#allocation15_spill] sm:$0xff] %v7251_v36  ;;  %10013 = vst [vmem:[#allocation16_spill] sm:$0xff] %v7253_v46  ;;  %v228_v53 = vld [vmem:[%s6915_s20 + $0xf0] sm:$0xff]  ;;  %v7261_v58 = vld [vmem:[#allocation2 + $0x15a] sm:$0xff] }
  0x47   : > { %263 = vst.msk [vmem:[#allocation2 + $0x189] sm:$0xff] %vm231_vm0, %v229_v26  ;;  %10014 = vst [vmem:[#allocation17_spill] sm:$0xff] %v7261_v58  ;;  %v7263_v63 = vld [vmem:[#allocation2 + $0x152] sm:$0xff] }
  0x48   : > { %10015 = vst [vmem:[#allocation18_spill] sm:$0xff] %v7263_v63  ;;  %262 = vst.msk [vmem:[#allocation2 + $0x181] sm:$0xff] %vm231_vm0, %v228_v53  ;;  %v5926_v14 = vld [vmem:[%s9965_s1 + $0x10] sm:$0xff]  ;;  %v5927_v26 = vld [vmem:[%s9965_s1 + $0x18] sm:$0xf] }
  0x49   : > { %v7240_v19 = vld [vmem:[#allocation2 + $0x168] sm:$0xff] }
  0x4a   : > { %626 = vrot.lane.b32.xlu1 %v7098_v17, %s6872_s22  ;;  %624 = vrot.lane.b32.xlu0 %v7100_v18, %s6872_s22  ;;  %10011 = vst [vmem:[#allocation14_spill] sm:$0xff] %v7240_v19  ;;  %342 = vst.msk [vmem:[#allocation2 + $0x198] sm:$0xff] %vm231_vm0, %v7240_v19  ;;  %v7278_v53 = vld [vmem:[#allocation2 + $0x169] sm:$0xff] }
  0x4b   : > { %10017 = vst [vmem:[#allocation20_spill] sm:$0xff] %v7278_v53 }
  0x4e   : > { %502 = vrot.lane.b32.xlu1 %v7107_v20, %s6871_s21  ;;  %500 = vrot.lane.b32.xlu0 %v7109_v21, %s6871_s21 }
  0x52   : > { %630 = vrot.lane.b32.xlu1 %v7115_v22, %s6872_s22  ;;  %628 = vrot.lane.b32.xlu0 %v7117_v23, %s6872_s22 }
  0x56   : > { %506 = vrot.lane.b32.xlu1 %v7124_v29, %s6871_s21  ;;  %504 = vrot.lane.b32.xlu0 %v7126_v30, %s6871_s21 }
  0x5a   : > { %634 = vrot.lane.b32.xlu1 %v7132_v31, %s6872_s22  ;;  %632 = vrot.lane.b32.xlu0 %v7134_v33, %s6872_s22 }
  0x5e   : > { %510 = vrot.lane.b32.xlu1 %v7141_v37, %s6871_s21  ;;  %508 = vrot.lane.b32.xlu0 %v7143_v39, %s6871_s21 }
  0x62   : > { %638 = vrot.lane.b32.xlu1 %v7149_v42, %s6872_s22  ;;  %636 = vrot.lane.b32.xlu0 %v7151_v43, %s6872_s22 }
  0x66   : > { %514 = vrot.lane.b32.xlu1 %v7158_v47, %s6871_s21  ;;  %512 = vrot.lane.b32.xlu0 %v7160_v50, %s6871_s21 }
  0x6a   : > { %642 = vrot.lane.b32.xlu1 %v7166_v51, %s6872_s22  ;;  %640 = vrot.lane.b32.xlu0 %v7168_v52, %s6872_s22 }
  0x6e   : > { %518 = vrot.lane.b32.xlu1 %v7175_v54, %s6871_s21  ;;  %516 = vrot.lane.b32.xlu0 %v7177_v55, %s6871_s21 }
  0x72   : > { %646 = vrot.lane.b32.xlu1 %v7183_v56, %s6872_s22  ;;  %644 = vrot.lane.b32.xlu0 %v7185_v57, %s6872_s22 }
  0x76   : > { %522 = vrot.lane.b32.xlu1 %v7192_v59, %s6871_s21  ;;  %520 = vrot.lane.b32.xlu0 %v7194_v60, %s6871_s21 }
  0x7a   : > { %650 = vrot.lane.b32.xlu1 %v7200_v61, %s6872_s22  ;;  %648 = vrot.lane.b32.xlu0 %v7202_v62, %s6872_s22  ;;  %v7319_v62 = vld [vmem:[#allocation2 + $0x20] sm:$0xff] }
  0x7e   : > { %526 = vrot.lane.b32.xlu1 %v7209_v0, %s6871_s21  ;;  %524 = vrot.lane.b32.xlu0 %v7211_v1, %s6871_s21 }
  0x82   : > { %654 = vrot.lane.b32.xlu1 %v7217_v2, %s6872_s22  ;;  %652 = vrot.lane.b32.xlu0 %v7219_v4, %s6872_s22 }
  0x86   : > { %530 = vrot.lane.b32.xlu1 %v7226_v6, %s6871_s21  ;;  %528 = vrot.lane.b32.xlu0 %v7228_v9, %s6871_s21 }
  0x8a   : > { %658 = vrot.lane.b32.xlu1 %v7234_v10, %s6872_s22  ;;  %656 = vrot.lane.b32.xlu0 %v7236_v11, %s6872_s22  ;;  %v7276_v11 = vld [vmem:[#allocation2 + $0x171] sm:$0xff] }
  0x8b   : > { %10016 = vst [vmem:[#allocation19_spill] sm:$0xff] %v7276_v11 }
  0x8e   : > { %534 = vrot.lane.b32.xlu1 %v7251_v36, %s6871_s21  ;;  %532 = vrot.lane.b32.xlu0 %v7253_v46, %s6871_s21  ;;  %v6626_v46 = vpack.c.bf16 %v5927_v26, %v5926_v14  ;;  %v312_v36 = vld [vmem:[#allocation2 + $0x18f] sm:$0x1] }
  0x8f   : > { %328 = vst.msk [vmem:[#allocation2 + $0x191] sm:$0x1] %vm280_vm1, %v312_v36  ;;  %v7289_v14 = vld [vmem:[#allocation2 + $0x16a] sm:$0xff] }
  0x90   : > { %v483_v5 = vpop.permute.xlu1 %482  ;;  %v481_v19 = vpop.permute.xlu0 %480  ;;  %6628 = vmatprep.subr.msk.bf16.mxu0 %vm7057_vm5, %v6626_v46  ;;  %10019 = vst [vmem:[#allocation22_spill] sm:$0xff] %v7289_v14 }
  0x92   : > { %662 = vrot.lane.b32.xlu1 %v7261_v58, %s6872_s22  ;;  %660 = vrot.lane.b32.xlu0 %v7263_v63, %s6872_s22  ;;  %v7287_v63 = vld [vmem:[#allocation2 + $0x172] sm:$0xff] }
  0x93   : > { %10018 = vst [vmem:[#allocation21_spill] sm:$0xff] %v7287_v63 }
  0x94   : > { %v487_v10 = vpop.permute.xlu1 %486  ;;  %v609_v9 = vpop.permute.xlu0 %608 }
  0x96   : > { %538 = vrot.lane.b32.xlu1 %v7276_v11, %s6871_s21  ;;  %536 = vrot.lane.b32.xlu0 %v7278_v53, %s6871_s21 }
  0x98   : > { %v7291_v26 = vpop.permute.xlu1 %490  ;;  %v485_v58 = vpop.permute.xlu0 %484 }
  0x9a   : > { %666 = vrot.lane.b32.xlu1 %v7287_v63, %s6872_s22  ;;  %664 = vrot.lane.b32.xlu0 %v7289_v14, %s6872_s22 }
  0x9c   : > { %v611_v36 = vpop.permute.xlu1 %610  ;;  %v613_v6 = vpop.permute.xlu0 %612 }
  0x9e   : > { %1230 = vrot.lane.b32.xlu1 %v6962_v24, %s6871_s21  ;;  %1228 = vrot.lane.b32.xlu0 %v6964_v25, %s6871_s21  ;;  %v348_v24 = vld [vmem:[#allocation2] sm:$0xff] }
  0xa0   : > { %v615_v53 = vpop.permute.xlu1 %614  ;;  %v489_v11 = vpop.permute.xlu0 %488 }
  0xa2   : > { %1358 = vrot.lane.b32.xlu1 %v7002_v40, %s6872_s22  ;;  %1356 = vrot.lane.b32.xlu0 %v6975_v28, %s6872_s22  ;;  %v349_v40 = vld [vmem:[#allocation2 + $0x8] sm:$0xff] }
  0xa4   : > { %v619_v63 = vpop.permute.xlu1 %618  ;;  %v617_v4 = vpop.permute.xlu0 %616 }
  0xa6   : > { %1234 = vrot.lane.b32.xlu1 %v6973_v27, %s6871_s21  ;;  %1232 = vrot.lane.b32.xlu0 %v6991_v35, %s6871_s21  ;;  %v7315_v27 = vld [vmem:[#allocation2 + $0x18] sm:$0xff] }
  0xa8   : > { %v605_v14 = vpop.permute.xlu1 %604  ;;  %v477_v2 = vpop.permute.xlu0 %476 }
  0xa9   : > { %v700_v25 = vsel %vm231_vm0, %v348_v24, %v477_v2  ;;  %v702_v2 = vsel %vm231_vm0, %v7315_v27, %v481_v19 }
  0xaa   : > { %1362 = vrot.lane.b32.xlu1 %v7015_v44, %s6872_s22  ;;  %1360 = vrot.lane.b32.xlu0 %v7004_v41, %s6872_s22  ;;  %v733_v28 = vsel %vm732_vm7, %v700_v25, %v605_v14  ;;  %v735_v44 = vsel %vm732_vm7, %v702_v2, %v609_v9  ;;  %v7343_v9 = vld [vmem:[#allocation2 + $0x48] sm:$0xff] }
  0xab   : > { %6312 = vmatprep.mubr.msk.f32.mxu0 %vm771_vm6, %v733_v28 }
  0xac   : > { %v607_v35 = vpop.permute.xlu1 %606  ;;  %v479_v1 = vpop.permute.xlu0 %478 }
  0xad   : > { %v701_v0 = vsel %vm231_vm0, %v349_v40, %v479_v1  ;;  %v703_v1 = vsel %vm231_vm0, %v7319_v62, %v483_v5  ;;  %v7359_v5 = vld [vmem:[#allocation2 + $0x60] sm:$0xff] }
  0xae   : > { %1238 = vrot.lane.b32.xlu1 %v6989_v34, %s6871_s21  ;;  %1236 = vrot.lane.b32.xlu0 %v7017_v45, %s6871_s21  ;;  %v734_v41 = vsel %vm732_vm7, %v701_v0, %v607_v35  ;;  %v704_v34 = vsel %vm231_vm0, %v6999_v38, %v485_v58  ;;  %v736_v45 = vsel %vm732_vm7, %v703_v1, %v611_v36  ;;  %v7349_v58 = vld [vmem:[#allocation2 + $0x50] sm:$0xff]  ;;  %v7376_v36 = vld [vmem:[#allocation2 + $0x78] sm:$0xff]  ;;  %v7383_v40 = vld [vmem:[#allocation2 + $0x80] sm:$0xff] }
  0xaf   : > { %6313 = vmatmul.mubr.msk.f32.vlgmr.msra.gmra.mrb[0].mxu0 %vm771_vm6, %v734_v41  ;;  %v737_v0 = vsel %vm732_vm7, %v704_v34, %v613_v6  ;;  %v705_v38 = vsel %vm231_vm0, %v6981_v32, %v487_v10 }
  0xb0   : > { %v495_v14 = vpop.permute.xlu1 %494  ;;  %v493_v24 = vpop.permute.xlu0 %492  ;;  %6315 = vmatprep.mubr.msk.f32.mxu0 %vm771_vm6, %v735_v44  ;;  %6631 = vmatpush3.bf16.msk.msra.mxu0 %vm7057_vm5, %v6626_v46  ;;  %v7396_v44 = vld [vmem:[#allocation2 + $0x98] sm:$0xff] }
  0xb2   : > { %1366 = vrot.lane.b32.xlu1 %v7025_v48, %s6872_s22  ;;  %1364 = vrot.lane.b32.xlu0 %v7027_v49, %s6872_s22  ;;  %v738_v48 = vsel %vm732_vm7, %v705_v38, %v615_v53  ;;  %v706_v49 = vsel %vm231_vm0, %v7343_v9, %v489_v11  ;;  %v707_v11 = vsel %vm231_vm0, %v7349_v58, %v7291_v26 }
  0xb3   : > { %6316 = vmatmul.mubr.msk.f32.gmra.mrb[2].mxu0 %vm771_vm6, %v736_v45  ;;  %v739_v6 = vsel %vm732_vm7, %v706_v49, %v617_v4  ;;  %v740_v53 = vsel %vm732_vm7, %v707_v11, %v619_v63 }
  0xb4   : > { %v623_v19 = vpop.permute.xlu1 %622  ;;  %v621_v46 = vpop.permute.xlu0 %620  ;;  %6318 = vmatprep.mubr.msk.f32.mxu0 %vm771_vm6, %v737_v0 }
  0xb6   : > { %1242 = vrot.lane.b32.xlu1 %v7065_v7, %s6871_s21  ;;  %1240 = vrot.lane.b32.xlu0 %v7067_v8, %s6871_s21  ;;  %v7367_v7 = vld [vmem:[#allocation2 + $0x68] sm:$0xff]  ;;  %v708_v8 = vsel %vm231_vm0, %v7359_v5, %v493_v24 }
  0xb7   : > { %6319 = vmatmul.mubr.msk.f32.gmra.mrb[4].mxu0 %vm771_vm6, %v738_v48  ;;  %v741_v4 = vsel %vm732_vm7, %v708_v8, %v621_v46  ;;  %v709_v63 = vsel %vm231_vm0, %v7367_v7, %v495_v14  ;;  %v7398_v14 = vld [vmem:[#allocation2 + $0x90] sm:$0xff]  ;;  %v7420_v46 = vld [vmem:[#allocation2 + $0xa8] sm:$0xff] }
  0xb8   : > { %v499_v32 = vpop.permute.xlu1 %498  ;;  %v497_v10 = vpop.permute.xlu0 %496  ;;  %6321 = vmatprep.mubr.msk.f32.mxu0 %vm771_vm6, %v739_v6  ;;  %v742_v28 = vsel %vm732_vm7, %v709_v63, %v623_v19  ;;  %v7418_v19 = vld [vmem:[#allocation2 + $0xb0] sm:$0xff] }
  0xb9   : > { %v711_v41 = vsel %vm231_vm0, %v7383_v40, %v499_v32  ;;  %v7438_v32 = vld [vmem:[#allocation2 + $0xc8] sm:$0xff] }
  0xba   : > { %1370 = vrot.lane.b32.xlu1 %v7080_v12, %s6872_s22  ;;  %1368 = vrot.lane.b32.xlu0 %v7082_v13, %s6872_s22  ;;  %v710_v12 = vsel %vm231_vm0, %v7376_v36, %v497_v10  ;;  %v7440_v10 = vld [vmem:[#allocation2 + $0xc0] sm:$0xff] }
  0xbb   : > { %6322 = vmatmul.mubr.msk.f32.gmra.mrb[6].mxu0 %vm771_vm6, %v740_v53 }
  0xbc   : > { %v627_v26 = vpop.permute.xlu1 %626  ;;  %v625_v25 = vpop.permute.xlu0 %624  ;;  %6324 = vmatprep.mubr.msk.f32.mxu0 %vm771_vm6, %v741_v4 }
  0xbd   : > { %v743_v13 = vsel %vm732_vm7, %v710_v12, %v625_v25  ;;  %v7460_v25 = vld [vmem:[#allocation2 + $0xd8] sm:$0xff] }
  0xbe   : > { %1246 = vrot.lane.b32.xlu1 %v7090_v15, %s6871_s21  ;;  %1244 = vrot.lane.b32.xlu0 %v7092_v16, %s6871_s21  ;;  %v744_v15 = vsel %vm732_vm7, %v711_v41, %v627_v26  ;;  %v7458_v26 = vld [vmem:[#allocation2 + $0xe0] sm:$0xff] }
  0xbf   : > { %6325 = vmatmul.mubr.msk.f32.gmra.mrb[8].mxu0 %vm771_vm6, %v742_v28 }
  0xc0   : > { %v503_v35 = vpop.permute.xlu1 %502  ;;  %v501_v2 = vpop.permute.xlu0 %500  ;;  %6327 = vmatprep.mubr.msk.f32.mxu0 %vm771_vm6, %v743_v13 }
  0xc1   : > { %v713_v16 = vsel %vm231_vm0, %v7396_v44, %v503_v35  ;;  %v712_v24 = vsel %vm231_vm0, %v7398_v14, %v501_v2  ;;  %v7478_v35 = vld [vmem:[#allocation2 + $0xf8] sm:$0xff]  ;;  %v7480_v2 = vld [vmem:[#allocation2 + $0xf0] sm:$0xff] }
  0xc2   : > { %1374 = vrot.lane.b32.xlu1 %v7098_v17, %s6872_s22  ;;  %1372 = vrot.lane.b32.xlu0 %v7100_v18, %s6872_s22 }
  0xc3   : > { %6328 = vmatmul.mubr.msk.f32.gmra.mrb[10].mxu0 %vm771_vm6, %v744_v15 }
  0xc4   : > { %v631_v1 = vpop.permute.xlu1 %630  ;;  %v629_v34 = vpop.permute.xlu0 %628 }
  0xc5   : > { %v746_v45 = vsel %vm732_vm7, %v713_v16, %v631_v1  ;;  %v745_v0 = vsel %vm732_vm7, %v712_v24, %v629_v34  ;;  %v7498_v1 = vld [vmem:[#allocation2 + $0x110] sm:$0xff]  ;;  %v7500_v34 = vld [vmem:[#allocation2 + $0x108] sm:$0xff] }
  0xc6   : > { %1250 = vrot.lane.b32.xlu1 %v7107_v20, %s6871_s21  ;;  %1248 = vrot.lane.b32.xlu0 %v7109_v21, %s6871_s21 }
  0xc7   : > { %6330 = vmatprep.mubr.msk.f32.mxu0 %vm771_vm6, %v745_v0 }
  0xc8   : > { %6331 = vmatmul.mubr.msk.f32.gmra.mrb[12].mxu0 %vm771_vm6, %v746_v45  ;;  %v507_v17 = vpop.permute.xlu1 %506  ;;  %v505_v18 = vpop.permute.xlu0 %504 }
  0xc9   : > { %v715_v20 = vsel %vm231_vm0, %v7418_v19, %v507_v17  ;;  %v714_v21 = vsel %vm231_vm0, %v7420_v46, %v505_v18 }
  0xca   : > { %1378 = vrot.lane.b32.xlu1 %v7115_v22, %s6872_s22  ;;  %1376 = vrot.lane.b32.xlu0 %v7117_v23, %s6872_s22 }
  0xcc   : > { %v635_v38 = vpop.permute.xlu1 %634  ;;  %v633_v48 = vpop.permute.xlu0 %632 }
  0xcd   : > { %v748_v49 = vsel %vm732_vm7, %v715_v20, %v635_v38  ;;  %v747_v6 = vsel %vm732_vm7, %v714_v21, %v633_v48  ;;  %v7518_v20 = vld [vmem:[#allocation2 + $0x128] sm:$0xff]  ;;  %v7520_v21 = vld [vmem:[#allocation2 + $0x120] sm:$0xff]  ;;  %v10020_v38 = vld [vmem:[#allocation4_spill] sm:$0xff] }
  0xce   : > { %1254 = vrot.lane.b32.xlu1 %v7124_v29, %s6871_s21  ;;  %1252 = vrot.lane.b32.xlu0 %v7126_v30, %s6871_s21 }
  0xcf   : > { %6333 = vmatprep.mubr.msk.f32.mxu0 %vm771_vm6, %v747_v6 }
  0xd0   : > { %6334 = vmatmul.mubr.msk.f32.gmra.mrb[14].mxu0 %vm771_vm6, %v748_v49  ;;  %v511_v22 = vpop.permute.xlu1 %510  ;;  %v509_v23 = vpop.permute.xlu0 %508 }
  0xd1   : > { %v717_v29 = vsel %vm231_vm0, %v7438_v32, %v511_v22  ;;  %v716_v30 = vsel %vm231_vm0, %v7440_v10, %v509_v23  ;;  %v10021_v23 = vld [vmem:[#allocation5_spill] sm:$0xff] }
  0xd2   : > { %1382 = vrot.lane.b32.xlu1 %v7132_v31, %s6872_s22  ;;  %1380 = vrot.lane.b32.xlu0 %v7134_v33, %s6872_s22 }
  0xd4   : > { %v639_v11 = vpop.permute.xlu1 %638  ;;  %v637_v53 = vpop.permute.xlu0 %636 }
  0xd5   : > { %v750_v8 = vsel %vm732_vm7, %v717_v29, %v639_v11  ;;  %v749_v4 = vsel %vm732_vm7, %v716_v30, %v637_v53  ;;  %v7538_v11 = vld [vmem:[#allocation2 + $0x140] sm:$0xff]  ;;  %v7540_v53 = vld [vmem:[#allocation2 + $0x138] sm:$0xff] }
  0xd6   : > { %1258 = vrot.lane.b32.xlu1 %v7141_v37, %s6871_s21  ;;  %1256 = vrot.lane.b32.xlu0 %v7143_v39, %s6871_s21 }
  0xd7   : > { %6336 = vmatprep.mubr.msk.f32.mxu0 %vm771_vm6, %v749_v4  ;;  %v10024_v4 = vld [vmem:[#allocation8_spill] sm:$0xff] }
  0xd8   : > { %6337 = vmatmul.mubr.msk.f32.gmra.mrb[16].mxu0 %vm771_vm6, %v750_v8  ;;  %v515_v31 = vpop.permute.xlu1 %514  ;;  %v513_v33 = vpop.permute.xlu0 %512  ;;  %v10023_v8 = vld [vmem:[#allocation7_spill] sm:$0xff] }
  0xd9   : > { %v719_v37 = vsel %vm231_vm0, %v7458_v26, %v515_v31  ;;  %v718_v39 = vsel %vm231_vm0, %v7460_v25, %v513_v33 }
  0xda   : > { %1386 = vrot.lane.b32.xlu1 %v7149_v42, %s6872_s22  ;;  %1384 = vrot.lane.b32.xlu0 %v7151_v43, %s6872_s22 }
  0xdc   : > { %v643_v63 = vpop.permute.xlu1 %642  ;;  %v641_v28 = vpop.permute.xlu0 %640 }
  0xdd   : > { %v752_v12 = vsel %vm732_vm7, %v719_v37, %v643_v63  ;;  %v751_v13 = vsel %vm732_vm7, %v718_v39, %v641_v28 }
  0xde   : > { %1262 = vrot.lane.b32.xlu1 %v7158_v47, %s6871_s21  ;;  %1260 = vrot.lane.b32.xlu0 %v7160_v50, %s6871_s21 }
  0xdf   : > { %6339 = vmatprep.mubr.msk.f32.mxu0 %vm771_vm6, %v751_v13  ;;  %v10026_v13 = vld [vmem:[#allocation10_spill] sm:$0xff] }
  0xe0   : > { %6340 = vmatmul.mubr.msk.f32.gmra.mrb[18].mxu0 %vm771_vm6, %v752_v12  ;;  %v519_v42 = vpop.permute.xlu1 %518  ;;  %v517_v43 = vpop.permute.xlu0 %516  ;;  %v10025_v12 = vld [vmem:[#allocation9_spill] sm:$0xff] }
  0xe1   : > { %v721_v47 = vsel %vm231_vm0, %v7478_v35, %v519_v42  ;;  %v720_v50 = vsel %vm231_vm0, %v7480_v2, %v517_v43 }
  0xe2   : > { %1390 = vrot.lane.b32.xlu1 %v7166_v51, %s6872_s22  ;;  %1388 = vrot.lane.b32.xlu0 %v7168_v52, %s6872_s22 }
  0xe4   : > { %v647_v41 = vpop.permute.xlu1 %646  ;;  %v645_v15 = vpop.permute.xlu0 %644 }
  0xe5   : > { %v754_v16 = vsel %vm732_vm7, %v721_v47, %v647_v41  ;;  %v753_v24 = vsel %vm732_vm7, %v720_v50, %v645_v15  ;;  %v7558_v47 = vld [vmem:[#allocation2 + $0x158] sm:$0xff]  ;;  %v7560_v50 = vld [vmem:[#allocation2 + $0x150] sm:$0xff]  ;;  %v279_v41 = vld [vmem:[#allocation2 + $0x182] sm:$0x1] }
  0xe6   : > { %1266 = vrot.lane.b32.xlu1 %v7175_v54, %s6871_s21  ;;  %1264 = vrot.lane.b32.xlu0 %v7177_v55, %s6871_s21  ;;  %v10027_v15 = vld [vmem:[#allocation11_spill] sm:$0xff]  ;;  %296 = vst.msk [vmem:[#allocation2 + $0x180] sm:$0x1] %vm280_vm1, %v279_v41 }
  0xe7   : > { %6342 = vmatprep.mubr.msk.f32.mxu0 %vm771_vm6, %v753_v24 }
  0xe8   : > { %6343 = vmatmul.mubr.msk.f32.gmra.mrb[20].mxu0 %vm771_vm6, %v754_v16  ;;  %v523_v51 = vpop.permute.xlu1 %522  ;;  %v521_v52 = vpop.permute.xlu0 %520  ;;  %v10028_v16 = vld [vmem:[#allocation12_spill] sm:$0xff] }
  0xe9   : > { %v723_v54 = vsel %vm231_vm0, %v7498_v1, %v523_v51  ;;  %v722_v55 = vsel %vm231_vm0, %v7500_v34, %v521_v52 }
  0xea   : > { %1394 = vrot.lane.b32.xlu1 %v7183_v56, %s6872_s22  ;;  %1392 = vrot.lane.b32.xlu0 %v7185_v57, %s6872_s22 }
  0xec   : > { %v651_v45 = vpop.permute.xlu1 %650  ;;  %v649_v0 = vpop.permute.xlu0 %648 }
  0xed   : > { %v756_v17 = vsel %vm732_vm7, %v723_v54, %v651_v45  ;;  %v755_v18 = vsel %vm732_vm7, %v722_v55, %v649_v0  ;;  %v10029_v0 = vld [vmem:[#allocation15_spill] sm:$0xff] }
  0xee   : > { %1270 = vrot.lane.b32.xlu1 %v7192_v59, %s6871_s21  ;;  %1268 = vrot.lane.b32.xlu0 %v7194_v60, %s6871_s21 }
  0xef   : > { %6345 = vmatprep.mubr.msk.f32.mxu0 %vm771_vm6, %v755_v18 }
  0xf0   : > { %6346 = vmatmul.mubr.msk.f32.gmra.mrb[22].mxu0 %vm771_vm6, %v756_v17  ;;  %v527_v56 = vpop.permute.xlu1 %526  ;;  %v525_v57 = vpop.permute.xlu0 %524  ;;  %v10030_v17 = vld [vmem:[#allocation16_spill] sm:$0xff] }
  0xf1   : > { %v725_v59 = vsel %vm231_vm0, %v7518_v20, %v527_v56  ;;  %v724_v60 = vsel %vm231_vm0, %v7520_v21, %v525_v57  ;;  %v10031_v57 = vld [vmem:[#allocation17_spill] sm:$0xff] }
  0xf2   : > { %1398 = vrot.lane.b32.xlu1 %v7200_v61, %s6872_s22  ;;  %1396 = vrot.lane.b32.xlu0 %v10020_v38, %s6872_s22  ;;  %v10022_v61 = vld [vmem:[#allocation6_spill] sm:$0xff] }
  0xf3   : > { %v10032_v38 = vld [vmem:[#allocation18_spill] sm:$0xff] }
  0xf4   : > { %v655_v48 = vpop.permute.xlu1 %654  ;;  %v653_v49 = vpop.permute.xlu0 %652 }
  0xf5   : > { %v758_v6 = vsel %vm732_vm7, %v725_v59, %v655_v48  ;;  %v757_v22 = vsel %vm732_vm7, %v724_v60, %v653_v49  ;;  %v10033_v59 = vld [vmem:[#allocation13_spill] sm:$0xff]  ;;  %v10034_v48 = vld [vmem:[#allocation14_spill] sm:$0xff] }
  0xf6   : > { %1274 = vrot.lane.b32.xlu1 %v10021_v23, %s6871_s21  ;;  %1272 = vrot.lane.b32.xlu0 %v10022_v61, %s6871_s21 }
  0xf7   : > { %6348 = vmatprep.mubr.msk.f32.mxu0 %vm771_vm6, %v757_v22 }
  0xf8   : > { %6349 = vmatmul.mubr.msk.f32.gmra.mrb[24].mxu0 %vm771_vm6, %v758_v6  ;;  %v531_v29 = vpop.permute.xlu1 %530  ;;  %v529_v30 = vpop.permute.xlu0 %528 }
  0xf9   : > { %v727_v31 = vsel %vm231_vm0, %v7538_v11, %v531_v29  ;;  %v726_v33 = vsel %vm231_vm0, %v7540_v53, %v529_v30  ;;  %v10035_v29 = vld [vmem:[#allocation19_spill] sm:$0xff]  ;;  %v10036_v30 = vld [vmem:[#allocation20_spill] sm:$0xff] }
  0xfa   : > { %1402 = vrot.lane.b32.xlu1 %v10023_v8, %s6872_s22  ;;  %1400 = vrot.lane.b32.xlu0 %v10024_v4, %s6872_s22  ;;  %v340_v8 = vld [vmem:[#allocation2 + $0x178] sm:$0x3] }
  0xfb   : > { %344 = vst.msk [vmem:[#allocation2 + $0x1a8] sm:$0x3] %vm335_vm2, %v340_v8 }
  0xfc   : > { %v659_v37 = vpop.permute.xlu1 %658  ;;  %v657_v39 = vpop.permute.xlu0 %656 }
  0xfd   : > { %v760_v63 = vsel %vm732_vm7, %v727_v31, %v659_v37  ;;  %v759_v28 = vsel %vm732_vm7, %v726_v33, %v657_v39  ;;  %v5961_v33 = vld [vmem:[%s9965_s1 + $0x20] sm:$0xff]  ;;  %v5962_v37 = vld [vmem:[%s9965_s1 + $0x28] sm:$0xf]  ;;  %v10037_v39 = vld [vmem:[#allocation21_spill] sm:$0xff] }
  0xfe   : > { %1278 = vrot.lane.b32.xlu1 %v10025_v12, %s6871_s21  ;;  %1276 = vrot.lane.b32.xlu0 %v10026_v13, %s6871_s21  ;;  %v7606_v12 = vld [vmem:[#allocation2 + $0x189] sm:$0xff]  ;;  %v7608_v13 = vld [vmem:[#allocation2 + $0x181] sm:$0xff] }
  0xff   : > { %6351 = vmatprep.mubr.msk.f32.mxu0 %vm771_vm6, %v759_v28  ;;  %v6632_v28 = vpack.c.bf16 %v5962_v37, %v5961_v33 }
 0x100   : > { %6352 = vmatmul.mubr.msk.f32.gmra.mrb[26].mxu0 %vm771_vm6, %v760_v63  ;;  %v535_v42 = vpop.permute.xlu1 %534  ;;  %v533_v43 = vpop.permute.xlu0 %532  ;;  %v10038_v63 = vld [vmem:[#allocation22_spill] sm:$0xff] }
 0x101   : > { %v729_v24 = vsel %vm231_vm0, %v7558_v47, %v535_v42  ;;  %v728_v51 = vsel %vm231_vm0, %v7560_v50, %v533_v43  ;;  %6634 = vmatprep.subr.msk.bf16.mxu0 %vm7057_vm5, %v6632_v28 }
 0x102   : > { %1406 = vrot.lane.b32.xlu1 %v10027_v15, %s6872_s22  ;;  %1404 = vrot.lane.b32.xlu0 %v10028_v16, %s6872_s22 }
 0x104   : > { %v663_v52 = vpop.permute.xlu1 %662  ;;  %v661_v54 = vpop.permute.xlu0 %660 }
 0x105   : > { %v762_v55 = vsel %vm732_vm7, %v729_v24, %v663_v52  ;;  %v761_v45 = vsel %vm732_vm7, %v728_v51, %v661_v54  ;;  %v7628_v54 = vld [vmem:[#allocation2 + $0x38] sm:$0xff] }
 0x106   : > { %1282 = vrot.lane.b32.xlu1 %v10029_v0, %s6871_s21  ;;  %1280 = vrot.lane.b32.xlu0 %v10030_v17, %s6871_s21  ;;  %v1910_v0 = vld [vmem:[#allocation2 + $0x31] sm:$0xff] }
 0x107   : > { %6354 = vmatprep.mubr.msk.f32.mxu0 %vm771_vm6, %v761_v45  ;;  %v1911_v45 = vld [vmem:[#allocation2 + $0x39] sm:$0xff] }
 0x108   : > { %6355 = vmatmul.mubr.msk.f32.gmra.mrb[28].mxu0 %vm771_vm6, %v762_v55  ;;  %v539_v18 = vpop.permute.xlu1 %538  ;;  %v537_v56 = vpop.permute.xlu0 %536  ;;  %v7630_v55 = vld [vmem:[#allocation2 + $0x30] sm:$0xff] }
 0x109   : > { %v731_v60 = vsel %vm231_vm0, %v10033_v59, %v539_v18  ;;  %v730_v49 = vsel %vm231_vm0, %v10034_v48, %v537_v56 }
 0x10a   : > { %1410 = vrot.lane.b32.xlu1 %v10031_v57, %s6872_s22  ;;  %1408 = vrot.lane.b32.xlu0 %v10032_v38, %s6872_s22 }
 0x10c   : > { %v667_v6 = vpop.permute.xlu1 %666  ;;  %v665_v22 = vpop.permute.xlu0 %664 }
 0x10d   : > { %v764_v23 = vsel %vm732_vm7, %v731_v60, %v667_v6  ;;  %v763_v61 = vsel %vm732_vm7, %v730_v49, %v665_v22  ;;  %v1943_v49 = vld [vmem:[#allocation2 + $0x3a] sm:$0xff]  ;;  %v1942_v6 = vld [vmem:[#allocation2 + $0x32] sm:$0xff] }
 0x10e   : > { %1286 = vrot.lane.b32.xlu1 %v10035_v29, %s6871_s21  ;;  %1284 = vrot.lane.b32.xlu0 %v10036_v30, %s6871_s21  ;;  %v1912_v29 = vld [vmem:[#allocation2 + $0x49] sm:$0xff] }
 0x10f   : > { %6357 = vmatprep.mubr.msk.f32.mxu0 %vm771_vm6, %v763_v61  ;;  %v1913_v61 = vld [vmem:[#allocation2 + $0x51] sm:$0xff] }
 0x110   : > { %6358 = vmatmul.mubr.msk.f32.gmra.mrb[30].mxu0 %vm771_vm6, %v764_v23  ;;  %v1231_v4 = vpop.permute.xlu1 %1230  ;;  %v1229_v31 = vpop.permute.xlu0 %1228 }
 0x111   : > { %v1453_v42 = vsel %vm231_vm0, %v7319_v62, %v1231_v4  ;;  %v1452_v43 = vsel %vm231_vm0, %v7315_v27, %v1229_v31  ;;  %v7623_v62 = vld [vmem:[#allocation2 + $0x18a] sm:$0xff]  ;;  %v7625_v27 = vld [vmem:[#allocation2 + $0x182] sm:$0xff] }
 0x112   : > { %1414 = vrot.lane.b32.xlu1 %v10037_v39, %s6872_s22  ;;  %1412 = vrot.lane.b32.xlu0 %v10038_v63, %s6872_s22  ;;  %v1945_v39 = vld [vmem:[#allocation2 + $0x52] sm:$0xff]  ;;  %v1944_v63 = vld [vmem:[#allocation2 + $0x4a] sm:$0xff] }
 0x114   : > { %v1359_v41 = vpop.permute.xlu1 %1358  ;;  %v1357_v15 = vpop.permute.xlu0 %1356 }
 0x115   : > { %v1485_v16 = vsel %vm732_vm7, %v1453_v42, %v1359_v41  ;;  %v1484_v24 = vsel %vm732_vm7, %v1452_v43, %v1357_v15  ;;  %v1914_v42 = vld [vmem:[#allocation2 + $0x61] sm:$0xff] }
 0x116   : > { %1290 = vrot.lane.b32.xlu1 %v7606_v12, %s6871_s21  ;;  %1288 = vrot.lane.b32.xlu0 %v7608_v13, %s6871_s21 }
 0x117   : > { %6364 = vmatprep.mubr.msk.f32.mxu0 %vm771_vm6, %v1484_v24 }
 0x118   : > { %6365 = vmatmul.mubr.msk.f32.vlgmr.msra.gmra.mrb[0].mxu0 %vm771_vm6, %v1485_v16  ;;  %v1235_v51 = vpop.permute.xlu1 %1234  ;;  %v1233_v52 = vpop.permute.xlu0 %1232 }
 0x119   : > { %6637 = vmatpush3.bf16.msk.msra.mxu0 %vm7057_vm5, %v6632_v28  ;;  %v1455_v17 = vsel %vm231_vm0, %v7628_v54, %v1235_v51  ;;  %v1454_v18 = vsel %vm231_vm0, %v7630_v55, %v1233_v52  ;;  %v1947_v52 = vld [vmem:[#allocation2 + $0x6a] sm:$0xff] }
 0x11a   : > { %1418 = vrot.lane.b32.xlu1 %v7623_v62, %s6872_s22  ;;  %1416 = vrot.lane.b32.xlu0 %v7625_v27, %s6872_s22 }
 0x11c   : > { %v1363_v56 = vpop.permute.xlu1 %1362  ;;  %v1361_v57 = vpop.permute.xlu0 %1360 }
 0x11d   : > { %v1487_v38 = vsel %vm732_vm7, %v1455_v17, %v1363_v56  ;;  %v1486_v60 = vsel %vm732_vm7, %v1454_v18, %v1361_v57  ;;  %v1916_v17 = vld [vmem:[#allocation2 + $0x79] sm:$0xff] }
 0x11e   : > { %2008 = vrot.lane.b32.xlu1 %v1911_v45, %s6871_s21  ;;  %2006 = vrot.lane.b32.xlu0 %v1910_v0, %s6871_s21  ;;  %v1946_v45 = vld [vmem:[#allocation2 + $0x62] sm:$0xff] }
 0x11f   : > { %6367 = vmatprep.mubr.msk.f32.mxu0 %vm771_vm6, %v1486_v60 }
 0x120   : > { %6368 = vmatmul.mubr.msk.f32.gmra.mrb[2].mxu0 %vm771_vm6, %v1487_v38  ;;  %v1239_v22 = vpop.permute.xlu1 %1238  ;;  %v1237_v23 = vpop.permute.xlu0 %1236 }
 0x121   : > { %v1457_v30 = vsel %vm231_vm0, %v7349_v58, %v1239_v22  ;;  %v1456_v8 = vsel %vm231_vm0, %v7343_v9, %v1237_v23  ;;  %v1915_v9 = vld [vmem:[#allocation2 + $0x69] sm:$0xff]  ;;  %v1948_v22 = vld [vmem:[#allocation2 + $0x7a] sm:$0xff] }
 0x122   : > { %2136 = vrot.lane.b32.xlu1 %v1943_v49, %s6872_s22  ;;  %2134 = vrot.lane.b32.xlu0 %v1942_v6, %s6872_s22  ;;  %v1949_v6 = vld [vmem:[#allocation2 + $0x82] sm:$0xff] }
 0x124   : > { %v1367_v4 = vpop.permute.xlu1 %1366  ;;  %v1365_v31 = vpop.permute.xlu0 %1364 }
 0x125   : > { %v1489_v33 = vsel %vm732_vm7, %v1457_v30, %v1367_v4  ;;  %v1488_v37 = vsel %vm732_vm7, %v1456_v8, %v1365_v31 }
 0x126   : > { %2012 = vrot.lane.b32.xlu1 %v1913_v61, %s6871_s21  ;;  %2010 = vrot.lane.b32.xlu0 %v1912_v29, %s6871_s21  ;;  %v1918_v61 = vld [vmem:[#allocation2 + $0x91] sm:$0xff] }
 0x127   : > { %6370 = vmatprep.mubr.msk.f32.mxu0 %vm771_vm6, %v1488_v37  ;;  %v1951_v37 = vld [vmem:[#allocation2 + $0x9a] sm:$0xff] }
 0x128   : > { %6371 = vmatmul.mubr.msk.f32.gmra.mrb[4].mxu0 %vm771_vm6, %v1489_v33  ;;  %v1243_v58 = vpop.permute.xlu1 %1242  ;;  %v1241_v28 = vpop.permute.xlu0 %1240 }
 0x129   : > { %v1459_v43 = vsel %vm231_vm0, %v7367_v7, %v1243_v58  ;;  %v1458_v41 = vsel %vm231_vm0, %v7359_v5, %v1241_v28  ;;  %v1917_v5 = vld [vmem:[#allocation2 + $0x81] sm:$0xff]  ;;  %v1920_v58 = vld [vmem:[#allocation2 + $0xa9] sm:$0xff] }
 0x12a   : > { %2140 = vrot.lane.b32.xlu1 %v1945_v39, %s6872_s22  ;;  %2138 = vrot.lane.b32.xlu0 %v1944_v63, %s6872_s22  ;;  %v1950_v39 = vld [vmem:[#allocation2 + $0x92] sm:$0xff] }
 0x12c   : > { %v1371_v15 = vpop.permute.xlu1 %1370  ;;  %v1369_v16 = vpop.permute.xlu0 %1368 }
 0x12d   : > { %v1491_v24 = vsel %vm732_vm7, %v1459_v43, %v1371_v15  ;;  %v1490_v51 = vsel %vm732_vm7, %v1458_v41, %v1369_v16  ;;  %v1953_v16 = vld [vmem:[#allocation2 + $0xb2] sm:$0xff] }
 0x12e   : > { %2016 = vrot.lane.b32.xlu1 %v1915_v9, %s6871_s21  ;;  %2014 = vrot.lane.b32.xlu0 %v1914_v42, %s6871_s21 }
 0x12f   : > { %6373 = vmatprep.mubr.msk.f32.mxu0 %vm771_vm6, %v1490_v51 }
 0x130   : > { %6374 = vmatmul.mubr.msk.f32.gmra.mrb[6].mxu0 %vm771_vm6, %v1491_v24  ;;  %v1247_v7 = vpop.permute.xlu1 %1246  ;;  %v1245_v0 = vpop.permute.xlu0 %1244  ;;  %v1952_v24 = vld [vmem:[#allocation2 + $0xaa] sm:$0xff] }
 0x131   : > { %v1461_v18 = vsel %vm231_vm0, %v7383_v40, %v1247_v7  ;;  %v1460_v56 = vsel %vm231_vm0, %v7376_v36, %v1245_v0  ;;  %v1919_v36 = vld [vmem:[#allocation2 + $0x99] sm:$0xff] }
 0x132   : > { %2144 = vrot.lane.b32.xlu1 %v1947_v52, %s6872_s22  ;;  %2142 = vrot.lane.b32.xlu0 %v1946_v45, %s6872_s22  ;;  %v1922_v52 = vld [vmem:[#allocation2 + $0xc1] sm:$0xff] }
 0x134   : > { %v1375_v57 = vpop.permute.xlu1 %1374  ;;  %v1373_v38 = vpop.permute.xlu0 %1372 }
 0x135   : > { %v1493_v60 = vsel %vm732_vm7, %v1461_v18, %v1375_v57  ;;  %v1492_v49 = vsel %vm732_vm7, %v1460_v56, %v1373_v38  ;;  %v1955_v56 = vld [vmem:[#allocation2 + $0xca] sm:$0xff]  ;;  %v1954_v57 = vld [vmem:[#allocation2 + $0xc2] sm:$0xff] }
 0x136   : > { %2020 = vrot.lane.b32.xlu1 %v1917_v5, %s6871_s21  ;;  %2018 = vrot.lane.b32.xlu0 %v1916_v17, %s6871_s21 }
 0x137   : > { %6376 = vmatprep.mubr.msk.f32.mxu0 %vm771_vm6, %v1492_v49 }
 0x138   : > { %6377 = vmatmul.mubr.msk.f32.gmra.mrb[8].mxu0 %vm771_vm6, %v1493_v60  ;;  %v1251_v40 = vpop.permute.xlu1 %1250  ;;  %v1249_v23 = vpop.permute.xlu0 %1248  ;;  %v1924_v60 = vld [vmem:[#allocation2 + $0xd9] sm:$0xff] }
 0x139   : > { %v1463_v29 = vsel %vm231_vm0, %v7396_v44, %v1251_v40  ;;  %v1462_v30 = vsel %vm231_vm0, %v7398_v14, %v1249_v23  ;;  %v1921_v14 = vld [vmem:[#allocation2 + $0xb1] sm:$0xff] }
 0x13a   : > { %2148 = vrot.lane.b32.xlu1 %v1949_v6, %s6872_s22  ;;  %2146 = vrot.lane.b32.xlu0 %v1948_v22, %s6872_s22 }
 0x13c   : > { %v1379_v8 = vpop.permute.xlu1 %1378  ;;  %v1377_v4 = vpop.permute.xlu0 %1376 }
 0x13d   : > { %v1495_v31 = vsel %vm732_vm7, %v1463_v29, %v1379_v8  ;;  %v1494_v33 = vsel %vm732_vm7, %v1462_v30, %v1377_v4  ;;  %v1956_v29 = vld [vmem:[#allocation2 + $0xda] sm:$0xff]  ;;  %v1926_v8 = vld [vmem:[#allocation2 + $0xf1] sm:$0xff] }
 0x13e   : > { %2024 = vrot.lane.b32.xlu1 %v1919_v36, %s6871_s21  ;;  %2022 = vrot.lane.b32.xlu0 %v1918_v61, %s6871_s21  ;;  %v1957_v61 = vld [vmem:[#allocation2 + $0xe2] sm:$0xff] }
 0x13f   : > { %6379 = vmatprep.mubr.msk.f32.mxu0 %vm771_vm6, %v1494_v33 }
 0x140   : > { %6380 = vmatmul.mubr.msk.f32.gmra.mrb[10].mxu0 %vm771_vm6, %v1495_v31  ;;  %v1255_v44 = vpop.permute.xlu1 %1254  ;;  %v1253_v63 = vpop.permute.xlu0 %1252 }
 0x141   : > { %v1465_v28 = vsel %vm231_vm0, %v7418_v19, %v1255_v44  ;;  %v1464_v9 = vsel %vm231_vm0, %v7420_v46, %v1253_v63  ;;  %v1923_v46 = vld [vmem:[#allocation2 + $0xc9] sm:$0xff]  ;;  %v1959_v63 = vld [vmem:[#allocation2 + $0xfa] sm:$0xff] }
 0x142   : > { %2152 = vrot.lane.b32.xlu1 %v1951_v37, %s6872_s22  ;;  %2150 = vrot.lane.b32.xlu0 %v1950_v39, %s6872_s22 }
 0x144   : > { %v1383_v42 = vpop.permute.xlu1 %1382  ;;  %v1381_v43 = vpop.permute.xlu0 %1380 }
 0x145   : > { %v1497_v41 = vsel %vm732_vm7, %v1465_v28, %v1383_v42  ;;  %v1496_v15 = vsel %vm732_vm7, %v1464_v9, %v1381_v43  ;;  %v1928_v28 = vld [vmem:[#allocation2 + $0x109] sm:$0xff] }
 0x146   : > { %2028 = vrot.lane.b32.xlu1 %v1921_v14, %s6871_s21  ;;  %2026 = vrot.lane.b32.xlu0 %v1920_v58, %s6871_s21  ;;  %v1958_v14 = vld [vmem:[#allocation2 + $0xf2] sm:$0xff] }
 0x147   : > { %6382 = vmatprep.mubr.msk.f32.mxu0 %vm771_vm6, %v1496_v15 }
 0x148   : > { %6383 = vmatmul.mubr.msk.f32.gmra.mrb[12].mxu0 %vm771_vm6, %v1497_v41  ;;  %v1259_v19 = vpop.permute.xlu1 %1258  ;;  %v1257_v51 = vpop.permute.xlu0 %1256 }
 0x149   : > { %v1467_v45 = vsel %vm231_vm0, %v7438_v32, %v1259_v19  ;;  %v1466_v7 = vsel %vm231_vm0, %v7440_v10, %v1257_v51  ;;  %v1925_v10 = vld [vmem:[#allocation2 + $0xe1] sm:$0xff]  ;;  %v1960_v19 = vld [vmem:[#allocation2 + $0x10a] sm:$0xff] }
 0x14a   : > { %2156 = vrot.lane.b32.xlu1 %v1953_v16, %s6872_s22  ;;  %2154 = vrot.lane.b32.xlu0 %v1952_v24, %s6872_s22  ;;  %v1961_v24 = vld [vmem:[#allocation2 + $0x112] sm:$0xff] }
 0x14c   : > { %v1387_v0 = vpop.permute.xlu1 %1386  ;;  %v1385_v5 = vpop.permute.xlu0 %1384 }
 0x14d   : > { %v1499_v17 = vsel %vm732_vm7, %v1467_v45, %v1387_v0  ;;  %v1498_v18 = vsel %vm732_vm7, %v1466_v7, %v1385_v5 }
 0x14e   : > { %2032 = vrot.lane.b32.xlu1 %v1923_v46, %s6871_s21  ;;  %2030 = vrot.lane.b32.xlu0 %v1922_v52, %s6871_s21  ;;  %v1930_v46 = vld [vmem:[#allocation2 + $0x121] sm:$0xff] }
 0x14f   : > { %6385 = vmatprep.mubr.msk.f32.mxu0 %vm771_vm6, %v1498_v18  ;;  %v1963_v18 = vld [vmem:[#allocation2 + $0x12a] sm:$0xff] }
 0x150   : > { %6386 = vmatmul.mubr.msk.f32.gmra.mrb[14].mxu0 %vm771_vm6, %v1499_v17  ;;  %v1263_v32 = vpop.permute.xlu1 %1262  ;;  %v1261_v38 = vpop.permute.xlu0 %1260 }
 0x151   : > { %v1469_v49 = vsel %vm231_vm0, %v7458_v26, %v1263_v32  ;;  %v1468_v6 = vsel %vm231_vm0, %v7460_v25, %v1261_v38  ;;  %v1927_v25 = vld [vmem:[#allocation2 + $0xf9] sm:$0xff] }
 0x152   : > { %2160 = vrot.lane.b32.xlu1 %v1955_v56, %s6872_s22  ;;  %2158 = vrot.lane.b32.xlu0 %v1954_v57, %s6872_s22  ;;  %v1962_v56 = vld [vmem:[#allocation2 + $0x122] sm:$0xff]  ;;  %v1932_v32 = vld [vmem:[#allocation2 + $0x139] sm:$0xff] }
 0x154   : > { %v1391_v22 = vpop.permute.xlu1 %1390  ;;  %v1389_v40 = vpop.permute.xlu0 %1388 }
 0x155   : > { %v1501_v23 = vsel %vm732_vm7, %v1469_v49, %v1391_v22  ;;  %v1500_v36 = vsel %vm732_vm7, %v1468_v6, %v1389_v40  ;;  %v1965_v40 = vld [vmem:[#allocation2 + $0x142] sm:$0xff] }
 0x156   : > { %2036 = vrot.lane.b32.xlu1 %v1925_v10, %s6871_s21  ;;  %2034 = vrot.lane.b32.xlu0 %v1924_v60, %s6871_s21 }
 0x157   : > { %6388 = vmatprep.mubr.msk.f32.mxu0 %vm771_vm6, %v1500_v36 }
 0x158   : > { %6389 = vmatmul.mubr.msk.f32.gmra.mrb[16].mxu0 %vm771_vm6, %v1501_v23  ;;  %v1267_v26 = vpop.permute.xlu1 %1266  ;;  %v1265_v30 = vpop.permute.xlu0 %1264  ;;  %v1964_v23 = vld [vmem:[#allocation2 + $0x13a] sm:$0xff] }
 0x159   : > { %v1471_v4 = vsel %vm231_vm0, %v7478_v35, %v1267_v26  ;;  %v1470_v31 = vsel %vm231_vm0, %v7480_v2, %v1265_v30  ;;  %v1929_v2 = vld [vmem:[#allocation2 + $0x111] sm:$0xff] }
 0x15a   : > { %2164 = vrot.lane.b32.xlu1 %v1957_v61, %s6872_s22  ;;  %2162 = vrot.lane.b32.xlu0 %v1956_v29, %s6872_s22  ;;  %v1934_v61 = vld [vmem:[#allocation2 + $0x151] sm:$0xff] }
 0x15c   : > { %v1395_v33 = vpop.permute.xlu1 %1394  ;;  %v1393_v37 = vpop.permute.xlu0 %1392 }
 0x15d   : > { %v1503_v39 = vsel %vm732_vm7, %v1471_v4, %v1395_v33  ;;  %v1502_v44 = vsel %vm732_vm7, %v1470_v31, %v1393_v37  ;;  %v1967_v31 = vld [vmem:[#allocation2 + $0x15a] sm:$0xff]  ;;  %v1966_v33 = vld [vmem:[#allocation2 + $0x152] sm:$0xff] }
 0x15e   : > { %2040 = vrot.lane.b32.xlu1 %v1927_v25, %s6871_s21  ;;  %2038 = vrot.lane.b32.xlu0 %v1926_v8, %s6871_s21 }
 0x15f   : > { %6391 = vmatprep.mubr.msk.f32.mxu0 %vm771_vm6, %v1502_v44 }
 0x160   : > { %6392 = vmatmul.mubr.msk.f32.gmra.mrb[18].mxu0 %vm771_vm6, %v1503_v39  ;;  %v1271_v35 = vpop.permute.xlu1 %1270  ;;  %v1269_v58 = vpop.permute.xlu0 %1268  ;;  %v1936_v39 = vld [vmem:[#allocation2 + $0x169] sm:$0xff] }
 0x161   : > { %v1473_v9 = vsel %vm231_vm0, %v7498_v1, %v1271_v35  ;;  %v1472_v42 = vsel %vm231_vm0, %v7500_v34, %v1269_v58  ;;  %v1931_v34 = vld [vmem:[#allocation2 + $0x129] sm:$0xff] }
 0x162   : > { %2168 = vrot.lane.b32.xlu1 %v1959_v63, %s6872_s22  ;;  %2166 = vrot.lane.b32.xlu0 %v1958_v14, %s6872_s22 }
 0x164   : > { %v1399_v43 = vpop.permute.xlu1 %1398  ;;  %v1397_v41 = vpop.permute.xlu0 %1396 }
 0x165   : > { %v1505_v15 = vsel %vm732_vm7, %v1473_v9, %v1399_v43  ;;  %v1504_v16 = vsel %vm732_vm7, %v1472_v42, %v1397_v41  ;;  %v1968_v9 = vld [vmem:[#allocation2 + $0x16a] sm:$0xff] }
 0x166   : > { %2044 = vrot.lane.b32.xlu1 %v1929_v2, %s6871_s21  ;;  %2042 = vrot.lane.b32.xlu0 %v1928_v28, %s6871_s21  ;;  %v1969_v28 = vld [vmem:[#allocation2 + $0x172] sm:$0xff]  ;;  %v7804_v43 = vld [vmem:[#allocation2 + $0x188] sm:$0xff] }
 0x167   : > { %6394 = vmatprep.mubr.msk.f32.mxu0 %vm771_vm6, %v1504_v16 }
 0x168   : > { %6395 = vmatmul.mubr.msk.f32.gmra.mrb[20].mxu0 %vm771_vm6, %v1505_v15  ;;  %v1275_v1 = vpop.permute.xlu1 %1274  ;;  %v1273_v51 = vpop.permute.xlu0 %1272 }
 0x169   : > { %v1475_v52 = vsel %vm231_vm0, %v7518_v20, %v1275_v1  ;;  %v1474_v45 = vsel %vm231_vm0, %v7520_v21, %v1273_v51  ;;  %v1933_v21 = vld [vmem:[#allocation2 + $0x141] sm:$0xff] }
 0x16a   : > { %2172 = vrot.lane.b32.xlu1 %v1961_v24, %s6872_s22  ;;  %2170 = vrot.lane.b32.xlu0 %v1960_v19, %s6872_s22 }
 0x16c   : > { %v1403_v7 = vpop.permute.xlu1 %1402  ;;  %v1401_v0 = vpop.permute.xlu0 %1400 }
 0x16d   : > { %v1507_v5 = vsel %vm732_vm7, %v1475_v52, %v1403_v7  ;;  %v1506_v17 = vsel %vm732_vm7, %v1474_v45, %v1401_v0  ;;  %v1940_v52 = vld [vmem:[#allocation2 + $0x199] sm:$0xff] }
 0x16e   : > { %2048 = vrot.lane.b32.xlu1 %v1931_v34, %s6871_s21  ;;  %2046 = vrot.lane.b32.xlu0 %v1930_v46, %s6871_s21  ;;  %v1941_v46 = vld [vmem:[#allocation2 + $0x1a1] sm:$0xff] }
 0x16f   : > { %6397 = vmatprep.mubr.msk.f32.mxu0 %vm771_vm6, %v1506_v17 }
 0x170   : > { %6398 = vmatmul.mubr.msk.f32.gmra.mrb[22].mxu0 %vm771_vm6, %v1507_v5  ;;  %v1279_v20 = vpop.permute.xlu1 %1278  ;;  %v1277_v57 = vpop.permute.xlu0 %1276 }
 0x171   : > { %v1477_v38 = vsel %vm231_vm0, %v7538_v11, %v1279_v20  ;;  %v1476_v10 = vsel %vm231_vm0, %v7540_v53, %v1277_v57  ;;  %v1935_v53 = vld [vmem:[#allocation2 + $0x159] sm:$0xff] }
 0x172   : > { %2176 = vrot.lane.b32.xlu1 %v1963_v18, %s6872_s22  ;;  %2174 = vrot.lane.b32.xlu0 %v1962_v56, %s6872_s22  ;;  %v1881_v18 = vld [vmem:[#allocation2 + $0x50] sm:$0xff] }
 0x174   : > { %v1407_v60 = vpop.permute.xlu1 %1406  ;;  %v1405_v49 = vpop.permute.xlu0 %1404 }
 0x175   : > { %v1509_v6 = vsel %vm732_vm7, %v1477_v38, %v1407_v60  ;;  %v1508_v22 = vsel %vm732_vm7, %v1476_v10, %v1405_v49  ;;  %v1883_v49 = vld [vmem:[#allocation2 + $0x68] sm:$0xff] }
 0x176   : > { %2052 = vrot.lane.b32.xlu1 %v1933_v21, %s6871_s21  ;;  %2050 = vrot.lane.b32.xlu0 %v1932_v32, %s6871_s21 }
 0x177   : > { %6400 = vmatprep.mubr.msk.f32.mxu0 %vm771_vm6, %v1508_v22 }
 0x178   : > { %6401 = vmatmul.mubr.msk.f32.gmra.mrb[24].mxu0 %vm771_vm6, %v1509_v6  ;;  %v1283_v11 = vpop.permute.xlu1 %1282  ;;  %v1281_v36 = vpop.permute.xlu0 %1280  ;;  %v1882_v6 = vld [vmem:[#allocation2 + $0x60] sm:$0xff] }
 0x179   : > { %v1479_v29 = vsel %vm231_vm0, %v7558_v47, %v1283_v11  ;;  %v1478_v26 = vsel %vm231_vm0, %v7560_v50, %v1281_v36  ;;  %v1937_v50 = vld [vmem:[#allocation2 + $0x171] sm:$0xff] }
 0x17a   : > { %2180 = vrot.lane.b32.xlu1 %v1965_v40, %s6872_s22  ;;  %2178 = vrot.lane.b32.xlu0 %v1964_v23, %s6872_s22 }
 0x17c   : > { %v1411_v30 = vpop.permute.xlu1 %1410  ;;  %v1409_v25 = vpop.permute.xlu0 %1408 }
 0x17d   : > { %v1511_v8 = vsel %vm732_vm7, %v1479_v29, %v1411_v30  ;;  %v1510_v4 = vsel %vm732_vm7, %v1478_v26, %v1409_v25  ;;  %v1885_v26 = vld [vmem:[#allocation2 + $0x80] sm:$0xff]  ;;  %v1884_v30 = vld [vmem:[#allocation2 + $0x78] sm:$0xff] }
 0x17e   : > { %2056 = vrot.lane.b32.xlu1 %v1935_v53, %s6871_s21  ;;  %2054 = vrot.lane.b32.xlu0 %v1934_v61, %s6871_s21 }
 0x17f   : > { %6403 = vmatprep.mubr.msk.f32.mxu0 %vm771_vm6, %v1510_v4 }
 0x180   : > { %6404 = vmatmul.mubr.msk.f32.gmra.mrb[26].mxu0 %vm771_vm6, %v1511_v8  ;;  %v1287_v47 = vpop.permute.xlu1 %1286  ;;  %v1285_v37 = vpop.permute.xlu0 %1284 }
 0x181   : > { %v1481_v44 = vsel %vm231_vm0, %v10033_v59, %v1287_v47  ;;  %v1480_v63 = vsel %vm231_vm0, %v10034_v48, %v1285_v37  ;;  %v7806_v48 = vld [vmem:[#allocation2 + $0x180] sm:$0xff] }
 0x182   : > { %2184 = vrot.lane.b32.xlu1 %v1967_v31, %s6872_s22  ;;  %2182 = vrot.lane.b32.xlu0 %v1966_v33, %s6872_s22 }
 0x184   : > { %v1415_v14 = vpop.permute.xlu1 %1414  ;;  %v1413_v35 = vpop.permute.xlu0 %1412 }
 0x185   : > { %v1513_v58 = vsel %vm732_vm7, %v1481_v44, %v1415_v14  ;;  %v1512_v2 = vsel %vm732_vm7, %v1480_v63, %v1413_v35  ;;  %v1886_v44 = vld [vmem:[#allocation2 + $0x90] sm:$0xff] }
 0x186   : > { %2060 = vrot.lane.b32.xlu1 %v1937_v50, %s6871_s21  ;;  %2058 = vrot.lane.b32.xlu0 %v1936_v39, %s6871_s21  ;;  %v1887_v39 = vld [vmem:[#allocation2 + $0x98] sm:$0xff] }
 0x187   : > { %6406 = vmatprep.mubr.msk.f32.mxu0 %vm771_vm6, %v1512_v2 }
 0x188   : > { %6407 = vmatmul.mubr.msk.f32.gmra.mrb[28].mxu0 %vm771_vm6, %v1513_v58  ;;  %v1291_v59 = vpop.permute.xlu1 %1290  ;;  %v1289_v42 = vpop.permute.xlu0 %1288 }
 0x189   : > { %v1483_v41 = vsel %vm231_vm0, %v7804_v43, %v1291_v59  ;;  %v1482_v15 = vsel %vm231_vm0, %v7806_v48, %v1289_v42  ;;  %v1889_v42 = vld [vmem:[#allocation2 + $0xb0] sm:$0xff] }
 0x18a   : > { %2188 = vrot.lane.b32.xlu1 %v1969_v28, %s6872_s22  ;;  %2186 = vrot.lane.b32.xlu0 %v1968_v9, %s6872_s22 }
 0x18c   : > { %v1419_v16 = vpop.permute.xlu1 %1418  ;;  %v1417_v24 = vpop.permute.xlu0 %1416 }
 0x18d   : > { %v1515_v19 = vsel %vm732_vm7, %v1483_v41, %v1419_v16  ;;  %v1514_v1 = vsel %vm732_vm7, %v1482_v15, %v1417_v24  ;;  %v1888_v41 = vld [vmem:[#allocation2 + $0xa8] sm:$0xff] }
 0x18e   : > { %2064 = vrot.lane.b32.xlu1 %v7606_v12, %s6871_s21  ;;  %2062 = vrot.lane.b32.xlu0 %v7608_v13, %s6871_s21 }
 0x18f   : > { %6409 = vmatprep.mubr.msk.f32.mxu0 %vm771_vm6, %v1514_v1 }
 0x190   : > { %6410 = vmatmul.mubr.msk.f32.gmra.mrb[30].mxu0 %vm771_vm6, %v1515_v19  ;;  %v2009_v51 = vpop.permute.xlu1 %2008  ;;  %v2007_v34 = vpop.permute.xlu0 %2006 }
 0x191   : > { %v2231_v12 = vsel %vm231_vm0, %v7628_v54, %v2009_v51  ;;  %v2230_v13 = vsel %vm231_vm0, %v7630_v55, %v2007_v34  ;;  %v1880_v55 = vld [vmem:[#allocation2 + $0x48] sm:$0xff] }
 0x192   : > { %2192 = vrot.lane.b32.xlu1 %v7623_v62, %s6872_s22  ;;  %2190 = vrot.lane.b32.xlu0 %v7625_v27, %s6872_s22  ;;  %v1973_v62 = vld [vmem:[#allocation2 + $0x1a2] sm:$0xff]  ;;  %v1972_v27 = vld [vmem:[#allocation2 + $0x19a] sm:$0xff] }
 0x194   : > { %v2137_v45 = vpop.permute.xlu1 %2136  ;;  %v2135_v7 = vpop.permute.xlu0 %2134 }
 0x195   : > { %v2263_v0 = vsel %vm732_vm7, %v2231_v12, %v2137_v45  ;;  %v2262_v5 = vsel %vm732_vm7, %v2230_v13, %v2135_v7  ;;  %v1890_v12 = vld [vmem:[#allocation2 + $0xc0] sm:$0xff] }
 0x196   : > { %2068 = vrot.lane.b32.xlu1 %v1941_v46, %s6871_s21  ;;  %2066 = vrot.lane.b32.xlu0 %v1940_v52, %s6871_s21  ;;  %v1891_v52 = vld [vmem:[#allocation2 + $0xc8] sm:$0xff] }
 0x197   : > { %6416 = vmatprep.mubr.msk.f32.mxu0 %vm771_vm6, %v2262_v5 }
 0x198   : > { %6417 = vmatmul.mubr.msk.f32.vlgmr.msra.gmra.mrb[0].mxu0 %vm771_vm6, %v2263_v0  ;;  %v2013_v54 = vpop.permute.xlu1 %2012  ;;  %v2011_v17 = vpop.permute.xlu0 %2010 }
 0x199   : > { %v2233_v56 = vsel %vm231_vm0, %v1881_v18, %v2013_v54  ;;  %v2232_v20 = vsel %vm231_vm0, %v1880_v55, %v2011_v17  ;;  %v1893_v17 = vld [vmem:[#allocation2 + $0xe0] sm:$0xff]  ;;  %v1892_v18 = vld [vmem:[#allocation2 + $0xd8] sm:$0xff] }
 0x19a   : > { %2196 = vrot.lane.b32.xlu1 %v1973_v62, %s6872_s22  ;;  %2194 = vrot.lane.b32.xlu0 %v1972_v27, %s6872_s22 }
 0x19c   : > { %v2141_v57 = vpop.permute.xlu1 %2140  ;;  %v2139_v21 = vpop.permute.xlu0 %2138 }
 0x19d   : > { %v2265_v32 = vsel %vm732_vm7, %v2233_v56, %v2141_v57  ;;  %v2264_v38 = vsel %vm732_vm7, %v2232_v20, %v2139_v21 }
 0x19e   : > { %6419 = vmatprep.mubr.msk.f32.mxu0 %vm771_vm6, %v2264_v38 }
 0x19f   : > { %6420 = vmatmul.mubr.msk.f32.gmra.mrb[2].mxu0 %vm771_vm6, %v2265_v32 }
 0x1a0   : > { %v2017_v10 = vpop.permute.xlu1 %2016  ;;  %v2015_v60 = vpop.permute.xlu0 %2014 }
 0x1a1   : > { %v2235_v22 = vsel %vm231_vm0, %v1883_v49, %v2017_v10  ;;  %v2234_v40 = vsel %vm231_vm0, %v1882_v6, %v2015_v60  ;;  %v1895_v60 = vld [vmem:[#allocation2 + $0xf8] sm:$0xff]  ;;  %v1894_v49 = vld [vmem:[#allocation2 + $0xf0] sm:$0xff] }
 0x1a4   : > { %v2145_v23 = vpop.permute.xlu1 %2144  ;;  %v2143_v11 = vpop.permute.xlu0 %2142 }
 0x1a5   : > { %v2267_v36 = vsel %vm732_vm7, %v2235_v22, %v2145_v23  ;;  %v2266_v53 = vsel %vm732_vm7, %v2234_v40, %v2143_v11 }
 0x1a6   : > { %6422 = vmatprep.mubr.msk.f32.mxu0 %vm771_vm6, %v2266_v53 }
 0x1a7   : > { %6423 = vmatmul.mubr.msk.f32.gmra.mrb[4].mxu0 %vm771_vm6, %v2267_v36 }
 0x1a8   : > { %v2021_v61 = vpop.permute.xlu1 %2020  ;;  %v2019_v29 = vpop.permute.xlu0 %2018 }
 0x1a9   : > { %v2237_v25 = vsel %vm231_vm0, %v1885_v26, %v2021_v61  ;;  %v2236_v8 = vsel %vm231_vm0, %v1884_v30, %v2019_v29  ;;  %v1897_v29 = vld [vmem:[#allocation2 + $0x110] sm:$0xff]  ;;  %v1896_v26 = vld [vmem:[#allocation2 + $0x108] sm:$0xff] }
 0x1ac   : > { %v2149_v4 = vpop.permute.xlu1 %2148  ;;  %v2147_v31 = vpop.permute.xlu0 %2146 }
 0x1ad   : > { %v2269_v33 = vsel %vm732_vm7, %v2237_v25, %v2149_v4  ;;  %v2268_v47 = vsel %vm732_vm7, %v2236_v8, %v2147_v31 }
 0x1ae   : > { %6425 = vmatprep.mubr.msk.f32.mxu0 %vm771_vm6, %v2268_v47 }
 0x1af   : > { %6426 = vmatmul.mubr.msk.f32.gmra.mrb[6].mxu0 %vm771_vm6, %v2269_v33 }
 0x1b0   : > { %v2025_v37 = vpop.permute.xlu1 %2024  ;;  %v2023_v50 = vpop.permute.xlu0 %2022 }
 0x1b1   : > { %v2239_v63 = vsel %vm231_vm0, %v1887_v39, %v2025_v37  ;;  %v2238_v14 = vsel %vm231_vm0, %v1886_v44, %v2023_v50  ;;  %v1899_v50 = vld [vmem:[#allocation2 + $0x128] sm:$0xff]  ;;  %v1898_v39 = vld [vmem:[#allocation2 + $0x120] sm:$0xff] }
 0x1b4   : > { %v2153_v35 = vpop.permute.xlu1 %2152  ;;  %v2151_v58 = vpop.permute.xlu0 %2150 }
 0x1b5   : > { %v2271_v2 = vsel %vm732_vm7, %v2239_v63, %v2153_v35  ;;  %v2270_v28 = vsel %vm732_vm7, %v2238_v14, %v2151_v58 }
 0x1b6   : > { %6428 = vmatprep.mubr.msk.f32.mxu0 %vm771_vm6, %v2270_v28 }
 0x1b7   : > { %6429 = vmatmul.mubr.msk.f32.gmra.mrb[8].mxu0 %vm771_vm6, %v2271_v2 }
 0x1b8   : > { %v2029_v9 = vpop.permute.xlu1 %2028  ;;  %v2027_v59 = vpop.permute.xlu0 %2026 }
 0x1b9   : > { %v2241_v15 = vsel %vm231_vm0, %v1889_v42, %v2029_v9  ;;  %v2240_v16 = vsel %vm231_vm0, %v1888_v41, %v2027_v59  ;;  %v1901_v59 = vld [vmem:[#allocation2 + $0x140] sm:$0xff]  ;;  %v1900_v42 = vld [vmem:[#allocation2 + $0x138] sm:$0xff] }
 0x1bc   : > { %v2157_v24 = vpop.permute.xlu1 %2156  ;;  %v2155_v19 = vpop.permute.xlu0 %2154 }
 0x1bd   : > { %v2273_v1 = vsel %vm732_vm7, %v2241_v15, %v2157_v24  ;;  %v2272_v51 = vsel %vm732_vm7, %v2240_v16, %v2155_v19 }
 0x1be   : > { %6431 = vmatprep.mubr.msk.f32.mxu0 %vm771_vm6, %v2272_v51 }
 0x1bf   : > { %6432 = vmatmul.mubr.msk.f32.gmra.mrb[10].mxu0 %vm771_vm6, %v2273_v1 }
 0x1c0   : > { %v2033_v34 = vpop.permute.xlu1 %2032  ;;  %v2031_v46 = vpop.permute.xlu0 %2030 }
 0x1c1   : > { %v2243_v13 = vsel %vm231_vm0, %v1891_v52, %v2033_v34  ;;  %v2242_v45 = vsel %vm231_vm0, %v1890_v12, %v2031_v46  ;;  %v1903_v46 = vld [vmem:[#allocation2 + $0x158] sm:$0xff]  ;;  %v1902_v52 = vld [vmem:[#allocation2 + $0x150] sm:$0xff] }
 0x1c4   : > { %v2161_v7 = vpop.permute.xlu1 %2160  ;;  %v2159_v0 = vpop.permute.xlu0 %2158 }
 0x1c5   : > { %v2275_v5 = vsel %vm732_vm7, %v2243_v13, %v2161_v7  ;;  %v2274_v62 = vsel %vm732_vm7, %v2242_v45, %v2159_v0 }
 0x1c6   : > { %6434 = vmatprep.mubr.msk.f32.mxu0 %vm771_vm6, %v2274_v62 }
 0x1c7   : > { %6435 = vmatmul.mubr.msk.f32.gmra.mrb[12].mxu0 %vm771_vm6, %v2275_v5 }
 0x1c8   : > { %v2037_v27 = vpop.permute.xlu1 %2036  ;;  %v2035_v54 = vpop.permute.xlu0 %2034 }
 0x1c9   : > { %v2245_v55 = vsel %vm231_vm0, %v1893_v17, %v2037_v27  ;;  %v2244_v56 = vsel %vm231_vm0, %v1892_v18, %v2035_v54  ;;  %v1905_v54 = vld [vmem:[#allocation2 + $0x170] sm:$0xff]  ;;  %v1904_v17 = vld [vmem:[#allocation2 + $0x168] sm:$0xff] }
 0x1cc   : > { %v2165_v20 = vpop.permute.xlu1 %2164  ;;  %v2163_v57 = vpop.permute.xlu0 %2162 }
 0x1cd   : > { %v2277_v21 = vsel %vm732_vm7, %v2245_v55, %v2165_v20  ;;  %v2276_v32 = vsel %vm732_vm7, %v2244_v56, %v2163_v57 }
 0x1ce   : > { %6437 = vmatprep.mubr.msk.f32.mxu0 %vm771_vm6, %v2276_v32 }
 0x1cf   : > { %6438 = vmatmul.mubr.msk.f32.gmra.mrb[14].mxu0 %vm771_vm6, %v2277_v21 }
 0x1d0   : > { %v2041_v38 = vpop.permute.xlu1 %2040  ;;  %v2039_v10 = vpop.permute.xlu0 %2038 }
 0x1d1   : > { %v2247_v6 = vsel %vm231_vm0, %v1895_v60, %v2041_v38  ;;  %v2246_v22 = vsel %vm231_vm0, %v1894_v49, %v2039_v10 }
 0x1d4   : > { %v2169_v40 = vpop.permute.xlu1 %2168  ;;  %v2167_v23 = vpop.permute.xlu0 %2166 }
 0x1d5   : > { %v2279_v11 = vsel %vm732_vm7, %v2247_v6, %v2169_v40  ;;  %v2278_v36 = vsel %vm732_vm7, %v2246_v22, %v2167_v23 }
 0x1d6   : > { %6440 = vmatprep.mubr.msk.f32.mxu0 %vm771_vm6, %v2278_v36  ;;  %v1909_v36 = vld [vmem:[#allocation2 + $0x1a0] sm:$0xff] }
 0x1d7   : > { %6441 = vmatmul.mubr.msk.f32.gmra.mrb[16].mxu0 %vm771_vm6, %v2279_v11 }
 0x1d8   : > { %v2045_v53 = vpop.permute.xlu1 %2044  ;;  %v2043_v61 = vpop.permute.xlu0 %2042 }
 0x1d9   : > { %v2249_v30 = vsel %vm231_vm0, %v1897_v29, %v2045_v53  ;;  %v2248_v25 = vsel %vm231_vm0, %v1896_v26, %v2043_v61  ;;  %v1908_v53 = vld [vmem:[#allocation2 + $0x198] sm:$0xff] }
 0x1dc   : > { %v2173_v8 = vpop.permute.xlu1 %2172  ;;  %v2171_v4 = vpop.permute.xlu0 %2170 }
 0x1dd   : > { %v2281_v31 = vsel %vm732_vm7, %v2249_v30, %v2173_v8  ;;  %v2280_v33 = vsel %vm732_vm7, %v2248_v25, %v2171_v4  ;;  %v7933_v25 = vld [vmem:[%s9967_s3] ss:$0 sm:$0xff] }
 0x1de   : > { %6443 = vmatprep.mubr.msk.f32.mxu0 %vm771_vm6, %v2280_v33 }
 0x1df   : > { %6444 = vmatmul.mubr.msk.f32.gmra.mrb[18].mxu0 %vm771_vm6, %v2281_v31 }
 0x1e0   : > { %v2049_v47 = vpop.permute.xlu1 %2048  ;;  %v2047_v37 = vpop.permute.xlu0 %2046 }
 0x1e1   : > { %v2251_v44 = vsel %vm231_vm0, %v1899_v50, %v2049_v47  ;;  %v2250_v63 = vsel %vm231_vm0, %v1898_v39, %v2047_v37 }
 0x1e4   : > { %v2177_v14 = vpop.permute.xlu1 %2176  ;;  %v2175_v35 = vpop.permute.xlu0 %2174 }
 0x1e5   : > { %v2283_v58 = vsel %vm732_vm7, %v2251_v44, %v2177_v14  ;;  %v2282_v2 = vsel %vm732_vm7, %v2250_v63, %v2175_v35 }
 0x1e6   : > { %6446 = vmatprep.mubr.msk.f32.mxu0 %vm771_vm6, %v2282_v2 }
 0x1e7   : > { %6447 = vmatmul.mubr.msk.f32.gmra.mrb[20].mxu0 %vm771_vm6, %v2283_v58 }
 0x1e8   : > { %v2053_v28 = vpop.permute.xlu1 %2052  ;;  %v2051_v9 = vpop.permute.xlu0 %2050 }
 0x1e9   : > { %v2253_v41 = vsel %vm231_vm0, %v1901_v59, %v2053_v28  ;;  %v2252_v15 = vsel %vm231_vm0, %v1900_v42, %v2051_v9 }
 0x1ec   : > { %v2181_v16 = vpop.permute.xlu1 %2180  ;;  %v2179_v24 = vpop.permute.xlu0 %2178 }
 0x1ed   : > { %v2285_v19 = vsel %vm732_vm7, %v2253_v41, %v2181_v16  ;;  %v2284_v1 = vsel %vm732_vm7, %v2252_v15, %v2179_v24 }
 0x1ee   : > { %6449 = vmatprep.mubr.msk.f32.mxu0 %vm771_vm6, %v2284_v1 }
 0x1ef   : > { %6450 = vmatmul.mubr.msk.f32.gmra.mrb[22].mxu0 %vm771_vm6, %v2285_v19 }
 0x1f0   : > { %v2057_v51 = vpop.permute.xlu1 %2056  ;;  %v2055_v34 = vpop.permute.xlu0 %2054 }
 0x1f1   : > { %v2255_v12 = vsel %vm231_vm0, %v1903_v46, %v2057_v51  ;;  %v2254_v13 = vsel %vm231_vm0, %v1902_v52, %v2055_v34 }
 0x1f4   : > { %v2185_v45 = vpop.permute.xlu1 %2184  ;;  %v2183_v7 = vpop.permute.xlu0 %2182 }
 0x1f5   : > { %v2287_v0 = vsel %vm732_vm7, %v2255_v12, %v2185_v45  ;;  %v2286_v5 = vsel %vm732_vm7, %v2254_v13, %v2183_v7 }
 0x1f6   : > { %6452 = vmatprep.mubr.msk.f32.mxu0 %vm771_vm6, %v2286_v5 }
 0x1f7   : > { %6453 = vmatmul.mubr.msk.f32.gmra.mrb[24].mxu0 %vm771_vm6, %v2287_v0 }
 0x1f8   : > { %v2061_v62 = vpop.permute.xlu1 %2060  ;;  %v2059_v27 = vpop.permute.xlu0 %2058 }
 0x1f9   : > { %v2257_v18 = vsel %vm231_vm0, %v1905_v54, %v2061_v62  ;;  %v2256_v55 = vsel %vm231_vm0, %v1904_v17, %v2059_v27 }
 0x1fc   : > { %v2189_v56 = vpop.permute.xlu1 %2188  ;;  %v2187_v20 = vpop.permute.xlu0 %2186 }
 0x1fd   : > { %v2289_v57 = vsel %vm732_vm7, %v2257_v18, %v2189_v56  ;;  %v2288_v21 = vsel %vm732_vm7, %v2256_v55, %v2187_v20 }
 0x1fe   : > { %6455 = vmatprep.mubr.msk.f32.mxu0 %vm771_vm6, %v2288_v21 }
 0x1ff   : > { %6456 = vmatmul.mubr.msk.f32.gmra.mrb[26].mxu0 %vm771_vm6, %v2289_v57 }
 0x200   : > { %v2065_v32 = vpop.permute.xlu1 %2064  ;;  %v2063_v38 = vpop.permute.xlu0 %2062 }
 0x201   : > { %v2259_v10 = vsel %vm231_vm0, %v7804_v43, %v2065_v32  ;;  %v2258_v60 = vsel %vm231_vm0, %v7806_v48, %v2063_v38 }
 0x204   : > { %v2193_v49 = vpop.permute.xlu1 %2192  ;;  %v2191_v6 = vpop.permute.xlu0 %2190 }
 0x205   : > { %v2291_v22 = vsel %vm732_vm7, %v2259_v10, %v2193_v49  ;;  %v2290_v40 = vsel %vm732_vm7, %v2258_v60, %v2191_v6 }
 0x206   : > { %6458 = vmatprep.mubr.msk.f32.mxu0 %vm771_vm6, %v2290_v40 }
 0x207   : > { %6459 = vmatmul.mubr.msk.f32.gmra.mrb[28].mxu0 %vm771_vm6, %v2291_v22 }
 0x208   : > { %v2069_v23 = vpop.permute.xlu1 %2068  ;;  %v2067_v11 = vpop.permute.xlu0 %2066 }
 0x209   : > { %v2261_v61 = vsel %vm231_vm0, %v1909_v36, %v2069_v23  ;;  %v2260_v43 = vsel %vm231_vm0, %v1908_v53, %v2067_v11 }
 0x20c   : > { %v2197_v29 = vpop.permute.xlu1 %2196  ;;  %v2195_v48 = vpop.permute.xlu0 %2194 }
 0x20d   : > { %v2293_v26 = vsel %vm732_vm7, %v2261_v61, %v2197_v29  ;;  %v2292_v30 = vsel %vm732_vm7, %v2260_v43, %v2195_v48 }
 0x20e   : > { %6461 = vmatprep.mubr.msk.f32.mxu0 %vm771_vm6, %v2292_v30 }
 0x20f   : > { %6462 = vmatmul.mubr.msk.f32.gmra.mrb[30].mxu0 %vm771_vm6, %v2293_v26 }
 0x26b   : > { %v6418_v8 = vpop.f32.mrb[0].mxu0 }
 0x26c   : > { %v6656_v4 = vadd.f32 %v6418_v8, %v7933_v25  ;;  %v2462_v31 = vpop.f32.mrb[1].mxu0 }
 0x26d   : > { %v6657_v33 = vadd.f32 %v7933_v25, %v2462_v31 }
 0x26e   : > { %2654 = vst.msk [vmem:[#allocation3 + $0x8] sm:$0xff] %vm231_vm0, %v6656_v4  ;;  %v2686_v47 = vsel %vm231_vm0, %v6656_v4, 0.0  ;;  %v2756_v37 = vmul.f32 %v6656_v4, %v6656_v4 }
 0x26f   : > { %2653 = vst.msk [vmem:[#allocation3] sm:$0xff] %vm231_vm0, %v6657_v33  ;;  %v2685_v50 = vsel %vm231_vm0, %v6657_v33, 0.0  ;;  %v2755_v39 = vmul.f32 %v6657_v33, %v6657_v33 }
 0x270   : > { %v2788_v44 = vsel %vm231_vm0, %v2756_v37, 0.0  ;;  %v2687_v63 = vadd.f32 %v2686_v47, %v2685_v50 }
 0x271   : > { %v2787_v14 = vsel %vm231_vm0, %v2755_v39, 0.0 }
 0x272   : > { %v2789_v35 = vadd.f32 %v2788_v44, %v2787_v14  ;;  %v6421_v58 = vpop.f32.mrb[2].mxu0 }
 0x273   : > { %v6658_v2 = vadd.f32 %v6421_v58, %v7933_v25  ;;  %v2472_v28 = vpop.f32.mrb[3].mxu0 }
 0x274   : > { %v6659_v9 = vadd.f32 %v7933_v25, %v2472_v28 }
 0x275   : > { %2656 = vst.msk [vmem:[#allocation3 + $0x18] sm:$0xff] %vm231_vm0, %v6658_v2  ;;  %v2758_v59 = vmul.f32 %v6658_v2, %v6658_v2  ;;  %v2690_v16 = vsel %vm231_vm0, %v6658_v2, 0.0 }
 0x276   : > { %2655 = vst.msk [vmem:[#allocation3 + $0x10] sm:$0xff] %vm231_vm0, %v6659_v9  ;;  %v2688_v42 = vsel %vm231_vm0, %v6659_v9, 0.0  ;;  %v2757_v41 = vmul.f32 %v6659_v9, %v6659_v9 }
 0x277   : > { %v2689_v15 = vadd.f32 %v2688_v42, %v2687_v63  ;;  %v2792_v51 = vsel %vm231_vm0, %v2758_v59, 0.0 }
 0x278   : > { %v2790_v24 = vsel %vm231_vm0, %v2757_v41, 0.0 }
 0x279   : > { %v2791_v19 = vadd.f32 %v2790_v24, %v2789_v35  ;;  %v2691_v1 = vadd.f32 %v2690_v16, %v2689_v15 }
 0x27a   : > { %v6424_v34 = vpop.f32.mrb[4].mxu0 }
 0x27b   : > { %v6660_v46 = vadd.f32 %v6424_v34, %v7933_v25  ;;  %v2482_v52 = vpop.f32.mrb[5].mxu0  ;;  %v2793_v12 = vadd.f32 %v2792_v51, %v2791_v19 }
 0x27c   : > { %v6661_v13 = vadd.f32 %v7933_v25, %v2482_v52 }
 0x27d   : > { %2658 = vst.msk [vmem:[#allocation3 + $0x28] sm:$0xff] %vm231_vm0, %v6660_v46  ;;  %v2760_v45 = vmul.f32 %v6660_v46, %v6660_v46  ;;  %v2694_v62 = vsel %vm231_vm0, %v6660_v46, 0.0 }
 0x27e   : > { %2657 = vst.msk [vmem:[#allocation3 + $0x20] sm:$0xff] %vm231_vm0, %v6661_v13  ;;  %v2692_v7 = vsel %vm231_vm0, %v6661_v13, 0.0  ;;  %v2759_v0 = vmul.f32 %v6661_v13, %v6661_v13 }
 0x27f   : > { %v2693_v5 = vadd.f32 %v2692_v7, %v2691_v1  ;;  %v2796_v18 = vsel %vm231_vm0, %v2760_v45, 0.0 }
 0x280   : > { %v2794_v27 = vsel %vm231_vm0, %v2759_v0, 0.0 }
 0x281   : > { %v2795_v54 = vadd.f32 %v2794_v27, %v2793_v12  ;;  %v2695_v17 = vadd.f32 %v2694_v62, %v2693_v5 }
 0x282   : > { %v6427_v55 = vpop.f32.mrb[6].mxu0 }
 0x283   : > { %v6662_v56 = vadd.f32 %v6427_v55, %v7933_v25  ;;  %v2492_v20 = vpop.f32.mrb[7].mxu0  ;;  %v2797_v57 = vadd.f32 %v2796_v18, %v2795_v54 }
 0x284   : > { %v6663_v21 = vadd.f32 %v7933_v25, %v2492_v20 }
 0x285   : > { %2660 = vst.msk [vmem:[#allocation3 + $0x38] sm:$0xff] %vm231_vm0, %v6662_v56  ;;  %v2762_v32 = vmul.f32 %v6662_v56, %v6662_v56  ;;  %v2698_v49 = vsel %vm231_vm0, %v6662_v56, 0.0 }
 0x286   : > { %2659 = vst.msk [vmem:[#allocation3 + $0x30] sm:$0xff] %vm231_vm0, %v6663_v21  ;;  %v2696_v38 = vsel %vm231_vm0, %v6663_v21, 0.0  ;;  %v2761_v10 = vmul.f32 %v6663_v21, %v6663_v21 }
 0x287   : > { %v2697_v60 = vadd.f32 %v2696_v38, %v2695_v17  ;;  %v2800_v23 = vsel %vm231_vm0, %v2762_v32, 0.0 }
 0x288   : > { %v2798_v6 = vsel %vm231_vm0, %v2761_v10, 0.0 }
 0x289   : > { %v2799_v22 = vadd.f32 %v2798_v6, %v2797_v57  ;;  %v2699_v40 = vadd.f32 %v2698_v49, %v2697_v60 }
 0x28a   : > { %v6430_v11 = vpop.f32.mrb[8].mxu0 }
 0x28b   : > { %v6664_v36 = vadd.f32 %v6430_v11, %v7933_v25  ;;  %v2502_v53 = vpop.f32.mrb[9].mxu0  ;;  %v2801_v61 = vadd.f32 %v2800_v23, %v2799_v22 }
 0x28c   : > { %v6665_v43 = vadd.f32 %v7933_v25, %v2502_v53 }
 0x28d   : > { %2662 = vst.msk [vmem:[#allocation3 + $0x48] sm:$0xff] %vm231_vm0, %v6664_v36  ;;  %v2764_v29 = vmul.f32 %v6664_v36, %v6664_v36  ;;  %v2702_v8 = vsel %vm231_vm0, %v6664_v36, 0.0 }
 0x28e   : > { %2661 = vst.msk [vmem:[#allocation3 + $0x40] sm:$0xff] %vm231_vm0, %v6665_v43  ;;  %v2700_v48 = vsel %vm231_vm0, %v6665_v43, 0.0  ;;  %v2763_v26 = vmul.f32 %v6665_v43, %v6665_v43 }
 0x28f   : > { %v2701_v30 = vadd.f32 %v2700_v48, %v2699_v40  ;;  %v2804_v47 = vsel %vm231_vm0, %v2764_v29, 0.0 }
 0x290   : > { %v2802_v4 = vsel %vm231_vm0, %v2763_v26, 0.0 }
 0x291   : > { %v2803_v31 = vadd.f32 %v2802_v4, %v2801_v61  ;;  %v2703_v33 = vadd.f32 %v2702_v8, %v2701_v30 }
 0x292   : > { %v6433_v37 = vpop.f32.mrb[10].mxu0 }
 0x293   : > { %v6666_v50 = vadd.f32 %v6433_v37, %v7933_v25  ;;  %v2512_v39 = vpop.f32.mrb[11].mxu0  ;;  %v2805_v44 = vadd.f32 %v2804_v47, %v2803_v31 }
 0x294   : > { %v6667_v63 = vadd.f32 %v7933_v25, %v2512_v39 }
 0x295   : > { %2664 = vst.msk [vmem:[#allocation3 + $0x58] sm:$0xff] %vm231_vm0, %v6666_v50  ;;  %v2766_v14 = vmul.f32 %v6666_v50, %v6666_v50  ;;  %v2706_v28 = vsel %vm231_vm0, %v6666_v50, 0.0 }
 0x296   : > { %2663 = vst.msk [vmem:[#allocation3 + $0x50] sm:$0xff] %vm231_vm0, %v6667_v63  ;;  %v2704_v35 = vsel %vm231_vm0, %v6667_v63, 0.0  ;;  %v2765_v58 = vmul.f32 %v6667_v63, %v6667_v63 }
 0x297   : > { %v2705_v2 = vadd.f32 %v2704_v35, %v2703_v33  ;;  %v2808_v41 = vsel %vm231_vm0, %v2766_v14, 0.0 }
 0x298   : > { %v2806_v9 = vsel %vm231_vm0, %v2765_v58, 0.0 }
 0x299   : > { %v2807_v59 = vadd.f32 %v2806_v9, %v2805_v44  ;;  %v2707_v42 = vadd.f32 %v2706_v28, %v2705_v2 }
 0x29a   : > { %v6436_v15 = vpop.f32.mrb[12].mxu0 }
 0x29b   : > { %v6668_v16 = vadd.f32 %v6436_v15, %v7933_v25  ;;  %v2522_v24 = vpop.f32.mrb[13].mxu0  ;;  %v2809_v19 = vadd.f32 %v2808_v41, %v2807_v59 }
 0x29c   : > { %v6669_v1 = vadd.f32 %v7933_v25, %v2522_v24 }
 0x29d   : > { %2666 = vst.msk [vmem:[#allocation3 + $0x68] sm:$0xff] %vm231_vm0, %v6668_v16  ;;  %v2768_v51 = vmul.f32 %v6668_v16, %v6668_v16  ;;  %v2710_v12 = vsel %vm231_vm0, %v6668_v16, 0.0 }
 0x29e   : > { %2665 = vst.msk [vmem:[#allocation3 + $0x60] sm:$0xff] %vm231_vm0, %v6669_v1  ;;  %v2708_v34 = vsel %vm231_vm0, %v6669_v1, 0.0  ;;  %v2767_v46 = vmul.f32 %v6669_v1, %v6669_v1 }
 0x29f   : > { %v2709_v52 = vadd.f32 %v2708_v34, %v2707_v42  ;;  %v2812_v0 = vsel %vm231_vm0, %v2768_v51, 0.0 }
 0x2a0   : > { %v2810_v13 = vsel %vm231_vm0, %v2767_v46, 0.0 }
 0x2a1   : > { %v2811_v45 = vadd.f32 %v2810_v13, %v2809_v19  ;;  %v2711_v7 = vadd.f32 %v2710_v12, %v2709_v52 }
 0x2a2   : > { %v6439_v5 = vpop.f32.mrb[14].mxu0 }
 0x2a3   : > { %v6670_v62 = vadd.f32 %v6439_v5, %v7933_v25  ;;  %v2532_v27 = vpop.f32.mrb[15].mxu0  ;;  %v2813_v54 = vadd.f32 %v2812_v0, %v2811_v45 }
 0x2a4   : > { %v6671_v17 = vadd.f32 %v7933_v25, %v2532_v27 }
 0x2a5   : > { %2668 = vst.msk [vmem:[#allocation3 + $0x78] sm:$0xff] %vm231_vm0, %v6670_v62  ;;  %v2770_v18 = vmul.f32 %v6670_v62, %v6670_v62  ;;  %v2714_v57 = vsel %vm231_vm0, %v6670_v62, 0.0 }
 0x2a6   : > { %2667 = vst.msk [vmem:[#allocation3 + $0x70] sm:$0xff] %vm231_vm0, %v6671_v17  ;;  %v2712_v55 = vsel %vm231_vm0, %v6671_v17, 0.0  ;;  %v2769_v56 = vmul.f32 %v6671_v17, %v6671_v17 }
 0x2a7   : > { %v2713_v20 = vadd.f32 %v2712_v55, %v2711_v7  ;;  %v2816_v10 = vsel %vm231_vm0, %v2770_v18, 0.0 }
 0x2a8   : > { %v2814_v21 = vsel %vm231_vm0, %v2769_v56, 0.0 }
 0x2a9   : > { %v2815_v32 = vadd.f32 %v2814_v21, %v2813_v54  ;;  %v2715_v38 = vadd.f32 %v2714_v57, %v2713_v20 }
 0x2aa   : > { %v6442_v60 = vpop.f32.mrb[16].mxu0 }
 0x2ab   : > { %v6672_v49 = vadd.f32 %v6442_v60, %v7933_v25  ;;  %v2542_v6 = vpop.f32.mrb[17].mxu0  ;;  %v2817_v22 = vadd.f32 %v2816_v10, %v2815_v32 }
 0x2ac   : > { %v6673_v40 = vadd.f32 %v7933_v25, %v2542_v6 }
 0x2ad   : > { %2670 = vst.msk [vmem:[#allocation3 + $0x88] sm:$0xff] %vm231_vm0, %v6672_v49  ;;  %v2772_v23 = vmul.f32 %v6672_v49, %v6672_v49  ;;  %v2718_v61 = vsel %vm231_vm0, %v6672_v49, 0.0 }
 0x2ae   : > { %2669 = vst.msk [vmem:[#allocation3 + $0x80] sm:$0xff] %vm231_vm0, %v6673_v40  ;;  %v2716_v11 = vsel %vm231_vm0, %v6673_v40, 0.0  ;;  %v2771_v36 = vmul.f32 %v6673_v40, %v6673_v40 }
 0x2af   : > { %v2717_v53 = vadd.f32 %v2716_v11, %v2715_v38  ;;  %v2820_v26 = vsel %vm231_vm0, %v2772_v23, 0.0 }
 0x2b0   : > { %v2818_v43 = vsel %vm231_vm0, %v2771_v36, 0.0 }
 0x2b1   : > { %v2819_v29 = vadd.f32 %v2818_v43, %v2817_v22  ;;  %v2719_v48 = vadd.f32 %v2718_v61, %v2717_v53 }
 0x2b2   : > { %v6445_v30 = vpop.f32.mrb[18].mxu0 }
 0x2b3   : > { %v6674_v8 = vadd.f32 %v6445_v30, %v7933_v25  ;;  %v2552_v4 = vpop.f32.mrb[19].mxu0  ;;  %v2821_v31 = vadd.f32 %v2820_v26, %v2819_v29 }
 0x2b4   : > { %v6675_v33 = vadd.f32 %v7933_v25, %v2552_v4 }
 0x2b5   : > { %2672 = vst.msk [vmem:[#allocation3 + $0x98] sm:$0xff] %vm231_vm0, %v6674_v8  ;;  %v2774_v47 = vmul.f32 %v6674_v8, %v6674_v8  ;;  %v2722_v44 = vsel %vm231_vm0, %v6674_v8, 0.0 }
 0x2b6   : > { %2671 = vst.msk [vmem:[#allocation3 + $0x90] sm:$0xff] %vm231_vm0, %v6675_v33  ;;  %v2720_v37 = vsel %vm231_vm0, %v6675_v33, 0.0  ;;  %v2773_v50 = vmul.f32 %v6675_v33, %v6675_v33 }
 0x2b7   : > { %v2721_v39 = vadd.f32 %v2720_v37, %v2719_v48  ;;  %v2824_v58 = vsel %vm231_vm0, %v2774_v47, 0.0 }
 0x2b8   : > { %v2822_v63 = vsel %vm231_vm0, %v2773_v50, 0.0 }
 0x2b9   : > { %v2823_v14 = vadd.f32 %v2822_v63, %v2821_v31  ;;  %v2723_v35 = vadd.f32 %v2722_v44, %v2721_v39 }
 0x2ba   : > { %v6448_v2 = vpop.f32.mrb[20].mxu0 }
 0x2bb   : > { %v6676_v28 = vadd.f32 %v6448_v2, %v7933_v25  ;;  %v2562_v9 = vpop.f32.mrb[21].mxu0  ;;  %v2825_v59 = vadd.f32 %v2824_v58, %v2823_v14 }
 0x2bc   : > { %v6677_v42 = vadd.f32 %v7933_v25, %v2562_v9 }
 0x2bd   : > { %2674 = vst.msk [vmem:[#allocation3 + $0xa8] sm:$0xff] %vm231_vm0, %v6676_v28  ;;  %v2776_v41 = vmul.f32 %v6676_v28, %v6676_v28  ;;  %v2726_v19 = vsel %vm231_vm0, %v6676_v28, 0.0 }
 0x2be   : > { %2673 = vst.msk [vmem:[#allocation3 + $0xa0] sm:$0xff] %vm231_vm0, %v6677_v42  ;;  %v2724_v15 = vsel %vm231_vm0, %v6677_v42, 0.0  ;;  %v2775_v16 = vmul.f32 %v6677_v42, %v6677_v42 }
 0x2bf   : > { %v2725_v24 = vadd.f32 %v2724_v15, %v2723_v35  ;;  %v2828_v46 = vsel %vm231_vm0, %v2776_v41, 0.0 }
 0x2c0   : > { %v2826_v1 = vsel %vm231_vm0, %v2775_v16, 0.0 }
 0x2c1   : > { %v2827_v51 = vadd.f32 %v2826_v1, %v2825_v59  ;;  %v2727_v34 = vadd.f32 %v2726_v19, %v2725_v24 }
 0x2c2   : > { %v6451_v52 = vpop.f32.mrb[22].mxu0 }
 0x2c3   : > { %v6678_v12 = vadd.f32 %v6451_v52, %v7933_v25  ;;  %v2572_v13 = vpop.f32.mrb[23].mxu0  ;;  %v2829_v45 = vadd.f32 %v2828_v46, %v2827_v51 }
 0x2c4   : > { %v6679_v7 = vadd.f32 %v7933_v25, %v2572_v13 }
 0x2c5   : > { %2676 = vst.msk [vmem:[#allocation3 + $0xb8] sm:$0xff] %vm231_vm0, %v6678_v12  ;;  %v2778_v0 = vmul.f32 %v6678_v12, %v6678_v12  ;;  %v2730_v54 = vsel %vm231_vm0, %v6678_v12, 0.0 }
 0x2c6   : > { %2675 = vst.msk [vmem:[#allocation3 + $0xb0] sm:$0xff] %vm231_vm0, %v6679_v7  ;;  %v2728_v5 = vsel %vm231_vm0, %v6679_v7, 0.0  ;;  %v2777_v62 = vmul.f32 %v6679_v7, %v6679_v7 }
 0x2c7   : > { %v2729_v27 = vadd.f32 %v2728_v5, %v2727_v34  ;;  %v2832_v56 = vsel %vm231_vm0, %v2778_v0, 0.0 }
 0x2c8   : > { %v2830_v17 = vsel %vm231_vm0, %v2777_v62, 0.0 }
 0x2c9   : > { %v2831_v18 = vadd.f32 %v2830_v17, %v2829_v45  ;;  %v2731_v55 = vadd.f32 %v2730_v54, %v2729_v27 }
 0x2ca   : > { %v6454_v20 = vpop.f32.mrb[24].mxu0 }
 0x2cb   : > { %v6680_v57 = vadd.f32 %v6454_v20, %v7933_v25  ;;  %v2582_v21 = vpop.f32.mrb[25].mxu0  ;;  %v2833_v32 = vadd.f32 %v2832_v56, %v2831_v18 }
 0x2cc   : > { %v6681_v38 = vadd.f32 %v7933_v25, %v2582_v21 }
 0x2cd   : > { %2678 = vst.msk [vmem:[#allocation3 + $0xc8] sm:$0xff] %vm231_vm0, %v6680_v57  ;;  %v2780_v10 = vmul.f32 %v6680_v57, %v6680_v57  ;;  %v2734_v22 = vsel %vm231_vm0, %v6680_v57, 0.0 }
 0x2ce   : > { %2677 = vst.msk [vmem:[#allocation3 + $0xc0] sm:$0xff] %vm231_vm0, %v6681_v38  ;;  %v2732_v60 = vsel %vm231_vm0, %v6681_v38, 0.0  ;;  %v2779_v49 = vmul.f32 %v6681_v38, %v6681_v38 }
 0x2cf   : > { %v2733_v6 = vadd.f32 %v2732_v60, %v2731_v55  ;;  %v2836_v36 = vsel %vm231_vm0, %v2780_v10, 0.0 }
 0x2d0   : > { %v2834_v40 = vsel %vm231_vm0, %v2779_v49, 0.0 }
 0x2d1   : > { %v2835_v23 = vadd.f32 %v2834_v40, %v2833_v32  ;;  %v2735_v11 = vadd.f32 %v2734_v22, %v2733_v6 }
 0x2d2   : > { %v6457_v53 = vpop.f32.mrb[26].mxu0 }
 0x2d3   : > { %v6682_v61 = vadd.f32 %v6457_v53, %v7933_v25  ;;  %v2592_v43 = vpop.f32.mrb[27].mxu0  ;;  %v2837_v29 = vadd.f32 %v2836_v36, %v2835_v23  ;;  %v2857_v53 = vld [vmem:[%s9967_s3 + $0x1] sm:$0x1] }
 0x2d4   : > { %v6683_v48 = vadd.f32 %v7933_v25, %v2592_v43 }
 0x2d5   : > { %2680 = vst.msk [vmem:[#allocation3 + $0xd8] sm:$0xff] %vm231_vm0, %v6682_v61  ;;  %v2782_v26 = vmul.f32 %v6682_v61, %v6682_v61  ;;  %v2738_v31 = vsel %vm231_vm0, %v6682_v61, 0.0 }
 0x2d6   : > { %2679 = vst.msk [vmem:[#allocation3 + $0xd0] sm:$0xff] %vm231_vm0, %v6683_v48  ;;  %v2736_v30 = vsel %vm231_vm0, %v6683_v48, 0.0  ;;  %v2781_v8 = vmul.f32 %v6683_v48, %v6683_v48  ;;  %v2870_v48 = vld [vmem:[#allocation3 + $0x8] sm:$0xff] }
 0x2d7   : > { %v2737_v4 = vadd.f32 %v2736_v30, %v2735_v11  ;;  %v2840_v50 = vsel %vm231_vm0, %v2782_v26, 0.0  ;;  %v2901_v11 = vlaneseq  ;;  %v2869_v26 = vld [vmem:[#allocation3] sm:$0xff]  ;;  %v2858_v30 = vld [vmem:[%s9967_s3 + $0x2] sm:$0x1] }
 0x2d8   : > { %v2838_v33 = vsel %vm231_vm0, %v2781_v8, 0.0  ;;  %v2872_v8 = vld [vmem:[#allocation3 + $0x18] sm:$0xff] }
 0x2d9   : > { %v2839_v47 = vadd.f32 %v2838_v33, %v2837_v29  ;;  %v2739_v37 = vadd.f32 %v2738_v31, %v2737_v4  ;;  %v2902_v36 = vshrl.u32 %v2901_v11, 7  ;;  %v2871_v4 = vld [vmem:[#allocation3 + $0x10] sm:$0xff]  ;;  %v2874_v31 = vld [vmem:[#allocation3 + $0x28] sm:$0xff] }
 0x2da   : > { %v6460_v39 = vpop.f32.mrb[28].mxu0 }
 0x2db   : > { %v6684_v44 = vadd.f32 %v6460_v39, %v7933_v25  ;;  %v2602_v63 = vpop.f32.mrb[29].mxu0  ;;  %v2841_v14 = vadd.f32 %v2840_v50, %v2839_v47  ;;  %v8066_v61 = vsub.s32 0, %v2902_v36  ;;  %v2876_v50 = vld [vmem:[#allocation3 + $0x38] sm:$0xff] }
 0x2dc   : > { %v6685_v35 = vadd.f32 %v7933_v25, %v2602_v63  ;;  %v2878_v63 = vld [vmem:[#allocation3 + $0x48] sm:$0xff] }
 0x2dd   : > { %2682 = vst.msk [vmem:[#allocation3 + $0xe8] sm:$0xff] %vm231_vm0, %v6684_v44  ;;  %v2784_v58 = vmul.f32 %v6684_v44, %v6684_v44  ;;  %v2742_v59 = vsel %vm231_vm0, %v6684_v44, 0.0  ;;  %10039 = vst [vmem:[#allocation4_spill] sm:$0xff] %v8066_v61  ;;  %v2875_v44 = vld [vmem:[#allocation3 + $0x30] sm:$0xff] }
 0x2de   : > { %2681 = vst.msk [vmem:[#allocation3 + $0xe0] sm:$0xff] %vm231_vm0, %v6685_v35  ;;  %v2740_v2 = vsel %vm231_vm0, %v6685_v35, 0.0  ;;  %v2783_v28 = vmul.f32 %v6685_v35, %v6685_v35 }
 0x2df   : > { %v2741_v9 = vadd.f32 %v2740_v2, %v2739_v37  ;;  %v2844_v16 = vsel %vm231_vm0, %v2784_v58, 0.0  ;;  %v2873_v37 = vld [vmem:[#allocation3 + $0x20] sm:$0xff] }
 0x2e0   : > { %v2842_v42 = vsel %vm231_vm0, %v2783_v28, 0.0 }
 0x2e1   : > { %v2843_v41 = vadd.f32 %v2842_v42, %v2841_v14  ;;  %v2743_v15 = vadd.f32 %v2742_v59, %v2741_v9  ;;  %v2877_v14 = vld [vmem:[#allocation3 + $0x40] sm:$0xff]  ;;  %v2880_v9 = vld [vmem:[#allocation3 + $0x58] sm:$0xff]  ;;  %v2879_v59 = vld [vmem:[#allocation3 + $0x50] sm:$0xff] }
 0x2e2   : > { %v6463_v24 = vpop.f32.mrb[30].mxu0  ;;  %v2882_v42 = vld [vmem:[#allocation3 + $0x68] sm:$0xff] }
 0x2e3   : > { %v6686_v19 = vadd.f32 %v6463_v24, %v7933_v25  ;;  %v2612_v1 = vpop.f32.mrb[31].mxu0  ;;  %v2845_v51 = vadd.f32 %v2844_v16, %v2843_v41 }
 0x2e4   : > { %v6687_v34 = vadd.f32 %v7933_v25, %v2612_v1  ;;  %v2884_v1 = vld [vmem:[#allocation3 + $0x78] sm:$0xff] }
 0x2e5   : > { %2684 = vst.msk [vmem:[#allocation3 + $0xf8] sm:$0xff] %vm231_vm0, %v6686_v19  ;;  %v2786_v46 = vmul.f32 %v6686_v19, %v6686_v19  ;;  %v2746_v45 = vsel %vm231_vm0, %v6686_v19, 0.0  ;;  %v2881_v19 = vld [vmem:[#allocation3 + $0x60] sm:$0xff] }
 0x2e6   : > { %2683 = vst.msk [vmem:[#allocation3 + $0xf0] sm:$0xff] %vm231_vm0, %v6687_v34  ;;  %v2744_v52 = vsel %vm231_vm0, %v6687_v34, 0.0  ;;  %v2785_v12 = vmul.f32 %v6687_v34, %v6687_v34 }
 0x2e7   : > { %v2745_v13 = vadd.f32 %v2744_v52, %v2743_v15  ;;  %v2848_v62 = vsel %vm231_vm0, %v2786_v46, 0.0 }
 0x2e8   : > { %v2846_v7 = vsel %vm231_vm0, %v2785_v12, 0.0 }
 0x2e9   : > { %v2747_v0 = vadd.f32 %v2746_v45, %v2745_v13  ;;  %v2847_v5 = vadd.f32 %v2846_v7, %v2845_v51  ;;  %v2883_v51 = vld [vmem:[#allocation3 + $0x70] sm:$0xff]  ;;  %v2886_v13 = vld [vmem:[#allocation3 + $0x88] sm:$0xff]  ;;  %v2885_v45 = vld [vmem:[#allocation3 + $0x80] sm:$0xff] }
 0x2ea   : > { %v2888_v7 = vld [vmem:[#allocation3 + $0x98] sm:$0xff] }
 0x2eb   : > { %v2748_v27 = vrot.slane %v2747_v0, 4  ;;  %v2849_v54 = vadd.f32 %v2848_v62, %v2847_v5 }
 0x2ed   : > { %v2749_v25 = vadd.f32 %v2748_v27, %v2747_v0  ;;  %v2850_v17 = vrot.slane %v2849_v54, 4  ;;  %v2899_v39 = vld [vmem:[#allocation3 + $0xf0] sm:$0xff] }
 0x2ef   : > { %v2750_v18 = vrot.slane %v2749_v25, 2  ;;  %v2851_v55 = vadd.f32 %v2850_v17, %v2849_v54  ;;  %v2887_v54 = vld [vmem:[#allocation3 + $0x90] sm:$0xff]  ;;  %v2889_v17 = vld [vmem:[#allocation3 + $0xa0] sm:$0xff] }
 0x2f1   : > { %v2751_v56 = vadd.f32 %v2750_v18, %v2749_v25  ;;  %v2852_v20 = vrot.slane %v2851_v55, 2  ;;  %v2890_v25 = vld [vmem:[#allocation3 + $0xa8] sm:$0xff] }
 0x2f3   : > { %v2752_v57 = vrot.slane %v2751_v56, 1  ;;  %v2853_v21 = vadd.f32 %v2852_v20, %v2851_v55 }
 0x2f5   : > { %v2753_v32 = vadd.f32 %v2752_v57, %v2751_v56  ;;  %v2854_v38 = vrot.slane %v2853_v21, 1  ;;  %v2892_v57 = vld [vmem:[#allocation3 + $0xb8] sm:$0xff] }
 0x2f7   : > { %v2855_v10 = vadd.f32 %v2854_v38, %v2853_v21  ;;  %v2859_v60 = vmul.f32 0.00390625, %v2753_v32  ;;  %v2891_v21 = vld [vmem:[#allocation3 + $0xb0] sm:$0xff]  ;;  %v2894_v32 = vld [vmem:[#allocation3 + $0xc8] sm:$0xff] }
 0x2f9   : > { %v2860_v49 = vmul.f32 0.00390625, %v2855_v10  ;;  %v2861_v6 = vmul.f32 %v2859_v60, %v2859_v60 }
 0x2fb   : > { %v2862_v22 = vsub.f32 %v2860_v49, %v2861_v6  ;;  %v2893_v6 = vld [vmem:[#allocation3 + $0xc0] sm:$0xff] }
 0x2fd   : > { %v2863_v40 = vmax.f32 %v2862_v22, 0.0  ;;  %v2896_v22 = vld [vmem:[#allocation3 + $0xd8] sm:$0xff] }
 0x2ff   : > { %v2864_v23 = vadd.f32 1e-05, %v2863_v40  ;;  %v2895_v40 = vld [vmem:[#allocation3 + $0xd0] sm:$0xff] }
 0x301   : > { %6859 = vrsqrt.f32 %v2864_v23 }
 0x30b   : > { %v6860_v43 = vpop.eup %6859 }
 0x30c   : > { %v2866_v29 = vmul.f32 %v6860_v43, %v2857_v53  ;;  %v2898_v43 = vld [vmem:[#allocation3 + $0xe8] sm:$0xff] }
 0x30e   : > { %v2867_v33 = vmul.f32 %v2866_v29, %v2859_v60  ;;  %v8072_v47 = vrot.slane %v2866_v29, %v8066_v61  ;;  %v2897_v29 = vld [vmem:[#allocation3 + $0xe0] sm:$0xff] }
 0x310   : > { %v2868_v35 = vsub.f32 %v2858_v30, %v2867_v33  ;;  %v2935_v58 = vmul.f32 %v8072_v47, %v2899_v39  ;;  %v2905_v2 = vmul.f32 %v8072_v47, %v2869_v26  ;;  %v2906_v28 = vmul.f32 %v8072_v47, %v2870_v48  ;;  %v2900_v48 = vld [vmem:[#allocation3 + $0xf8] sm:$0xff] }
 0x311   : > { %v2907_v41 = vmul.f32 %v8072_v47, %v2871_v4  ;;  %v2908_v15 = vmul.f32 %v8072_v47, %v2872_v8  ;;  %v2909_v16 = vmul.f32 %v8072_v47, %v2873_v37  ;;  %v2910_v24 = vmul.f32 %v8072_v47, %v2874_v31 }
 0x312   : > { %v8082_v34 = vrot.slane %v2868_v35, %v8066_v61  ;;  %v2911_v46 = vmul.f32 %v8072_v47, %v2875_v44  ;;  %v2912_v52 = vmul.f32 %v8072_v47, %v2876_v50  ;;  %v2913_v12 = vmul.f32 %v8072_v47, %v2877_v14 }
 0x313   : > { %v2914_v0 = vmul.f32 %v8072_v47, %v2878_v63  ;;  %v2915_v5 = vmul.f32 %v8072_v47, %v2879_v59  ;;  %v2916_v62 = vmul.f32 %v8072_v47, %v2880_v9  ;;  %v2917_v27 = vmul.f32 %v8072_v47, %v2881_v19 }
 0x314   : > { %v2971_v18 = vadd.f32 %v8082_v34, %v2935_v58  ;;  %v2918_v55 = vmul.f32 %v8072_v47, %v2882_v42  ;;  %v2919_v56 = vmul.f32 %v8072_v47, %v2883_v51  ;;  %v2920_v20 = vmul.f32 %v8072_v47, %v2884_v1 }
 0x315   : > { %v2921_v38 = vmul.f32 %v8072_v47, %v2885_v45  ;;  %v2922_v10 = vmul.f32 %v8072_v47, %v2886_v13  ;;  %v2923_v60 = vmul.f32 %v8072_v47, %v2887_v54  ;;  %v2924_v49 = vmul.f32 %v8072_v47, %v2888_v7 }
 0x316   : > { %v3003_v23 = vmax.f32 %v2971_v18, 0.0  ;;  %v2925_v11 = vmul.f32 %v8072_v47, %v2889_v17  ;;  %v2926_v36 = vmul.f32 %v8072_v47, %v2890_v25  ;;  %v2927_v53 = vmul.f32 %v8072_v47, %v2891_v21 }
 0x317   : > { %v2928_v26 = vmul.f32 %v8072_v47, %v2892_v57  ;;  %v2929_v30 = vmul.f32 %v8072_v47, %v2893_v6  ;;  %v2930_v8 = vmul.f32 %v8072_v47, %v2894_v32  ;;  %v2931_v4 = vmul.f32 %v8072_v47, %v2895_v40 }
 0x318   : > { %v2932_v31 = vmul.f32 %v8072_v47, %v2896_v22  ;;  %v2933_v33 = vmul.f32 %v8072_v47, %v2897_v29  ;;  %v2934_v37 = vmul.f32 %v8072_v47, %v2898_v43  ;;  %v2936_v50 = vmul.f32 %v8072_v47, %v2900_v48  ;;  %3035 = vst.msk [vmem:[#allocation2 + $0x181] sm:$0xff] %vm231_vm0, %v3003_v23 }
 0x319   : > { %v2942_v39 = vadd.f32 %v8082_v34, %v2906_v28  ;;  %v2941_v44 = vadd.f32 %v8082_v34, %v2905_v2  ;;  %v2943_v63 = vadd.f32 %v8082_v34, %v2907_v41  ;;  %v2944_v14 = vadd.f32 %v8082_v34, %v2908_v15 }
 0x31a   : > { %v2945_v35 = vadd.f32 %v8082_v34, %v2909_v16  ;;  %v2946_v58 = vadd.f32 %v8082_v34, %v2910_v24  ;;  %v2947_v9 = vadd.f32 %v8082_v34, %v2911_v46  ;;  %v2948_v59 = vadd.f32 %v8082_v34, %v2912_v52 }
 0x31b   : > { %v2974_v42 = vmax.f32 %v2942_v39, 0.0  ;;  %v2949_v47 = vadd.f32 %v8082_v34, %v2913_v12  ;;  %v2950_v19 = vadd.f32 %v8082_v34, %v2914_v0  ;;  %v2951_v28 = vadd.f32 %v8082_v34, %v2915_v5 }
 0x31c   : > { %v2952_v2 = vadd.f32 %v8082_v34, %v2916_v62  ;;  %v2953_v41 = vadd.f32 %v8082_v34, %v2917_v27  ;;  %v2954_v15 = vadd.f32 %v8082_v34, %v2918_v55  ;;  %v2955_v16 = vadd.f32 %v8082_v34, %v2919_v56 }
 0x31d   : > { %3006 = vst.msk [vmem:[#allocation2 + $0x21] sm:$0xff] %vm231_vm0, %v2974_v42  ;;  %v2956_v24 = vadd.f32 %v8082_v34, %v2920_v20  ;;  %v2957_v1 = vadd.f32 %v8082_v34, %v2921_v38  ;;  %v8130_v51 = vadd.f32 %v8082_v34, %v2922_v10  ;;  %v8133_v46 = vadd.f32 %v8082_v34, %v2923_v60 }
 0x31e   : > { %v8136_v52 = vadd.f32 %v8082_v34, %v2924_v49  ;;  %v8139_v12 = vadd.f32 %v8082_v34, %v2925_v11  ;;  %v8142_v13 = vadd.f32 %v8082_v34, %v2926_v36  ;;  %v8145_v45 = vadd.f32 %v8082_v34, %v2927_v53 }
 0x31f   : > { %v8148_v7 = vadd.f32 %v8082_v34, %v2928_v26  ;;  %v8151_v0 = vadd.f32 %v8082_v34, %v2929_v30  ;;  %v8154_v5 = vadd.f32 %v8082_v34, %v2930_v8  ;;  %v8157_v62 = vadd.f32 %v8082_v34, %v2931_v4  ;;  %v3052_v27 = vld [vmem:[#allocation2 + $0x182] sm:$0x1] }
 0x320   : > { %v8160_v54 = vadd.f32 %v8082_v34, %v2932_v31  ;;  %v8163_v25 = vadd.f32 %v8082_v34, %v2933_v33  ;;  %v8166_v17 = vadd.f32 %v8082_v34, %v2934_v37  ;;  %v8169_v18 = vadd.f32 %v8082_v34, %v2936_v50  ;;  %3068 = vst.msk [vmem:[#allocation2 + $0x180] sm:$0x1] %vm280_vm1, %v3052_v27 }
 0x321   : > { %v2973_v55 = vmax.f32 %v2941_v44, 0.0  ;;  %v2975_v56 = vmax.f32 %v2943_v63, 0.0  ;;  %v2976_v20 = vmax.f32 %v2944_v14, 0.0  ;;  %v2977_v57 = vmax.f32 %v2945_v35, 0.0 }
 0x322   : > { %v2978_v21 = vmax.f32 %v2946_v58, 0.0  ;;  %v2979_v32 = vmax.f32 %v2947_v9, 0.0  ;;  %v2980_v38 = vmax.f32 %v2948_v59, 0.0  ;;  %v2981_v10 = vmax.f32 %v2949_v47, 0.0 }
 0x323   : > { %3005 = vst.msk [vmem:[#allocation2 + $0x19] sm:$0xff] %vm231_vm0, %v2973_v55  ;;  %v2982_v60 = vmax.f32 %v2950_v19, 0.0  ;;  %v2983_v49 = vmax.f32 %v2951_v28, 0.0  ;;  %v2984_v6 = vmax.f32 %v2952_v2, 0.0  ;;  %v2985_v22 = vmax.f32 %v2953_v41, 0.0  ;;  %3008 = vst.msk [vmem:[#allocation2 + $0x39] sm:$0xff] %vm231_vm0, %v2976_v20 }
 0x324   : > { %3007 = vst.msk [vmem:[#allocation2 + $0x31] sm:$0xff] %vm231_vm0, %v2975_v56  ;;  %3009 = vst.msk [vmem:[#allocation2 + $0x49] sm:$0xff] %vm231_vm0, %v2977_v57  ;;  %v8176_v34 = vld [vmem:[#allocation2 + $0x21] sm:$0xff]  ;;  %v2986_v40 = vmax.f32 %v2954_v15, 0.0  ;;  %v2987_v23 = vmax.f32 %v2955_v16, 0.0  ;;  %v2988_v11 = vmax.f32 %v2956_v24, 0.0 }
 0x325   : > { %v2989_v36 = vmax.f32 %v2957_v1, 0.0  ;;  %3010 = vst.msk [vmem:[#allocation2 + $0x51] sm:$0xff] %vm231_vm0, %v2978_v21  ;;  %3011 = vst.msk [vmem:[#allocation2 + $0x61] sm:$0xff] %vm231_vm0, %v2979_v32  ;;  %3248 = vrot.lane.b32.xlu1 %v8176_v34, %s6871_s21  ;;  %v2990_v53 = vmax.f32 %v8130_v51, 0.0  ;;  %v2991_v43 = vmax.f32 %v8133_v46, 0.0  ;;  %v2992_v29 = vmax.f32 %v8136_v52, 0.0 }
 0x326   : > { %3012 = vst.msk [vmem:[#allocation2 + $0x69] sm:$0xff] %vm231_vm0, %v2980_v38  ;;  %3013 = vst.msk [vmem:[#allocation2 + $0x79] sm:$0xff] %vm231_vm0, %v2981_v10  ;;  %v2993_v48 = vmax.f32 %v8139_v12, 0.0  ;;  %v3069_v26 = vld [vmem:[#allocation2 + $0x27] sm:$0x1]  ;;  %v2994_v30 = vmax.f32 %v8142_v13, 0.0 }
 0x327   : > { %3014 = vst.msk [vmem:[#allocation2 + $0x81] sm:$0xff] %vm231_vm0, %v2982_v60  ;;  %3015 = vst.msk [vmem:[#allocation2 + $0x91] sm:$0xff] %vm231_vm0, %v2983_v49  ;;  %v2995_v8 = vmax.f32 %v8145_v45, 0.0  ;;  %v2996_v4 = vmax.f32 %v8148_v7, 0.0  ;;  %v2997_v31 = vmax.f32 %v8151_v0, 0.0  ;;  %v2998_v33 = vmax.f32 %v8154_v5, 0.0 }
 0x328   : > { %3016 = vst.msk [vmem:[#allocation2 + $0x99] sm:$0xff] %vm231_vm0, %v2984_v6  ;;  %3017 = vst.msk [vmem:[#allocation2 + $0xa9] sm:$0xff] %vm231_vm0, %v2985_v22  ;;  %v2999_v37 = vmax.f32 %v8157_v62, 0.0  ;;  %v3000_v50 = vmax.f32 %v8160_v54, 0.0  ;;  %v3001_v39 = vmax.f32 %v8163_v25, 0.0  ;;  %v3002_v44 = vmax.f32 %v8166_v17, 0.0 }
 0x329   : > { %3018 = vst.msk [vmem:[#allocation2 + $0xb1] sm:$0xff] %vm231_vm0, %v2986_v40  ;;  %3019 = vst.msk [vmem:[#allocation2 + $0xc1] sm:$0xff] %vm231_vm0, %v2987_v23  ;;  %v3004_v63 = vmax.f32 %v8169_v18, 0.0 }
 0x32a   : > { %3020 = vst.msk [vmem:[#allocation2 + $0xc9] sm:$0xff] %vm231_vm0, %v2988_v11  ;;  %3021 = vst.msk [vmem:[#allocation2 + $0xd9] sm:$0xff] %vm231_vm0, %v2989_v36  ;;  %v8219_v14 = vld [vmem:[#allocation2 + $0x19] sm:$0xff] }
 0x32b   : > { %3085 = vst.msk [vmem:[#allocation2 + $0x29] sm:$0x1] %vm280_vm1, %v3069_v26  ;;  %v8221_v35 = vld [vmem:[#allocation2 + $0x39] sm:$0xff]  ;;  %3246 = vrot.lane.b32.xlu0 %v8219_v14, %s6871_s21  ;;  %v8237_v59 = vld [vmem:[#allocation2 + $0x31] sm:$0xff]  ;;  %v8254_v15 = vld [vmem:[#allocation2 + $0x49] sm:$0xff] }
 0x32c   : > { %3022 = vst.msk [vmem:[#allocation2 + $0xe1] sm:$0xff] %vm231_vm0, %v2990_v53  ;;  %3023 = vst.msk [vmem:[#allocation2 + $0xf1] sm:$0xff] %vm231_vm0, %v2991_v43  ;;  %3252 = vrot.lane.b32.xlu1 %v8221_v35, %s6871_s21  ;;  %v8229_v58 = vld [vmem:[#allocation2 + $0x1a] sm:$0xff]  ;;  %v8231_v9 = vld [vmem:[#allocation2 + $0x51] sm:$0xff] }
 0x32d   : > { %3024 = vst.msk [vmem:[#allocation2 + $0xf9] sm:$0xff] %vm231_vm0, %v2992_v29  ;;  %3025 = vst.msk [vmem:[#allocation2 + $0x109] sm:$0xff] %vm231_vm0, %v2993_v48  ;;  %v8239_v42 = vld [vmem:[#allocation2 + $0x69] sm:$0xff]  ;;  %v8245_v47 = vld [vmem:[#allocation2 + $0x32] sm:$0xff] }
 0x32e   : > { %3026 = vst.msk [vmem:[#allocation2 + $0x111] sm:$0xff] %vm231_vm0, %v2994_v30  ;;  %3027 = vst.msk [vmem:[#allocation2 + $0x121] sm:$0xff] %vm231_vm0, %v2995_v8  ;;  %v8247_v19 = vld [vmem:[#allocation2 + $0x81] sm:$0xff]  ;;  %v3070_v28 = vld [vmem:[#allocation2 + $0x3f] sm:$0x1] }
 0x32f   : > { %3028 = vst.msk [vmem:[#allocation2 + $0x129] sm:$0xff] %vm231_vm0, %v2996_v4  ;;  %3029 = vst.msk [vmem:[#allocation2 + $0x139] sm:$0xff] %vm231_vm0, %v2997_v31  ;;  %3374 = vrot.lane.b32.xlu0 %v8229_v58, %s6872_s22  ;;  %v3071_v2 = vld [vmem:[#allocation2 + $0x57] sm:$0x1]  ;;  %v3072_v41 = vld [vmem:[#allocation2 + $0x6f] sm:$0x1] }
 0x330   : > { %3030 = vst.msk [vmem:[#allocation2 + $0x141] sm:$0xff] %vm231_vm0, %v2998_v33  ;;  %3031 = vst.msk [vmem:[#allocation2 + $0x151] sm:$0xff] %vm231_vm0, %v2999_v37  ;;  %3256 = vrot.lane.b32.xlu1 %v8231_v9, %s6871_s21  ;;  %v3073_v16 = vld [vmem:[#allocation2 + $0x87] sm:$0x1]  ;;  %v8258_v24 = vld [vmem:[#allocation2 + $0x99] sm:$0xff] }
 0x331   : > { %3032 = vst.msk [vmem:[#allocation2 + $0x159] sm:$0xff] %vm231_vm0, %v3000_v50  ;;  %3033 = vst.msk [vmem:[#allocation2 + $0x169] sm:$0xff] %vm231_vm0, %v3001_v39  ;;  %v3037_v1 = vld [vmem:[#allocation2 + $0x1a] sm:$0x1]  ;;  %v3074_v51 = vld [vmem:[#allocation2 + $0x9f] sm:$0x1] }
 0x332   : > { %3034 = vst.msk [vmem:[#allocation2 + $0x171] sm:$0xff] %vm231_vm0, %v3002_v44  ;;  %3036 = vst.msk [vmem:[#allocation2 + $0x189] sm:$0xff] %vm231_vm0, %v3004_v63  ;;  %v8267_v46 = vld [vmem:[#allocation2 + $0x38] sm:$0xff]  ;;  %v3075_v52 = vld [vmem:[#allocation2 + $0xb7] sm:$0x1] }
 0x333   : > { %3250 = vrot.lane.b32.xlu0 %v8237_v59, %s6871_s21  ;;  %3086 = vst.msk [vmem:[#allocation2 + $0x41] sm:$0x1] %vm280_vm1, %v3070_v28  ;;  %3087 = vst.msk [vmem:[#allocation2 + $0x59] sm:$0x1] %vm280_vm1, %v3071_v2  ;;  %v3038_v12 = vld [vmem:[#allocation2 + $0x32] sm:$0x1] }
 0x334   : > { %3260 = vrot.lane.b32.xlu1 %v8239_v42, %s6871_s21  ;;  %3088 = vst.msk [vmem:[#allocation2 + $0x71] sm:$0x1] %vm280_vm1, %v3072_v41  ;;  %3089 = vst.msk [vmem:[#allocation2 + $0x89] sm:$0x1] %vm280_vm1, %v3073_v16  ;;  %v3076_v13 = vld [vmem:[#allocation2 + $0xcf] sm:$0x1] }
 0x335   : > { %3053 = vst.msk [vmem:[#allocation2 + $0x18] sm:$0x1] %vm280_vm1, %v3037_v1  ;;  %3090 = vst.msk [vmem:[#allocation2 + $0xa1] sm:$0x1] %vm280_vm1, %v3074_v51  ;;  %v8272_v45 = vld [vmem:[#allocation2 + $0x4a] sm:$0xff]  ;;  %v8287_v17 = vld [vmem:[#allocation2 + $0x61] sm:$0xff] }
 0x336   : > { %3091 = vst.msk [vmem:[#allocation2 + $0xb9] sm:$0x1] %vm280_vm1, %v3075_v52  ;;  %3054 = vst.msk [vmem:[#allocation2 + $0x30] sm:$0x1] %vm280_vm1, %v3038_v12  ;;  %v3077_v7 = vld [vmem:[#allocation2 + $0xe7] sm:$0x1] }
 0x337   : > { %3378 = vrot.lane.b32.xlu0 %v8245_v47, %s6872_s22  ;;  %3105 = vst.msk [vmem:[#allocation2 + $0x8] sm:$0xff] %vm231_vm0, %v8267_v46  ;;  %v8276_v0 = vld [vmem:[#allocation2 + $0xb1] sm:$0xff]  ;;  %v3039_v5 = vld [vmem:[#allocation2 + $0x4a] sm:$0x1]  ;;  %v3078_v62 = vld [vmem:[#allocation2 + $0xff] sm:$0x1] }
 0x338   : > { %3264 = vrot.lane.b32.xlu1 %v8247_v19, %s6871_s21  ;;  %3092 = vst.msk [vmem:[#allocation2 + $0xd1] sm:$0x1] %vm280_vm1, %v3076_v13  ;;  %3093 = vst.msk [vmem:[#allocation2 + $0xe9] sm:$0x1] %vm280_vm1, %v3077_v7  ;;  %v3079_v27 = vld [vmem:[#allocation2 + $0x117] sm:$0x1] }
 0x339   : > { %3055 = vst.msk [vmem:[#allocation2 + $0x48] sm:$0x1] %vm280_vm1, %v3039_v5  ;;  %3094 = vst.msk [vmem:[#allocation2 + $0x101] sm:$0x1] %vm280_vm1, %v3078_v62  ;;  %v3040_v54 = vld [vmem:[#allocation2 + $0x62] sm:$0x1] }
 0x33a   : > { %3095 = vst.msk [vmem:[#allocation2 + $0x119] sm:$0x1] %vm280_vm1, %v3079_v27  ;;  %3056 = vst.msk [vmem:[#allocation2 + $0x60] sm:$0x1] %vm280_vm1, %v3040_v54  ;;  %v3080_v25 = vld [vmem:[#allocation2 + $0x12f] sm:$0x1] }
 0x33b   : > { %3254 = vrot.lane.b32.xlu0 %v8254_v15, %s6871_s21  ;;  %v8289_v18 = vld [vmem:[#allocation2 + $0xc9] sm:$0xff]  ;;  %3096 = vst.msk [vmem:[#allocation2 + $0x131] sm:$0x1] %vm280_vm1, %v3080_v25  ;;  %v3081_v55 = vld [vmem:[#allocation2 + $0x147] sm:$0x1]  ;;  %v8313_v49 = vld [vmem:[#allocation2 + $0x79] sm:$0xff] }
 0x33c   : > { %3268 = vrot.lane.b32.xlu1 %v8258_v24, %s6871_s21  ;;  %3097 = vst.msk [vmem:[#allocation2 + $0x149] sm:$0x1] %vm280_vm1, %v3081_v55  ;;  %v3041_v56 = vld [vmem:[#allocation2 + $0x7a] sm:$0x1]  ;;  %v3082_v57 = vld [vmem:[#allocation2 + $0x15f] sm:$0x1] }
 0x33d   : > { %v8297_v20 = vld [vmem:[#allocation2 + $0x30] sm:$0xff]  ;;  %3057 = vst.msk [vmem:[#allocation2 + $0x78] sm:$0x1] %vm280_vm1, %v3041_v56  ;;  %3098 = vst.msk [vmem:[#allocation2 + $0x161] sm:$0x1] %vm280_vm1, %v3082_v57  ;;  %v8303_v32 = vld [vmem:[#allocation2 + $0x62] sm:$0xff] }
 0x33e   : > { %v3083_v21 = vld [vmem:[#allocation2 + $0x177] sm:$0x1]  ;;  %3104 = vst.msk [vmem:[#allocation2] sm:$0xff] %vm231_vm0, %v8297_v20  ;;  %v8305_v38 = vld [vmem:[#allocation2 + $0xe1] sm:$0xff]  ;;  %v3042_v10 = vld [vmem:[#allocation2 + $0x92] sm:$0x1] }
 0x33f   : > { %3382 = vrot.lane.b32.xlu0 %v8272_v45, %s6872_s22  ;;  %3099 = vst.msk [vmem:[#allocation2 + $0x179] sm:$0x1] %vm280_vm1, %v3083_v21  ;;  %3058 = vst.msk [vmem:[#allocation2 + $0x90] sm:$0x1] %vm280_vm1, %v3042_v10  ;;  %v3043_v60 = vld [vmem:[#allocation2 + $0xaa] sm:$0x1] }
 0x340   : > { %3272 = vrot.lane.b32.xlu1 %v8276_v0, %s6871_s21  ;;  %3059 = vst.msk [vmem:[#allocation2 + $0xa8] sm:$0x1] %vm280_vm1, %v3043_v60  ;;  %v8316_v6 = vld [vmem:[#allocation2 + $0xf9] sm:$0xff]  ;;  %v3044_v22 = vld [vmem:[#allocation2 + $0xc2] sm:$0x1]  ;;  %v8328_v53 = vld [vmem:[#allocation2 + $0x111] sm:$0xff] }
 0x341   : > { %v3045_v40 = vld [vmem:[#allocation2 + $0xda] sm:$0x1]  ;;  %3060 = vst.msk [vmem:[#allocation2 + $0xc0] sm:$0x1] %vm280_vm1, %v3044_v22  ;;  %v3046_v23 = vld [vmem:[#allocation2 + $0xf2] sm:$0x1] }
 0x342   : > { %3061 = vst.msk [vmem:[#allocation2 + $0xd8] sm:$0x1] %vm280_vm1, %v3045_v40  ;;  %v3103_v11 = vld [vmem:[#allocation2 + $0x40] sm:$0x3]  ;;  %3062 = vst.msk [vmem:[#allocation2 + $0xf0] sm:$0x1] %vm280_vm1, %v3046_v23 }
 0x343   : > { %3258 = vrot.lane.b32.xlu0 %v8287_v17, %s6871_s21  ;;  %v8324_v36 = vld [vmem:[#allocation2 + $0x7a] sm:$0xff]  ;;  %3106 = vst.msk [vmem:[#allocation2 + $0x10] sm:$0x3] %vm335_vm2, %v3103_v11  ;;  %v3047_v43 = vld [vmem:[#allocation2 + $0x10a] sm:$0x1]  ;;  %v8340_v4 = vld [vmem:[#allocation2 + $0x91] sm:$0xff] }
 0x344   : > { %3276 = vrot.lane.b32.xlu1 %v8289_v18, %s6871_s21  ;;  %v3048_v29 = vld [vmem:[#allocation2 + $0x122] sm:$0x1]  ;;  %3063 = vst.msk [vmem:[#allocation2 + $0x108] sm:$0x1] %vm280_vm1, %v3047_v43  ;;  %v3049_v48 = vld [vmem:[#allocation2 + $0x13a] sm:$0x1] }
 0x345   : > { %3064 = vst.msk [vmem:[#allocation2 + $0x120] sm:$0x1] %vm280_vm1, %v3048_v29  ;;  %v3050_v26 = vld [vmem:[#allocation2 + $0x152] sm:$0x1]  ;;  %v3051_v30 = vld [vmem:[#allocation2 + $0x16a] sm:$0x1] }
 0x346   : > { %3065 = vst.msk [vmem:[#allocation2 + $0x138] sm:$0x1] %vm280_vm1, %v3049_v48  ;;  %3066 = vst.msk [vmem:[#allocation2 + $0x150] sm:$0x1] %vm280_vm1, %v3050_v26  ;;  %v3084_v8 = vld [vmem:[#allocation2 + $0x18f] sm:$0x1] }
 0x347   : > { %3386 = vrot.lane.b32.xlu0 %v8303_v32, %s6872_s22  ;;  %3067 = vst.msk [vmem:[#allocation2 + $0x168] sm:$0x1] %vm280_vm1, %v3051_v30  ;;  %3100 = vst.msk [vmem:[#allocation2 + $0x191] sm:$0x1] %vm280_vm1, %v3084_v8  ;;  %v8342_v31 = vld [vmem:[#allocation2 + $0x129] sm:$0xff]  ;;  %v8348_v33 = vld [vmem:[#allocation2 + $0x92] sm:$0xff] }
 0x348   : > { %3280 = vrot.lane.b32.xlu1 %v8305_v38, %s6871_s21  ;;  %v8350_v37 = vld [vmem:[#allocation2 + $0x141] sm:$0xff]  ;;  %v8360_v39 = vld [vmem:[#allocation2 + $0xa9] sm:$0xff]  ;;  %v8362_v44 = vld [vmem:[#allocation2 + $0x159] sm:$0xff] }
 0x349   : > { %v8368_v63 = vld [vmem:[#allocation2 + $0xaa] sm:$0xff]  ;;  %v8376_v2 = vld [vmem:[#allocation2 + $0xc1] sm:$0xff]  ;;  %v3109_v16 = vld [vmem:[#allocation2 + $0x178] sm:$0x3] }
 0x34a   : > { %v8370_v28 = vld [vmem:[#allocation2 + $0x171] sm:$0xff]  ;;  %3112 = vst.msk [vmem:[#allocation2 + $0x1a8] sm:$0x3] %vm335_vm2, %v3109_v16  ;;  %v8387_v1 = vld [vmem:[#allocation2 + $0xc2] sm:$0xff]  ;;  %v8393_v51 = vld [vmem:[#allocation2 + $0xd9] sm:$0xff] }
 0x34b   : > { %3262 = vrot.lane.b32.xlu0 %v8313_v49, %s6871_s21  ;;  %v8382_v41 = vld [vmem:[#allocation2 + $0x170] sm:$0xff]  ;;  %v8437_v12 = vld [vmem:[#allocation2 + $0x22] sm:$0xff]  ;;  %v8443_v13 = vld [vmem:[#allocation2 + $0x139] sm:$0xff] }
 0x34c   : > { %3284 = vrot.lane.b32.xlu1 %v8316_v6, %s6871_s21  ;;  %10041 = vst [vmem:[#allocation6_spill] sm:$0xff] %v8382_v41  ;;  %3111 = vst.msk [vmem:[#allocation2 + $0x1a0] sm:$0xff] %vm231_vm0, %v8382_v41  ;;  %v8405_v52 = vld [vmem:[#allocation2 + $0xf1] sm:$0xff]  ;;  %v8445_v7 = vld [vmem:[#allocation2 + $0x3a] sm:$0xff] }
 0x34d   : > { %v8453_v5 = vld [vmem:[#allocation2 + $0x52] sm:$0xff]  ;;  %v8461_v27 = vld [vmem:[#allocation2 + $0x6a] sm:$0xff]  ;;  %v8469_v25 = vld [vmem:[#allocation2 + $0x82] sm:$0xff] }
 0x34e   : > { %v8352_v50 = vld [vmem:[#allocation2 + $0x168] sm:$0xff]  ;;  %v8459_v62 = vld [vmem:[#allocation2 + $0x151] sm:$0xff]  ;;  %v8479_v56 = vld [vmem:[#allocation2 + $0x9a] sm:$0xff] }
 0x34f   : > { %3390 = vrot.lane.b32.xlu0 %v8324_v36, %s6872_s22  ;;  %10040 = vst [vmem:[#allocation5_spill] sm:$0xff] %v8352_v50  ;;  %3110 = vst.msk [vmem:[#allocation2 + $0x198] sm:$0xff] %vm231_vm0, %v8352_v50  ;;  %v8467_v54 = vld [vmem:[#allocation2 + $0x152] sm:$0xff]  ;;  %v8477_v55 = vld [vmem:[#allocation2 + $0x169] sm:$0xff] }
 0x350   : > { %3288 = vrot.lane.b32.xlu1 %v8328_v53, %s6871_s21  ;;  %v8491_v10 = vld [vmem:[#allocation2 + $0xb2] sm:$0xff]  ;;  %v8501_v40 = vld [vmem:[#allocation2 + $0xca] sm:$0xff]  ;;  %v8511_v43 = vld [vmem:[#allocation2 + $0xe2] sm:$0xff] }
 0x351   : > { %v8541_v61 = vld [vmem:[#allocation2 + $0x12a] sm:$0xff] }
 0x353   : > { %3266 = vrot.lane.b32.xlu0 %v8340_v4, %s6871_s21  ;;  %v4730_v3 = vld [vmem:[#allocation2 + $0x1a2] sm:$0xff] }
 0x354   : > { %3292 = vrot.lane.b32.xlu1 %v8342_v31, %s6871_s21 }
 0x357   : > { %3394 = vrot.lane.b32.xlu0 %v8348_v33, %s6872_s22 }
 0x358   : > { %3296 = vrot.lane.b32.xlu1 %v8350_v37, %s6871_s21 }
 0x35b   : > { %3270 = vrot.lane.b32.xlu0 %v8360_v39, %s6871_s21 }
 0x35c   : > { %3300 = vrot.lane.b32.xlu1 %v8362_v44, %s6871_s21 }
 0x35f   : > { %3398 = vrot.lane.b32.xlu0 %v8368_v63, %s6872_s22 }
 0x360   : > { %3304 = vrot.lane.b32.xlu1 %v8370_v28, %s6871_s21 }
 0x363   : > { %3274 = vrot.lane.b32.xlu0 %v8376_v2, %s6871_s21 }
 0x364   : > { %3990 = vrot.lane.b32.xlu1 %v8176_v34, %s6871_s21  ;;  %v8399_v34 = vld [vmem:[#allocation2 + $0xda] sm:$0xff] }
 0x367   : > { %3402 = vrot.lane.b32.xlu0 %v8387_v1, %s6872_s22 }
 0x368   : > { %3994 = vrot.lane.b32.xlu1 %v8221_v35, %s6871_s21  ;;  %v8411_v35 = vld [vmem:[#allocation2 + $0xf2] sm:$0xff] }
 0x36b   : > { %3278 = vrot.lane.b32.xlu0 %v8393_v51, %s6871_s21 }
 0x36c   : > { %3998 = vrot.lane.b32.xlu1 %v8231_v9, %s6871_s21  ;;  %v8417_v9 = vld [vmem:[#allocation2 + $0x109] sm:$0xff] }
 0x36f   : > { %3406 = vrot.lane.b32.xlu0 %v8399_v34, %s6872_s22 }
 0x370   : > { %4002 = vrot.lane.b32.xlu1 %v8239_v42, %s6871_s21  ;;  %v8423_v42 = vld [vmem:[#allocation2 + $0x10a] sm:$0xff] }
 0x373   : > { %3282 = vrot.lane.b32.xlu0 %v8405_v52, %s6871_s21 }
 0x374   : > { %4006 = vrot.lane.b32.xlu1 %v8247_v19, %s6871_s21  ;;  %v8429_v19 = vld [vmem:[#allocation2 + $0x121] sm:$0xff] }
 0x377   : > { %3410 = vrot.lane.b32.xlu0 %v8411_v35, %s6872_s22 }
 0x378   : > { %4010 = vrot.lane.b32.xlu1 %v8258_v24, %s6871_s21  ;;  %v8435_v24 = vld [vmem:[#allocation2 + $0x122] sm:$0xff] }
 0x37b   : > { %3286 = vrot.lane.b32.xlu0 %v8417_v9, %s6871_s21 }
 0x37c   : > { %4014 = vrot.lane.b32.xlu1 %v8276_v0, %s6871_s21  ;;  %v8451_v0 = vld [vmem:[#allocation2 + $0x13a] sm:$0xff] }
 0x37f   : > { %3414 = vrot.lane.b32.xlu0 %v8423_v42, %s6872_s22 }
 0x380   : > { %4018 = vrot.lane.b32.xlu1 %v8289_v18, %s6871_s21 }
 0x383   : > { %3290 = vrot.lane.b32.xlu0 %v8429_v19, %s6871_s21 }
 0x384   : > { %4022 = vrot.lane.b32.xlu1 %v8305_v38, %s6871_s21  ;;  %v8489_v38 = vld [vmem:[#allocation2 + $0x16a] sm:$0xff] }
 0x387   : > { %3418 = vrot.lane.b32.xlu0 %v8435_v24, %s6872_s22 }
 0x388   : > { %3376 = vrot.lane.b32.xlu1 %v8437_v12, %s6872_s22 }
 0x38b   : > { %3294 = vrot.lane.b32.xlu0 %v8443_v13, %s6871_s21 }
 0x38c   : > { %3380 = vrot.lane.b32.xlu1 %v8445_v7, %s6872_s22 }
 0x38f   : > { %3422 = vrot.lane.b32.xlu0 %v8451_v0, %s6872_s22 }
 0x390   : > { %3384 = vrot.lane.b32.xlu1 %v8453_v5, %s6872_s22 }
 0x393   : > { %3298 = vrot.lane.b32.xlu0 %v8459_v62, %s6871_s21 }
 0x394   : > { %3388 = vrot.lane.b32.xlu1 %v8461_v27, %s6872_s22 }
 0x397   : > { %3426 = vrot.lane.b32.xlu0 %v8467_v54, %s6872_s22  ;;  %v8475_v18 = vpop.permute.xlu1 %3248 }
 0x398   : > { %3392 = vrot.lane.b32.xlu1 %v8469_v25, %s6872_s22 }
 0x39b   : > { %3302 = vrot.lane.b32.xlu0 %v8477_v55, %s6871_s21 }
 0x39c   : > { %3396 = vrot.lane.b32.xlu1 %v8479_v56, %s6872_s22 }
 0x39d   : > { %v8485_v57 = vpop.permute.xlu0 %3246 }
 0x39e   : > { %v8487_v21 = vpop.permute.xlu1 %3252 }
 0x39f   : > { %3430 = vrot.lane.b32.xlu0 %v8489_v38, %s6872_s22 }
 0x3a0   : > { %3400 = vrot.lane.b32.xlu1 %v8491_v10, %s6872_s22 }
 0x3a1   : > { %v8497_v60 = vpop.permute.xlu0 %3374 }
 0x3a2   : > { %v8499_v22 = vpop.permute.xlu1 %3256 }
 0x3a3   : > { %3988 = vrot.lane.b32.xlu0 %v8219_v14, %s6871_s21  ;;  %v8521_v14 = vld [vmem:[#allocation2 + $0xfa] sm:$0xff] }
 0x3a4   : > { %3404 = vrot.lane.b32.xlu1 %v8501_v40, %s6872_s22 }
 0x3a5   : > { %v8507_v23 = vpop.permute.xlu0 %3250 }
 0x3a6   : > { %v8509_v11 = vpop.permute.xlu1 %3260 }
 0x3a7   : > { %10042 = vst [vmem:[#allocation7_spill] sm:$0xff] %v8509_v11  ;;  %4116 = vrot.lane.b32.xlu0 %v8229_v58, %s6872_s22  ;;  %v8531_v58 = vld [vmem:[#allocation2 + $0x112] sm:$0xff]  ;;  %v8561_v11 = vld [vmem:[#allocation2 + $0x15a] sm:$0xff] }
 0x3a8   : > { %3408 = vrot.lane.b32.xlu1 %v8511_v43, %s6872_s22 }
 0x3a9   : > { %v8517_v29 = vpop.permute.xlu0 %3378 }
 0x3aa   : > { %v8519_v48 = vpop.permute.xlu1 %3264 }
 0x3ab   : > { %10043 = vst [vmem:[#allocation8_spill] sm:$0xff] %v8519_v48  ;;  %3992 = vrot.lane.b32.xlu0 %v8237_v59, %s6871_s21 }
 0x3ac   : > { %3412 = vrot.lane.b32.xlu1 %v8521_v14, %s6872_s22 }
 0x3ad   : > { %v8527_v26 = vpop.permute.xlu0 %3254 }
 0x3ae   : > { %v8529_v30 = vpop.permute.xlu1 %3268 }
 0x3af   : > { %10044 = vst [vmem:[#allocation9_spill] sm:$0xff] %v8529_v30  ;;  %4120 = vrot.lane.b32.xlu0 %v8245_v47, %s6872_s22  ;;  %v8551_v30 = vld [vmem:[#allocation2 + $0x142] sm:$0xff] }
 0x3b0   : > { %3416 = vrot.lane.b32.xlu1 %v8531_v58, %s6872_s22 }
 0x3b1   : > { %v8537_v8 = vpop.permute.xlu0 %3382 }
 0x3b2   : > { %v8539_v16 = vpop.permute.xlu1 %3272 }
 0x3b3   : > { %10045 = vst [vmem:[#allocation10_spill] sm:$0xff] %v8539_v16  ;;  %3996 = vrot.lane.b32.xlu0 %v8254_v15, %s6871_s21 }
 0x3b4   : > { %3420 = vrot.lane.b32.xlu1 %v8541_v61, %s6872_s22 }
 0x3b5   : > { %v8547_v41 = vpop.permute.xlu0 %3258 }
 0x3b6   : > { %10046 = vst [vmem:[#allocation11_spill] sm:$0xff] %v8547_v41  ;;  %v8549_v50 = vpop.permute.xlu1 %3276 }
 0x3b7   : > { %10047 = vst [vmem:[#allocation12_spill] sm:$0xff] %v8549_v50  ;;  %4124 = vrot.lane.b32.xlu0 %v8272_v45, %s6872_s22  ;;  %v8571_v45 = vld [vmem:[#allocation2 + $0x172] sm:$0xff] }
 0x3b8   : > { %3424 = vrot.lane.b32.xlu1 %v8551_v30, %s6872_s22 }
 0x3b9   : > { %v8557_v16 = vpop.permute.xlu0 %3386 }
 0x3ba   : > { %10048 = vst [vmem:[#allocation15_spill] sm:$0xff] %v8557_v16  ;;  %v8559_v48 = vpop.permute.xlu1 %3280 }
 0x3bb   : > { %10049 = vst [vmem:[#allocation16_spill] sm:$0xff] %v8559_v48  ;;  %4000 = vrot.lane.b32.xlu0 %v8287_v17, %s6871_s21 }
 0x3bc   : > { %3428 = vrot.lane.b32.xlu1 %v8561_v11, %s6872_s22 }
 0x3bd   : > { %v8567_v50 = vpop.permute.xlu0 %3262 }
 0x3be   : > { %v8569_v41 = vpop.permute.xlu1 %3284 }
 0x3bf   : > { %10050 = vst [vmem:[#allocation17_spill] sm:$0xff] %v8569_v41  ;;  %4128 = vrot.lane.b32.xlu0 %v8303_v32, %s6872_s22 }
 0x3c0   : > { %3432 = vrot.lane.b32.xlu1 %v8571_v45, %s6872_s22 }
 0x3c1   : > { %v8577_v48 = vpop.permute.xlu0 %3390 }
 0x3c2   : > { %10051 = vst [vmem:[#allocation18_spill] sm:$0xff] %v8577_v48  ;;  %v8579_v16 = vpop.permute.xlu1 %3288 }
 0x3c3   : > { %10052 = vst [vmem:[#allocation13_spill] sm:$0xff] %v8579_v16  ;;  %4004 = vrot.lane.b32.xlu0 %v8313_v49, %s6871_s21 }
 0x3c4   : > { %4118 = vrot.lane.b32.xlu1 %v8437_v12, %s6872_s22 }
 0x3c5   : > { %v8585_v17 = vpop.permute.xlu0 %3266 }
 0x3c6   : > { %v8587_v41 = vpop.permute.xlu1 %3292 }
 0x3c7   : > { %10053 = vst [vmem:[#allocation14_spill] sm:$0xff] %v8587_v41  ;;  %4132 = vrot.lane.b32.xlu0 %v8324_v36, %s6872_s22 }
 0x3c8   : > { %4122 = vrot.lane.b32.xlu1 %v8445_v7, %s6872_s22 }
 0x3c9   : > { %v8593_v32 = vpop.permute.xlu0 %3394 }
 0x3ca   : > { %v8595_v48 = vpop.permute.xlu1 %3296 }
 0x3cb   : > { %10054 = vst [vmem:[#allocation19_spill] sm:$0xff] %v8595_v48  ;;  %4008 = vrot.lane.b32.xlu0 %v8340_v4, %s6871_s21 }
 0x3cc   : > { %4126 = vrot.lane.b32.xlu1 %v8453_v5, %s6872_s22 }
 0x3cd   : > { %v8601_v49 = vpop.permute.xlu0 %3270 }
 0x3ce   : > { %v8603_v12 = vpop.permute.xlu1 %3300 }
 0x3cf   : > { %10055 = vst [vmem:[#allocation20_spill] sm:$0xff] %v8603_v12  ;;  %4136 = vrot.lane.b32.xlu0 %v8348_v33, %s6872_s22 }
 0x3d0   : > { %4130 = vrot.lane.b32.xlu1 %v8461_v27, %s6872_s22 }
 0x3d1   : > { %v8609_v36 = vpop.permute.xlu0 %3398 }
 0x3d2   : > { %v8611_v41 = vpop.permute.xlu1 %3304 }
 0x3d3   : > { %10056 = vst [vmem:[#allocation21_spill] sm:$0xff] %v8611_v41  ;;  %4012 = vrot.lane.b32.xlu0 %v8360_v39, %s6871_s21  ;;  %v3530_v39 = vld [vmem:[%s9966_s2] sm:$0xff]  ;;  %v3531_v41 = vld [vmem:[%s9966_s2 + $0x8] sm:$0xf] }
 0x3d4   : > { %4134 = vrot.lane.b32.xlu1 %v8469_v25, %s6872_s22 }
 0x3d5   : > { %v8617_v4 = vpop.permute.xlu0 %3274 }
 0x3d6   : > { %v8619_v48 = vpop.permute.xlu1 %3990 }
 0x3d7   : > { %10057 = vst [vmem:[#allocation22_spill] sm:$0xff] %v8619_v48  ;;  %4140 = vrot.lane.b32.xlu0 %v8368_v63, %s6872_s22  ;;  %v6638_v63 = vpack.c.bf16 %v3531_v41, %v3530_v39 }
 0x3d8   : > { %4138 = vrot.lane.b32.xlu1 %v8479_v56, %s6872_s22 }
 0x3d9   : > { %v8625_v33 = vpop.permute.xlu0 %3402  ;;  %6640 = vmatprep.subr.msk.bf16.mxu1 %vm7057_vm5, %v6638_v63 }
 0x3da   : > { %10058 = vst [vmem:[#allocation23_spill] sm:$0xff] %v8625_v33  ;;  %v8627_v12 = vpop.permute.xlu1 %3994  ;;  %v6031_v33 = vld [vmem:[%s9966_s2 + $0x18] sm:$0xf]  ;;  %6643 = vmatpush3.bf16.msk.msra.mxu1 %vm7057_vm5, %v6638_v63  ;;  %v3179_v63 = vld [vmem:[#allocation2 + $0xa] sm:$0xff] }
 0x3db   : > { %10059 = vst [vmem:[#allocation24_spill] sm:$0xff] %v8627_v12  ;;  %4016 = vrot.lane.b32.xlu0 %v8376_v2, %s6871_s21  ;;  %v6030_v12 = vld [vmem:[%s9966_s2 + $0x10] sm:$0xff] }
 0x3dc   : > { %4142 = vrot.lane.b32.xlu1 %v8491_v10, %s6872_s22  ;;  %v8653_v2 = vpack.c.bf16 %v6031_v33, %v6030_v12  ;;  %v3146_v33 = vld [vmem:[#allocation2 + $0x1] sm:$0xff] }
 0x3dd   : > { %v8639_v48 = vpop.permute.xlu0 %3278 }
 0x3de   : > { %10060 = vst [vmem:[#allocation25_spill] sm:$0xff] %v8639_v48  ;;  %v8641_v16 = vpop.permute.xlu1 %3998  ;;  %6646 = vmatprep.subr.msk.bf16.mxu1 %vm7057_vm5, %v8653_v2 }
 0x3df   : > { %10061 = vst [vmem:[#allocation26_spill] sm:$0xff] %v8641_v16  ;;  %4144 = vrot.lane.b32.xlu0 %v8387_v1, %s6872_s22  ;;  %v3147_v16 = vld [vmem:[#allocation2 + $0x9] sm:$0xff] }
 0x3e0   : > { %4146 = vrot.lane.b32.xlu1 %v8501_v40, %s6872_s22 }
 0x3e1   : > { %v8662_v41 = vpop.permute.xlu0 %3406 }
 0x3e2   : > { %10062 = vst [vmem:[#allocation27_spill] sm:$0xff] %v8662_v41  ;;  %v8664_v39 = vpop.permute.xlu1 %4002 }
 0x3e3   : > { %10063 = vst [vmem:[#allocation28_spill] sm:$0xff] %v8664_v39  ;;  %4020 = vrot.lane.b32.xlu0 %v8393_v51, %s6871_s21  ;;  %v3178_v39 = vld [vmem:[#allocation2 + $0x2] sm:$0xff] }
 0x3e4   : > { %3244 = vrot.lane.b32.xlu1 %v3147_v16, %s6871_s21 }
 0x3e5   : > { %v8669_v12 = vpop.permute.xlu0 %3282 }
 0x3e6   : > { %v8671_v1 = vpop.permute.xlu1 %4006 }
 0x3e7   : > { %10064 = vst [vmem:[#allocation29_spill] sm:$0xff] %v8671_v1  ;;  %3242 = vrot.lane.b32.xlu0 %v3146_v33, %s6871_s21  ;;  %v8782_v1 = vld [vmem:[#allocation2 + $0x189] sm:$0xff] }
 0x3e8   : > { %3372 = vrot.lane.b32.xlu1 %v3179_v63, %s6872_s22  ;;  %10073 = vst [vmem:[#allocation38_spill] sm:$0xff] %v8782_v1 }
 0x3e9   : > { %v8675_v48 = vpop.permute.xlu0 %3410 }
 0x3ea   : > { %v8677_v41 = vpop.permute.xlu1 %4010 }
 0x3eb   : > { %10065 = vst [vmem:[#allocation30_spill] sm:$0xff] %v8677_v41  ;;  %3370 = vrot.lane.b32.xlu0 %v3178_v39, %s6872_s22 }
 0x3ec   : > { %4150 = vrot.lane.b32.xlu1 %v8511_v43, %s6872_s22 }
 0x3ed   : > { %v8682_v51 = vpop.permute.xlu0 %3286 }
 0x3ee   : > { %v8684_v16 = vpop.permute.xlu1 %4014 }
 0x3ef   : > { %10066 = vst [vmem:[#allocation31_spill] sm:$0xff] %v8684_v16  ;;  %4148 = vrot.lane.b32.xlu0 %v8399_v34, %s6872_s22 }
 0x3f0   : > { %4026 = vrot.lane.b32.xlu1 %v8316_v6, %s6871_s21 }
 0x3f1   : > { %v8690_v33 = vpop.permute.xlu0 %3414 }
 0x3f2   : > { %v8692_v63 = vpop.permute.xlu1 %4018 }
 0x3f3   : > { %10067 = vst [vmem:[#allocation32_spill] sm:$0xff] %v8692_v63  ;;  %4024 = vrot.lane.b32.xlu0 %v8405_v52, %s6871_s21 }
 0x3f4   : > { %4154 = vrot.lane.b32.xlu1 %v8521_v14, %s6872_s22 }
 0x3f5   : > { %v8698_v39 = vpop.permute.xlu0 %3290 }
 0x3f6   : > { %v8700_v41 = vpop.permute.xlu1 %4022 }
 0x3f7   : > { %10068 = vst [vmem:[#allocation33_spill] sm:$0xff] %v8700_v41  ;;  %4152 = vrot.lane.b32.xlu0 %v8411_v35, %s6872_s22 }
 0x3f8   : > { %4030 = vrot.lane.b32.xlu1 %v8328_v53, %s6871_s21 }
 0x3f9   : > { %v8706_v6 = vpop.permute.xlu0 %3418 }
 0x3fa   : > { %v8708_v34 = vpop.permute.xlu1 %3376 }
 0x3fb   : > { %4028 = vrot.lane.b32.xlu0 %v8417_v9, %s6871_s21 }
 0x3fc   : > { %4158 = vrot.lane.b32.xlu1 %v8531_v58, %s6872_s22 }
 0x3fd   : > { %v8714_v52 = vpop.permute.xlu0 %3294 }
 0x3fe   : > { %v8716_v63 = vpop.permute.xlu1 %3380 }
 0x3ff   : > { %4156 = vrot.lane.b32.xlu0 %v8423_v42, %s6872_s22 }
 0x400   : > { %4034 = vrot.lane.b32.xlu1 %v8342_v31, %s6871_s21 }
 0x401   : > { %v8722_v53 = vpop.permute.xlu0 %3422 }
 0x402   : > { %v8724_v35 = vpop.permute.xlu1 %3384 }
 0x403   : > { %4032 = vrot.lane.b32.xlu0 %v8429_v19, %s6871_s21 }
 0x404   : > { %4162 = vrot.lane.b32.xlu1 %v8541_v61, %s6872_s22 }
 0x405   : > { %v8730_v9 = vpop.permute.xlu0 %3298 }
 0x406   : > { %v8732_v41 = vpop.permute.xlu1 %3388 }
 0x407   : > { %4160 = vrot.lane.b32.xlu0 %v8435_v24, %s6872_s22 }
 0x408   : > { %4038 = vrot.lane.b32.xlu1 %v8350_v37, %s6871_s21 }
 0x409   : > { %v8738_v31 = vpop.permute.xlu0 %3426 }
 0x40a   : > { %v8740_v42 = vpop.permute.xlu1 %3392 }
 0x40b   : > { %4036 = vrot.lane.b32.xlu0 %v8443_v13, %s6871_s21 }
 0x40c   : > { %4166 = vrot.lane.b32.xlu1 %v8551_v30, %s6872_s22 }
 0x40d   : > { %v8746_v19 = vpop.permute.xlu0 %3302 }
 0x40e   : > { %v8748_v16 = vpop.permute.xlu1 %3396 }
 0x40f   : > { %4164 = vrot.lane.b32.xlu0 %v8451_v0, %s6872_s22 }
 0x410   : > { %4042 = vrot.lane.b32.xlu1 %v8362_v44, %s6871_s21 }
 0x411   : > { %v8754_v37 = vpop.permute.xlu0 %3430 }
 0x412   : > { %10069 = vst [vmem:[#allocation34_spill] sm:$0xff] %v8754_v37  ;;  %v8756_v24 = vpop.permute.xlu1 %3400 }
 0x413   : > { %4040 = vrot.lane.b32.xlu0 %v8459_v62, %s6871_s21 }
 0x414   : > { %4170 = vrot.lane.b32.xlu1 %v8561_v11, %s6872_s22 }
 0x415   : > { %v8762_v13 = vpop.permute.xlu0 %3988 }
 0x416   : > { %10070 = vst [vmem:[#allocation35_spill] sm:$0xff] %v8762_v13  ;;  %v8764_v30 = vpop.permute.xlu1 %3404  ;;  %v4668_v13 = vld [vmem:[#allocation2 + $0x39] sm:$0xff] }
 0x417   : > { %4168 = vrot.lane.b32.xlu0 %v8467_v54, %s6872_s22 }
 0x418   : > { %4046 = vrot.lane.b32.xlu1 %v8370_v28, %s6871_s21 }
 0x419   : > { %v8770_v44 = vpop.permute.xlu0 %4116 }
 0x41a   : > { %10071 = vst [vmem:[#allocation36_spill] sm:$0xff] %v8770_v44  ;;  %v8772_v0 = vpop.permute.xlu1 %3408  ;;  %v8794_v44 = vld [vmem:[#allocation2 + $0x18a] sm:$0xff] }
 0x41b   : > { %4044 = vrot.lane.b32.xlu0 %v8477_v55, %s6871_s21  ;;  %v8792_v55 = vld [vmem:[#allocation2 + $0x181] sm:$0xff]  ;;  %10076 = vst [vmem:[#allocation41_spill] sm:$0xff] %v8794_v44 }
 0x41c   : > { %4174 = vrot.lane.b32.xlu1 %v8571_v45, %s6872_s22  ;;  %10075 = vst [vmem:[#allocation40_spill] sm:$0xff] %v8792_v55 }
 0x41d   : > { %v8778_v62 = vpop.permute.xlu0 %3992 }
 0x41e   : > { %10072 = vst [vmem:[#allocation37_spill] sm:$0xff] %v8778_v62  ;;  %v8780_v11 = vpop.permute.xlu1 %3412  ;;  %v8804_v62 = vld [vmem:[#allocation2 + $0x182] sm:$0xff] }
 0x41f   : > { %4172 = vrot.lane.b32.xlu0 %v8489_v38, %s6872_s22  ;;  %10078 = vst [vmem:[#allocation43_spill] sm:$0xff] %v8804_v62 }
 0x420   : > { %4050 = vrot.lane.b32.xlu1 %v8782_v1, %s6871_s21 }
 0x421   : > { %v8788_v28 = vpop.permute.xlu0 %4120 }
 0x422   : > { %10074 = vst [vmem:[#allocation39_spill] sm:$0xff] %v8788_v28  ;;  %v8790_v54 = vpop.permute.xlu1 %3416 }
 0x423   : > { %4048 = vrot.lane.b32.xlu0 %v8792_v55, %s6871_s21  ;;  %v4670_v55 = vld [vmem:[#allocation2 + $0x51] sm:$0xff] }
 0x424   : > { %4178 = vrot.lane.b32.xlu1 %v8794_v44, %s6872_s22 }
 0x425   : > { %v8800_v45 = vpop.permute.xlu0 %3996 }
 0x426   : > { %10077 = vst [vmem:[#allocation42_spill] sm:$0xff] %v8800_v45  ;;  %v8802_v38 = vpop.permute.xlu1 %3420 }
 0x427   : > { %4176 = vrot.lane.b32.xlu0 %v8804_v62, %s6872_s22  ;;  %v4672_v62 = vld [vmem:[#allocation2 + $0x69] sm:$0xff] }
 0x428   : > { %4765 = vrot.lane.b32.xlu1 %v4668_v13, %s6871_s21 }
 0x429   : > { %v8809_v28 = vpop.permute.xlu0 %4124 }
 0x42a   : > { %10079 = vst [vmem:[#allocation44_spill] sm:$0xff] %v8809_v28  ;;  %v8811_v1 = vpop.permute.xlu1 %3424 }
 0x42b   : > { %4763 = vrot.lane.b32.xlu0 %v8237_v59, %s6871_s21 }
 0x42c   : > { %4893 = vrot.lane.b32.xlu1 %v8445_v7, %s6872_s22 }
 0x42d   : > { %v8817_v45 = vpop.permute.xlu0 %4000 }
 0x42e   : > { %10080 = vst [vmem:[#allocation45_spill] sm:$0xff] %v8817_v45  ;;  %v8819_v44 = vpop.permute.xlu1 %3428  ;;  %v4701_v45 = vld [vmem:[#allocation2 + $0x4a] sm:$0xff] }
 0x42f   : > { %10081 = vst [vmem:[#allocation46_spill] sm:$0xff] %v8819_v44  ;;  %4891 = vrot.lane.b32.xlu0 %v8245_v47, %s6872_s22 }
 0x430   : > { %4769 = vrot.lane.b32.xlu1 %v4670_v55, %s6871_s21 }
 0x431   : > { %v8824_v13 = vpop.permute.xlu0 %4128 }
 0x432   : > { %10082 = vst [vmem:[#allocation47_spill] sm:$0xff] %v8824_v13  ;;  %v8826_v28 = vpop.permute.xlu1 %3432  ;;  %v4671_v13 = vld [vmem:[#allocation2 + $0x61] sm:$0xff] }
 0x433   : > { %10083 = vst [vmem:[#allocation48_spill] sm:$0xff] %v8826_v28  ;;  %4767 = vrot.lane.b32.xlu0 %v8254_v15, %s6871_s21  ;;  %v4711_v28 = vld [vmem:[#allocation2 + $0xc2] sm:$0xff] }
 0x434   : > { %4897 = vrot.lane.b32.xlu1 %v8453_v5, %s6872_s22 }
 0x435   : > { %v8832_v59 = vpop.permute.xlu0 %4004 }
 0x436   : > { %10084 = vst [vmem:[#allocation49_spill] sm:$0xff] %v8832_v59  ;;  %v8834_v7 = vpop.permute.xlu1 %4118  ;;  %v4703_v59 = vld [vmem:[#allocation2 + $0x62] sm:$0xff] }
 0x437   : > { %10085 = vst [vmem:[#allocation50_spill] sm:$0xff] %v8834_v7  ;;  %4895 = vrot.lane.b32.xlu0 %v4701_v45, %s6872_s22  ;;  %v4674_v7 = vld [vmem:[#allocation2 + $0x81] sm:$0xff] }
 0x438   : > { %4773 = vrot.lane.b32.xlu1 %v4672_v62, %s6871_s21 }
 0x439   : > { %v8838_v47 = vpop.permute.xlu0 %4132 }
 0x43a   : > { %10086 = vst [vmem:[#allocation51_spill] sm:$0xff] %v8838_v47  ;;  %v8840_v55 = vpop.permute.xlu1 %4122  ;;  %v4673_v47 = vld [vmem:[#allocation2 + $0x79] sm:$0xff] }
 0x43b   : > { %10087 = vst [vmem:[#allocation52_spill] sm:$0xff] %v8840_v55  ;;  %4771 = vrot.lane.b32.xlu0 %v4671_v13, %s6871_s21  ;;  %v8902_v55 = vld [vmem:[#allocation2 + $0x18] sm:$0xff] }
 0x43c   : > { %4901 = vrot.lane.b32.xlu1 %v8461_v27, %s6872_s22  ;;  %v3468_v44 = vsel %vm231_vm0, %v8902_v55, %v8485_v57 }
 0x43d   : > { %v8845_v15 = vpop.permute.xlu0 %4008 }
 0x43e   : > { %10088 = vst [vmem:[#allocation53_spill] sm:$0xff] %v8845_v15  ;;  %v8847_v5 = vpop.permute.xlu1 %4126  ;;  %v4705_v15 = vld [vmem:[#allocation2 + $0x7a] sm:$0xff] }
 0x43f   : > { %10089 = vst [vmem:[#allocation54_spill] sm:$0xff] %v8847_v5  ;;  %4899 = vrot.lane.b32.xlu0 %v4703_v59, %s6872_s22  ;;  %v4676_v5 = vld [vmem:[#allocation2 + $0x99] sm:$0xff] }
 0x440   : > { %4777 = vrot.lane.b32.xlu1 %v4674_v7, %s6871_s21 }
 0x441   : > { %v8851_v62 = vpop.permute.xlu0 %4136 }
 0x442   : > { %10090 = vst [vmem:[#allocation55_spill] sm:$0xff] %v8851_v62  ;;  %v8853_v45 = vpop.permute.xlu1 %4130  ;;  %v4675_v62 = vld [vmem:[#allocation2 + $0x91] sm:$0xff] }
 0x443   : > { %10091 = vst [vmem:[#allocation56_spill] sm:$0xff] %v8853_v45  ;;  %4775 = vrot.lane.b32.xlu0 %v4673_v47, %s6871_s21 }
 0x444   : > { %4905 = vrot.lane.b32.xlu1 %v8469_v25, %s6872_s22 }
 0x445   : > { %v8858_v27 = vpop.permute.xlu0 %4012 }
 0x446   : > { %10092 = vst [vmem:[#allocation57_spill] sm:$0xff] %v8858_v27  ;;  %v8860_v13 = vpop.permute.xlu1 %4134  ;;  %v4707_v27 = vld [vmem:[#allocation2 + $0x92] sm:$0xff] }
 0x447   : > { %10093 = vst [vmem:[#allocation58_spill] sm:$0xff] %v8860_v13  ;;  %4903 = vrot.lane.b32.xlu0 %v4705_v15, %s6872_s22  ;;  %v4678_v13 = vld [vmem:[#allocation2 + $0xb1] sm:$0xff] }
 0x448   : > { %4781 = vrot.lane.b32.xlu1 %v4676_v5, %s6871_s21 }
 0x449   : > { %v8864_v59 = vpop.permute.xlu0 %4140 }
 0x44a   : > { %10094 = vst [vmem:[#allocation59_spill] sm:$0xff] %v8864_v59  ;;  %v8866_v7 = vpop.permute.xlu1 %4138  ;;  %v4677_v59 = vld [vmem:[#allocation2 + $0xa9] sm:$0xff] }
 0x44b   : > { %10095 = vst [vmem:[#allocation60_spill] sm:$0xff] %v8866_v7  ;;  %4779 = vrot.lane.b32.xlu0 %v4675_v62, %s6871_s21  ;;  %v3115_v7 = vld [vmem:[#allocation2 + $0x8] sm:$0xff] }
 0x44c   : > { %4909 = vrot.lane.b32.xlu1 %v8479_v56, %s6872_s22 }
 0x44d   : > { %v8871_v25 = vpop.permute.xlu0 %4016 }
 0x44e   : > { %10096 = vst [vmem:[#allocation61_spill] sm:$0xff] %v8871_v25  ;;  %v8873_v47 = vpop.permute.xlu1 %4142  ;;  %v4680_v25 = vld [vmem:[#allocation2 + $0xc9] sm:$0xff] }
 0x44f   : > { %10097 = vst [vmem:[#allocation62_spill] sm:$0xff] %v8873_v47  ;;  %4907 = vrot.lane.b32.xlu0 %v4707_v27, %s6872_s22  ;;  %v4709_v47 = vld [vmem:[#allocation2 + $0xaa] sm:$0xff] }
 0x450   : > { %4785 = vrot.lane.b32.xlu1 %v4678_v13, %s6871_s21 }
 0x451   : > { %v8877_v15 = vpop.permute.xlu0 %4144 }
 0x452   : > { %10098 = vst [vmem:[#allocation63_spill] sm:$0xff] %v8877_v15  ;;  %v8879_v5 = vpop.permute.xlu1 %4146  ;;  %v4679_v15 = vld [vmem:[#allocation2 + $0xc1] sm:$0xff] }
 0x453   : > { %10099 = vst [vmem:[#allocation64_spill] sm:$0xff] %v8879_v5  ;;  %4783 = vrot.lane.b32.xlu0 %v4677_v59, %s6871_s21  ;;  %v6066_v59 = vld [vmem:[%s9966_s2 + $0x28] sm:$0xf] }
 0x454   : > { %4913 = vrot.lane.b32.xlu1 %v8491_v10, %s6872_s22  ;;  %v6065_v10 = vld [vmem:[%s9966_s2 + $0x20] sm:$0xff] }
 0x455   : > { %v8884_v56 = vpop.permute.xlu0 %4020  ;;  %v8905_v37 = vpack.c.bf16 %v6066_v59, %v6065_v10  ;;  %v8949_v10 = vld [vmem:[#allocation2 + $0x48] sm:$0xff] }
 0x456   : > { %10100 = vst [vmem:[#allocation65_spill] sm:$0xff] %v8884_v56  ;;  %v3245_v62 = vpop.permute.xlu1 %3244 }
 0x457   : > { %4911 = vrot.lane.b32.xlu0 %v4709_v47, %s6872_s22  ;;  %v3467_v47 = vsel %vm231_vm0, %v3115_v7, %v3245_v62  ;;  %v4682_v7 = vld [vmem:[#allocation2 + $0xe1] sm:$0xff]  ;;  %v3500_v62 = vsel %vm732_vm7, %v3468_v44, %v8497_v60  ;;  %v4681_v60 = vld [vmem:[#allocation2 + $0xd9] sm:$0xff]  ;;  %v3470_v44 = vsel %vm231_vm0, %v8297_v20, %v8507_v23 }
 0x458   : > { %4789 = vrot.lane.b32.xlu1 %v4680_v25, %s6871_s21  ;;  %v3114_v25 = vld [vmem:[#allocation2] sm:$0xff] }
 0x459   : > { %v3243_v27 = vpop.permute.xlu0 %3242 }
 0x45a   : > { %v3373_v13 = vpop.permute.xlu1 %3372  ;;  %v3466_v56 = vsel %vm231_vm0, %v3114_v25, %v3243_v27  ;;  %v8938_v27 = vld [vmem:[#allocation2 + $0xf8] sm:$0xff] }
 0x45b   : > { %4787 = vrot.lane.b32.xlu0 %v4679_v15, %s6871_s21  ;;  %v3499_v5 = vsel %vm732_vm7, %v3467_v47, %v3373_v13  ;;  %v4684_v25 = vld [vmem:[#allocation2 + $0xf9] sm:$0xff] }
 0x45c   : > { %4917 = vrot.lane.b32.xlu1 %v8501_v40, %s6872_s22 }
 0x45d   : > { %v3371_v45 = vpop.permute.xlu0 %3370 }
 0x45e   : > { %v8900_v15 = vpop.permute.xlu1 %4150  ;;  %v3498_v40 = vsel %vm732_vm7, %v3466_v56, %v3371_v45  ;;  %v8916_v45 = vld [vmem:[#allocation2 + $0x20] sm:$0xff] }
 0x45f   : > { %6468 = vmatprep.mubr.msk.f32.mxu1 %vm771_vm6, %v3498_v40  ;;  %4915 = vrot.lane.b32.xlu0 %v4711_v28, %s6872_s22  ;;  %v3469_v28 = vsel %vm231_vm0, %v8916_v45, %v8475_v18 }
 0x460   : > { %6469 = vmatmul.mubr.msk.f32.vlgmr.msra.gmra.mrb[0].mxu1 %vm771_vm6, %v3499_v5  ;;  %4793 = vrot.lane.b32.xlu1 %v4682_v7, %s6871_s21  ;;  %v3502_v5 = vsel %vm732_vm7, %v3470_v44, %v8517_v29  ;;  %v4713_v29 = vld [vmem:[#allocation2 + $0xda] sm:$0xff]  ;;  %v8966_v7 = vld [vmem:[#allocation2 + $0x50] sm:$0xff]  ;;  %v10101_v44 = vld [vmem:[#allocation11_spill] sm:$0xff] }
 0x461   : > { %6649 = vmatpush3.bf16.msk.msra.mxu1 %vm7057_vm5, %v8653_v2  ;;  %v8921_v56 = vpop.permute.xlu0 %4148  ;;  %6471 = vmatprep.mubr.msk.f32.mxu1 %vm771_vm6, %v3500_v62  ;;  %v3501_v2 = vsel %vm732_vm7, %v3469_v28, %v8708_v34  ;;  %v3471_v34 = vsel %vm231_vm0, %v8267_v46, %v8487_v21  ;;  %v8962_v21 = vld [vmem:[#allocation2 + $0xf0] sm:$0xff] }
 0x462   : > { %v4027_v57 = vpop.permute.xlu1 %4026  ;;  %6652 = vmatprep.subr.msk.bf16.mxu1 %vm7057_vm5, %v8905_v37  ;;  %v3503_v47 = vsel %vm732_vm7, %v3471_v34, %v8716_v63 }
 0x463   : > { %4791 = vrot.lane.b32.xlu0 %v4681_v60, %s6871_s21  ;;  %v4231_v18 = vsel %vm231_vm0, %v8938_v27, %v4027_v57  ;;  %v3473_v57 = vsel %vm231_vm0, %v8966_v7, %v8499_v22  ;;  %v4683_v60 = vld [vmem:[#allocation2 + $0xf1] sm:$0xff]  ;;  %v8992_v22 = vld [vmem:[#allocation2 + $0x68] sm:$0xff] }
 0x464   : > { %6472 = vmatmul.mubr.msk.f32.gmra.mrb[2].mxu1 %vm771_vm6, %v3501_v2  ;;  %4921 = vrot.lane.b32.xlu1 %v8511_v43, %s6872_s22  ;;  %v3472_v43 = vsel %vm231_vm0, %v8949_v10, %v8527_v26 }
 0x465   : > { %v4025_v13 = vpop.permute.xlu0 %4024  ;;  %6474 = vmatprep.mubr.msk.f32.mxu1 %vm771_vm6, %v3502_v5  ;;  %v3504_v40 = vsel %vm732_vm7, %v3472_v43, %v8537_v8  ;;  %v8974_v8 = vld [vmem:[#allocation2 + $0x60] sm:$0xff]  ;;  %v3505_v5 = vsel %vm732_vm7, %v3473_v57, %v8724_v35  ;;  %v10103_v43 = vld [vmem:[#allocation7_spill] sm:$0xff] }
 0x466   : > { %v4155_v23 = vpop.permute.xlu1 %4154  ;;  %v4230_v26 = vsel %vm231_vm0, %v8962_v21, %v4025_v13  ;;  %v3474_v2 = vsel %vm231_vm0, %v8974_v8, %v10101_v44  ;;  %v10104_v57 = vld [vmem:[#allocation18_spill] sm:$0xff]  ;;  %v9013_v44 = vld [vmem:[#allocation2 + $0x108] sm:$0xff] }
 0x467   : > { %v8952_v59 = vsel %vm732_vm7, %v4231_v18, %v4155_v23  ;;  %4919 = vrot.lane.b32.xlu0 %v4713_v29, %s6872_s22  ;;  %v10102_v18 = vld [vmem:[#allocation15_spill] sm:$0xff]  ;;  %v8987_v23 = vld [vmem:[#allocation2 + $0x110] sm:$0xff] }
 0x468   : > { %6475 = vmatmul.mubr.msk.f32.gmra.mrb[4].mxu1 %vm771_vm6, %v3503_v47  ;;  %4797 = vrot.lane.b32.xlu1 %v4684_v25, %s6871_s21  ;;  %v3506_v13 = vsel %vm732_vm7, %v3474_v2, %v10102_v18  ;;  %v3475_v47 = vsel %vm231_vm0, %v8992_v22, %v10103_v43  ;;  %v9000_v25 = vld [vmem:[#allocation2 + $0x78] sm:$0xff]  ;;  %v9017_v2 = vld [vmem:[#allocation2 + $0x80] sm:$0xff]  ;;  %v10105_v18 = vld [vmem:[#allocation8_spill] sm:$0xff] }
 0x469   : > { %v4153_v62 = vpop.permute.xlu0 %4152  ;;  %6477 = vmatprep.mubr.msk.f32.mxu1 %vm771_vm6, %v3504_v40  ;;  %v4715_v40 = vld [vmem:[#allocation2 + $0xf2] sm:$0xff]  ;;  %v4685_v43 = vld [vmem:[#allocation2 + $0x109] sm:$0xff] }
 0x46a   : > { %v4031_v63 = vpop.permute.xlu1 %4030  ;;  %v8977_v28 = vsel %vm732_vm7, %v4230_v26, %v4153_v62  ;;  %v3507_v62 = vsel %vm732_vm7, %v3475_v47, %v8732_v41 }
 0x46b   : > { %4795 = vrot.lane.b32.xlu0 %v4683_v60, %s6871_s21  ;;  %v4233_v34 = vsel %vm231_vm0, %v8987_v23, %v4031_v63  ;;  %v4686_v63 = vld [vmem:[#allocation2 + $0x111] sm:$0xff] }
 0x46c   : > { %6478 = vmatmul.mubr.msk.f32.gmra.mrb[6].mxu1 %vm771_vm6, %v3505_v5  ;;  %4925 = vrot.lane.b32.xlu1 %v8521_v14, %s6872_s22  ;;  %v3476_v14 = vsel %vm231_vm0, %v9000_v25, %v8567_v50 }
 0x46d   : > { %v4029_v29 = vpop.permute.xlu0 %4028  ;;  %6480 = vmatprep.mubr.msk.f32.mxu1 %vm771_vm6, %v3506_v13  ;;  %v3508_v60 = vsel %vm732_vm7, %v3476_v14, %v10104_v57  ;;  %v3477_v13 = vsel %vm231_vm0, %v9017_v2, %v10105_v18  ;;  %v10106_v57 = vld [vmem:[#allocation9_spill] sm:$0xff]  ;;  %v4688_v18 = vld [vmem:[#allocation2 + $0x129] sm:$0xff] }
 0x46e   : > { %v4159_v35 = vpop.permute.xlu1 %4158  ;;  %v4232_v50 = vsel %vm231_vm0, %v9013_v44, %v4029_v29  ;;  %v3509_v29 = vsel %vm732_vm7, %v3477_v13, %v8740_v42 }
 0x46f   : > { %v9003_v26 = vsel %vm732_vm7, %v4233_v34, %v4159_v35  ;;  %4923 = vrot.lane.b32.xlu0 %v4715_v40, %s6872_s22  ;;  %v9025_v34 = vld [vmem:[#allocation2 + $0x90] sm:$0xff]  ;;  %v9036_v40 = vld [vmem:[#allocation2 + $0x128] sm:$0xff] }
 0x470   : > { %6481 = vmatmul.mubr.msk.f32.gmra.mrb[8].mxu1 %vm771_vm6, %v3507_v62  ;;  %4801 = vrot.lane.b32.xlu1 %v4686_v63, %s6871_s21  ;;  %v3478_v47 = vsel %vm231_vm0, %v9025_v34, %v8585_v17  ;;  %v9043_v62 = vld [vmem:[#allocation2 + $0x98] sm:$0xff] }
 0x471   : > { %v4157_v5 = vpop.permute.xlu0 %4156  ;;  %6483 = vmatprep.mubr.msk.f32.mxu1 %vm771_vm6, %v3508_v60  ;;  %v3510_v14 = vsel %vm732_vm7, %v3478_v47, %v8593_v32  ;;  %v3479_v60 = vsel %vm231_vm0, %v9043_v62, %v10106_v57  ;;  %v4717_v32 = vld [vmem:[#allocation2 + $0x10a] sm:$0xff]  ;;  %v4687_v57 = vld [vmem:[#allocation2 + $0x121] sm:$0xff] }
 0x472   : > { %v4035_v41 = vpop.permute.xlu1 %4034  ;;  %v9028_v35 = vsel %vm732_vm7, %v4232_v50, %v4157_v5  ;;  %v9051_v50 = vld [vmem:[#allocation2 + $0xa8] sm:$0xff]  ;;  %v9068_v47 = vld [vmem:[#allocation2 + $0xb0] sm:$0xff] }
 0x473   : > { %4799 = vrot.lane.b32.xlu0 %v4685_v43, %s6871_s21  ;;  %v4235_v17 = vsel %vm231_vm0, %v9036_v40, %v4035_v41  ;;  %v3511_v41 = vsel %vm732_vm7, %v3479_v60, %v8748_v16  ;;  %v9064_v43 = vld [vmem:[#allocation2 + $0x120] sm:$0xff] }
 0x474   : > { %6484 = vmatmul.mubr.msk.f32.gmra.mrb[10].mxu1 %vm771_vm6, %v3509_v29  ;;  %4929 = vrot.lane.b32.xlu1 %v8531_v58, %s6872_s22  ;;  %v3480_v58 = vsel %vm231_vm0, %v9051_v50, %v8601_v49 }
 0x475   : > { %v4033_v63 = vpop.permute.xlu0 %4032  ;;  %6486 = vmatprep.mubr.msk.f32.mxu1 %vm771_vm6, %v3510_v14  ;;  %v3512_v13 = vsel %vm732_vm7, %v3480_v58, %v8609_v36  ;;  %v10107_v14 = vld [vmem:[#allocation10_spill] sm:$0xff]  ;;  %v10108_v58 = vld [vmem:[#allocation23_spill] sm:$0xff] }
 0x476   : > { %v4163_v42 = vpop.permute.xlu1 %4162  ;;  %v4234_v49 = vsel %vm231_vm0, %v9064_v43, %v4033_v63  ;;  %v9076_v36 = vld [vmem:[#allocation2 + $0xc0] sm:$0xff] }
 0x477   : > { %v9054_v5 = vsel %vm732_vm7, %v4235_v17, %v4163_v42  ;;  %4927 = vrot.lane.b32.xlu0 %v4717_v32, %s6872_s22  ;;  %v3481_v17 = vsel %vm231_vm0, %v9068_v47, %v10107_v14  ;;  %v3482_v60 = vsel %vm231_vm0, %v9076_v36, %v8617_v4  ;;  %v9087_v32 = vld [vmem:[#allocation2 + $0x140] sm:$0xff]  ;;  %v9102_v14 = vld [vmem:[#allocation2 + $0xd8] sm:$0xff] }
 0x478   : > { %6487 = vmatmul.mubr.msk.f32.gmra.mrb[12].mxu1 %vm771_vm6, %v3511_v41  ;;  %4805 = vrot.lane.b32.xlu1 %v4688_v18, %s6871_s21  ;;  %v3513_v63 = vsel %vm732_vm7, %v3481_v17, %v8756_v24  ;;  %v3514_v41 = vsel %vm732_vm7, %v3482_v60, %v10108_v58  ;;  %v9094_v18 = vld [vmem:[#allocation2 + $0xc8] sm:$0xff] }
 0x479   : > { %v4161_v29 = vpop.permute.xlu0 %4160  ;;  %6489 = vmatprep.mubr.msk.f32.mxu1 %vm771_vm6, %v3512_v13  ;;  %v4719_v17 = vld [vmem:[#allocation2 + $0x122] sm:$0xff] }
 0x47a   : > { %v4039_v16 = vpop.permute.xlu1 %4038  ;;  %v9079_v42 = vsel %vm732_vm7, %v4234_v49, %v4161_v29  ;;  %v10109_v49 = vld [vmem:[#allocation12_spill] sm:$0xff]  ;;  %v10112_v58 = vld [vmem:[#allocation27_spill] sm:$0xff] }
 0x47b   : > { %4803 = vrot.lane.b32.xlu0 %v4687_v57, %s6871_s21  ;;  %v4237_v4 = vsel %vm231_vm0, %v9087_v32, %v4039_v16  ;;  %v3483_v29 = vsel %vm231_vm0, %v9094_v18, %v10109_v49  ;;  %v3140_v49 = vld [vmem:[#allocation2 + $0x138] sm:$0xff] }
 0x47c   : > { %6490 = vmatmul.mubr.msk.f32.gmra.mrb[14].mxu1 %vm771_vm6, %v3513_v63  ;;  %4933 = vrot.lane.b32.xlu1 %v8541_v61, %s6872_s22  ;;  %v10111_v61 = vld [vmem:[#allocation25_spill] sm:$0xff]  ;;  %v3515_v16 = vsel %vm732_vm7, %v3483_v29, %v8764_v30  ;;  %v4690_v63 = vld [vmem:[#allocation2 + $0x141] sm:$0xff]  ;;  %v10113_v30 = vld [vmem:[#allocation16_spill] sm:$0xff] }
 0x47d   : > { %v4037_v13 = vpop.permute.xlu0 %4036  ;;  %6492 = vmatprep.mubr.msk.f32.mxu1 %vm771_vm6, %v3514_v41  ;;  %v3484_v60 = vsel %vm231_vm0, %v9102_v14, %v10111_v61 }
 0x47e   : > { %v4167_v24 = vpop.permute.xlu1 %4166  ;;  %v3516_v41 = vsel %vm732_vm7, %v3484_v60, %v10112_v58  ;;  %v4689_v60 = vld [vmem:[#allocation2 + $0x139] sm:$0xff] }
 0x47f   : > { %v9105_v57 = vsel %vm732_vm7, %v4237_v4, %v4167_v24  ;;  %4931 = vrot.lane.b32.xlu0 %v4719_v17, %s6872_s22  ;;  %v9117_v4 = vld [vmem:[#allocation2 + $0xe0] sm:$0xff]  ;;  %v4236_v24 = vsel %vm231_vm0, %v3140_v49, %v4037_v13  ;;  %v9133_v58 = vld [vmem:[#allocation2 + $0x158] sm:$0xff] }
 0x480   : > { %10110 = vst [vmem:[#allocation11_spill] sm:$0xff] %v9105_v57  ;;  %6493 = vmatmul.mubr.msk.f32.gmra.mrb[16].mxu1 %vm771_vm6, %v3515_v16  ;;  %4809 = vrot.lane.b32.xlu1 %v4690_v63, %s6871_s21  ;;  %v3485_v29 = vsel %vm231_vm0, %v9117_v4, %v10113_v30  ;;  %v3486_v16 = vsel %vm231_vm0, %v8962_v21, %v8669_v12  ;;  %v4722_v13 = vld [vmem:[#allocation2 + $0x142] sm:$0xff]  ;;  %v4721_v30 = vld [vmem:[#allocation2 + $0x13a] sm:$0xff] }
 0x481   : > { %v4165_v57 = vpop.permute.xlu0 %4164  ;;  %6495 = vmatprep.mubr.msk.f32.mxu1 %vm771_vm6, %v3516_v41  ;;  %v3517_v63 = vsel %vm732_vm7, %v3485_v29, %v8772_v0  ;;  %v3518_v41 = vsel %vm732_vm7, %v3486_v16, %v8675_v48  ;;  %v10114_v0 = vld [vmem:[#allocation17_spill] sm:$0xff]  ;;  %v3488_v48 = vsel %vm231_vm0, %v9013_v44, %v8682_v51 }
 0x482   : > { %v4043_v61 = vpop.permute.xlu1 %4042  ;;  %v9125_v17 = vsel %vm732_vm7, %v4236_v24, %v4165_v57  ;;  %v3487_v21 = vsel %vm231_vm0, %v8938_v27, %v10114_v0  ;;  %v3520_v16 = vsel %vm732_vm7, %v3488_v48, %v8690_v33  ;;  %v10115_v44 = vld [vmem:[#allocation13_spill] sm:$0xff]  ;;  %v3490_v33 = vsel %vm231_vm0, %v9064_v43, %v8698_v39  ;;  %v3145_v0 = vld [vmem:[#allocation2 + $0x170] sm:$0xff]  ;;  %v10116_v43 = vld [vmem:[#allocation14_spill] sm:$0xff] }
 0x483   : > { %4807 = vrot.lane.b32.xlu0 %v4689_v60, %s6871_s21  ;;  %v4239_v57 = vsel %vm231_vm0, %v9133_v58, %v4043_v61  ;;  %v3519_v60 = vsel %vm732_vm7, %v3487_v21, %v8780_v11  ;;  %v4692_v61 = vld [vmem:[#allocation2 + $0x159] sm:$0xff]  ;;  %v3489_v11 = vsel %vm231_vm0, %v8987_v23, %v10115_v44  ;;  %v3522_v21 = vsel %vm732_vm7, %v3490_v33, %v8706_v6 }
 0x484   : > { %6496 = vmatmul.mubr.msk.f32.gmra.mrb[18].mxu1 %vm771_vm6, %v3517_v63  ;;  %4937 = vrot.lane.b32.xlu1 %v4722_v13, %s6872_s22  ;;  %v3142_v63 = vld [vmem:[#allocation2 + $0x150] sm:$0xff]  ;;  %v3492_v6 = vsel %vm231_vm0, %v3140_v49, %v8714_v52  ;;  %v10118_v49 = vld [vmem:[#allocation19_spill] sm:$0xff] }
 0x485   : > { %v4041_v24 = vpop.permute.xlu0 %4040  ;;  %6498 = vmatprep.mubr.msk.f32.mxu1 %vm771_vm6, %v3518_v41  ;;  %v4723_v48 = vld [vmem:[#allocation2 + $0x152] sm:$0xff] }
 0x486   : > { %v4171_v12 = vpop.permute.xlu1 %4170  ;;  %v4238_v27 = vsel %vm231_vm0, %v3142_v63, %v4041_v24  ;;  %v4724_v24 = vld [vmem:[#allocation2 + $0x15a] sm:$0xff]  ;;  %v4726_v33 = vld [vmem:[#allocation2 + $0x172] sm:$0xff] }
 0x487   : > { %v9146_v29 = vsel %vm732_vm7, %v4239_v57, %v4171_v12  ;;  %4935 = vrot.lane.b32.xlu0 %v4721_v30, %s6872_s22  ;;  %v4691_v57 = vld [vmem:[#allocation2 + $0x151] sm:$0xff]  ;;  %v3521_v12 = vsel %vm732_vm7, %v3489_v11, %v8790_v54  ;;  %v3491_v54 = vsel %vm231_vm0, %v9036_v40, %v10116_v43  ;;  %v4693_v11 = vld [vmem:[#allocation2 + $0x169] sm:$0xff] }
 0x488   : > { %6499 = vmatmul.mubr.msk.f32.gmra.mrb[20].mxu1 %vm771_vm6, %v3519_v60  ;;  %4813 = vrot.lane.b32.xlu1 %v4692_v61, %s6871_s21  ;;  %v3523_v61 = vsel %vm732_vm7, %v3491_v54, %v8802_v38  ;;  %v10117_v40 = vld [vmem:[#allocation5_spill] sm:$0xff]  ;;  %v3493_v38 = vsel %vm231_vm0, %v9087_v32, %v10118_v49  ;;  %v10121_v54 = vld [vmem:[#allocation34_spill] sm:$0xff]  ;;  %v10127_v49 = vld [vmem:[#allocation36_spill] sm:$0xff] }
 0x489   : > { %v4169_v13 = vpop.permute.xlu0 %4168  ;;  %6501 = vmatprep.mubr.msk.f32.mxu1 %vm771_vm6, %v3520_v16  ;;  %v4694_v16 = vld [vmem:[#allocation2 + $0x171] sm:$0xff] }
 0x48a   : > { %v4047_v51 = vpop.permute.xlu1 %4046  ;;  %v9164_v41 = vsel %vm732_vm7, %v4238_v27, %v4169_v13  ;;  %v3524_v27 = vsel %vm732_vm7, %v3492_v6, %v8722_v53  ;;  %v3494_v53 = vsel %vm231_vm0, %v3142_v63, %v8730_v9  ;;  %v10119_v63 = vld [vmem:[#allocation20_spill] sm:$0xff] }
 0x48b   : > { %4811 = vrot.lane.b32.xlu0 %v4691_v57, %s6871_s21  ;;  %v4241_v23 = vsel %vm231_vm0, %v3145_v0, %v4047_v51  ;;  %v3525_v57 = vsel %vm732_vm7, %v3493_v38, %v8811_v1 }
 0x48c   : > { %6502 = vmatmul.mubr.msk.f32.gmra.mrb[22].mxu1 %vm771_vm6, %v3521_v12  ;;  %4941 = vrot.lane.b32.xlu1 %v4724_v24, %s6872_s22  ;;  %v3526_v12 = vsel %vm732_vm7, %v3494_v53, %v8738_v31  ;;  %v9210_v24 = vld [vmem:[#allocation2 + $0x188] sm:$0xff] }
 0x48d   : > { %v4045_v30 = vpop.permute.xlu0 %4044  ;;  %6504 = vmatprep.mubr.msk.f32.mxu1 %vm771_vm6, %v3522_v21  ;;  %v3495_v21 = vsel %vm231_vm0, %v9133_v58, %v10119_v63  ;;  %v10122_v58 = vld [vmem:[#allocation38_spill] sm:$0xff]  ;;  %v10132_v63 = vld [vmem:[#allocation43_spill] sm:$0xff] }
 0x48e   : > { %v4175_v39 = vpop.permute.xlu1 %4174  ;;  %v4240_v13 = vsel %vm231_vm0, %v10117_v40, %v4045_v30  ;;  %v3496_v30 = vsel %vm231_vm0, %v10117_v40, %v8746_v19  ;;  %v10123_v19 = vld [vmem:[#allocation21_spill] sm:$0xff] }
 0x48f   : > { %v9182_v60 = vsel %vm732_vm7, %v4241_v23, %v4175_v39  ;;  %4939 = vrot.lane.b32.xlu0 %v4723_v48, %s6872_s22  ;;  %v4725_v23 = vld [vmem:[#allocation2 + $0x16a] sm:$0xff]  ;;  %v10120_v39 = vld [vmem:[#allocation46_spill] sm:$0xff]  ;;  %v3528_v48 = vsel %vm732_vm7, %v3496_v30, %v10121_v54 }
 0x490   : > { %6505 = vmatmul.mubr.msk.f32.gmra.mrb[24].mxu1 %vm771_vm6, %v3523_v61  ;;  %4817 = vrot.lane.b32.xlu1 %v4694_v16, %s6871_s21  ;;  %v3527_v43 = vsel %vm732_vm7, %v3495_v21, %v10120_v39  ;;  %v3497_v16 = vsel %vm231_vm0, %v3145_v0, %v10123_v19  ;;  %v4698_v21 = vld [vmem:[#allocation2 + $0x1a1] sm:$0xff]  ;;  %v10134_v39 = vld [vmem:[#allocation24_spill] sm:$0xff]  ;;  %v4697_v54 = vld [vmem:[#allocation2 + $0x199] sm:$0xff] }
 0x491   : > { %v4173_v51 = vpop.permute.xlu0 %4172  ;;  %6507 = vmatprep.mubr.msk.f32.mxu1 %vm771_vm6, %v3524_v27  ;;  %v10124_v27 = vld [vmem:[#allocation35_spill] sm:$0xff]  ;;  %v10136_v19 = vld [vmem:[#allocation52_spill] sm:$0xff] }
 0x492   : > { %v4051_v52 = vpop.permute.xlu1 %4050  ;;  %v9200_v44 = vsel %vm732_vm7, %v4240_v13, %v4173_v51  ;;  %v4212_v40 = vsel %vm231_vm0, %v8902_v55, %v10124_v27  ;;  %v10125_v13 = vld [vmem:[#allocation48_spill] sm:$0xff]  ;;  %v10129_v55 = vld [vmem:[#allocation22_spill] sm:$0xff] }
 0x493   : > { %4815 = vrot.lane.b32.xlu0 %v4693_v11, %s6871_s21  ;;  %v4243_v32 = vsel %vm231_vm0, %v9210_v24, %v4051_v52  ;;  %v3529_v51 = vsel %vm732_vm7, %v3497_v16, %v10125_v13  ;;  %v10126_v52 = vld [vmem:[#allocation40_spill] sm:$0xff]  ;;  %v4244_v38 = vsel %vm732_vm7, %v4212_v40, %v10127_v49  ;;  %v10128_v11 = vld [vmem:[#allocation41_spill] sm:$0xff] }
 0x494   : > { %6508 = vmatmul.mubr.msk.f32.gmra.mrb[26].mxu1 %vm771_vm6, %v3525_v57  ;;  %4945 = vrot.lane.b32.xlu1 %v4726_v33, %s6872_s22  ;;  %v4213_v57 = vsel %vm231_vm0, %v8916_v45, %v10129_v55  ;;  %v10130_v33 = vld [vmem:[#allocation37_spill] sm:$0xff]  ;;  %v10141_v55 = vld [vmem:[#allocation47_spill] sm:$0xff] }
 0x495   : > { %6510 = vmatprep.mubr.msk.f32.mxu1 %vm771_vm6, %v3526_v12  ;;  %v9216_v9 = vpop.permute.xlu0 %4048  ;;  %v4214_v12 = vsel %vm231_vm0, %v8297_v20, %v10130_v33 }
 0x496   : > { %v4179_v1 = vpop.permute.xlu1 %4178 }
 0x497   : > { %v9222_v31 = vsel %vm732_vm7, %v4243_v32, %v4179_v1  ;;  %4943 = vrot.lane.b32.xlu0 %v4725_v23, %s6872_s22  ;;  %v10131_v32 = vld [vmem:[#allocation50_spill] sm:$0xff]  ;;  %v10133_v23 = vld [vmem:[#allocation39_spill] sm:$0xff] }
 0x498   : > { %6511 = vmatmul.mubr.msk.f32.gmra.mrb[28].mxu1 %vm771_vm6, %v3527_v43  ;;  %4821 = vrot.lane.b32.xlu1 %v10122_v58, %s6871_s21  ;;  %v4245_v1 = vsel %vm732_vm7, %v4213_v57, %v10131_v32  ;;  %v4246_v30 = vsel %vm732_vm7, %v4214_v12, %v10133_v23  ;;  %v4215_v43 = vsel %vm231_vm0, %v8267_v46, %v10134_v39  ;;  %v10142_v12 = vld [vmem:[#allocation28_spill] sm:$0xff]  ;;  %v10143_v32 = vld [vmem:[#allocation49_spill] sm:$0xff]  ;;  %v10145_v23 = vld [vmem:[#allocation51_spill] sm:$0xff] }
 0x499   : > { %6513 = vmatprep.mubr.msk.f32.mxu1 %vm771_vm6, %v3528_v48  ;;  %v9236_v6 = vpop.permute.xlu0 %4176  ;;  %v10135_v48 = vld [vmem:[#allocation42_spill] sm:$0xff]  ;;  %v4247_v16 = vsel %vm732_vm7, %v4215_v43, %v10136_v19 }
 0x49a   : > { %v9238_v61 = vpop.permute.xlu1 %4765  ;;  %v4216_v58 = vsel %vm231_vm0, %v8949_v10, %v10135_v48  ;;  %v10138_v10 = vld [vmem:[#allocation26_spill] sm:$0xff]  ;;  %v10147_v48 = vld [vmem:[#allocation53_spill] sm:$0xff] }
 0x49b   : > { %4819 = vrot.lane.b32.xlu0 %v10126_v52, %s6871_s21  ;;  %v4217_v13 = vsel %vm231_vm0, %v8966_v7, %v10138_v10  ;;  %v10139_v52 = vld [vmem:[#allocation45_spill] sm:$0xff]  ;;  %v10150_v10 = vld [vmem:[#allocation30_spill] sm:$0xff] }
 0x49c   : > { %6514 = vmatmul.mubr.msk.f32.gmra.mrb[30].mxu1 %vm771_vm6, %v3529_v51  ;;  %4949 = vrot.lane.b32.xlu1 %v10128_v11, %s6872_s22  ;;  %v4729_v51 = vld [vmem:[#allocation2 + $0x19a] sm:$0xff]  ;;  %v4218_v49 = vsel %vm231_vm0, %v8974_v8, %v10139_v52  ;;  %v4219_v8 = vsel %vm231_vm0, %v8992_v22, %v10142_v12 }
 0x49d   : > { %6520 = vmatprep.mubr.msk.f32.mxu1 %vm771_vm6, %v4244_v38  ;;  %v9255_v0 = vpop.permute.xlu0 %4763  ;;  %v10140_v38 = vld [vmem:[#allocation54_spill] sm:$0xff]  ;;  %v4250_v57 = vsel %vm732_vm7, %v4218_v49, %v10141_v55  ;;  %v10153_v49 = vld [vmem:[#allocation59_spill] sm:$0xff]  ;;  %v10155_v12 = vld [vmem:[#allocation61_spill] sm:$0xff] }
 0x49e   : > { %v9257_v53 = vpop.permute.xlu1 %4893  ;;  %v4249_v11 = vsel %vm732_vm7, %v4217_v13, %v10140_v38  ;;  %v10151_v13 = vld [vmem:[#allocation57_spill] sm:$0xff] }
 0x49f   : > { %4947 = vrot.lane.b32.xlu0 %v10132_v63, %s6872_s22  ;;  %v10144_v63 = vld [vmem:[#allocation56_spill] sm:$0xff] }
 0x4a0   : > { %6521 = vmatmul.mubr.msk.f32.vlgmr.msra.gmra.mrb[0].mxu1 %vm771_vm6, %v4245_v1  ;;  %4825 = vrot.lane.b32.xlu1 %v4698_v21, %s6871_s21  ;;  %v4220_v1 = vsel %vm231_vm0, %v9000_v25, %v10143_v32  ;;  %v4251_v21 = vsel %vm732_vm7, %v4219_v8, %v10144_v63  ;;  %v4222_v25 = vsel %vm231_vm0, %v9025_v34, %v10147_v48  ;;  %v10156_v8 = vld [vmem:[#allocation62_spill] sm:$0xff] }
 0x4a1   : > { %6655 = vmatpush3.bf16.msk.msra.mxu1 %vm7057_vm5, %v8905_v37  ;;  %6523 = vmatprep.mubr.msk.f32.mxu1 %vm771_vm6, %v4246_v30  ;;  %v9277_v20 = vpop.permute.xlu0 %4891  ;;  %v10137_v37 = vld [vmem:[#allocation44_spill] sm:$0xff]  ;;  %v4252_v30 = vsel %vm732_vm7, %v4220_v1, %v10145_v23  ;;  %v4224_v34 = vsel %vm231_vm0, %v9051_v50, %v10151_v13  ;;  %v4226_v50 = vsel %vm231_vm0, %v9076_v36, %v10155_v12  ;;  %v10157_v1 = vld [vmem:[#allocation63_spill] sm:$0xff] }
 0x4a2   : > { %v9279_v45 = vpop.permute.xlu1 %4769  ;;  %v4248_v27 = vsel %vm732_vm7, %v4216_v58, %v10137_v37  ;;  %v10148_v58 = vld [vmem:[#allocation58_spill] sm:$0xff]  ;;  %v4256_v38 = vsel %vm732_vm7, %v4224_v34, %v10153_v49  ;;  %v4258_v63 = vsel %vm732_vm7, %v4226_v50, %v10157_v1 }
 0x4a3   : > { %4823 = vrot.lane.b32.xlu0 %v4697_v54, %s6871_s21  ;;  %v10146_v54 = vld [vmem:[#allocation29_spill] sm:$0xff]  ;;  %v4639_v50 = vld [vmem:[#allocation2 + $0x60] sm:$0xff] }
 0x4a4   : > { %6524 = vmatmul.mubr.msk.f32.gmra.mrb[2].mxu1 %vm771_vm6, %v4247_v16  ;;  %4953 = vrot.lane.b32.xlu1 %v4730_v3, %s6872_s22  ;;  %v4221_v22 = vsel %vm231_vm0, %v9017_v2, %v10146_v54  ;;  %v10149_v16 = vld [vmem:[#allocation55_spill] sm:$0xff]  ;;  %v4223_v2 = vsel %vm231_vm0, %v9043_v62, %v10150_v10  ;;  %v10159_v54 = vld [vmem:[#allocation64_spill] sm:$0xff] }
 0x4a5   : > { %6526 = vmatprep.mubr.msk.f32.mxu1 %vm771_vm6, %v4248_v27  ;;  %v9295_v46 = vpop.permute.xlu0 %4767  ;;  %v4253_v19 = vsel %vm732_vm7, %v4221_v22, %v10148_v58  ;;  %v4254_v3 = vsel %vm732_vm7, %v4222_v25, %v10149_v16  ;;  %v10160_v22 = vld [vmem:[#allocation65_spill] sm:$0xff] }
 0x4a6   : > { %v9297_v40 = vpop.permute.xlu1 %4897  ;;  %v4228_v48 = vsel %vm231_vm0, %v9102_v14, %v10160_v22  ;;  %v10161_v16 = vld [vmem:[#allocation33_spill] sm:$0xff] }
 0x4a7   : > { %4951 = vrot.lane.b32.xlu0 %v4729_v51, %s6872_s22  ;;  %v10152_v51 = vld [vmem:[#allocation60_spill] sm:$0xff]  ;;  %v4260_v25 = vsel %vm732_vm7, %v4228_v48, %v8921_v56  ;;  %v4644_v48 = vld [vmem:[#allocation2 + $0x98] sm:$0xff] }
 0x4a8   : > { %6527 = vmatmul.mubr.msk.f32.gmra.mrb[4].mxu1 %vm771_vm6, %v4249_v11  ;;  %v4255_v52 = vsel %vm732_vm7, %v4223_v2, %v10152_v51  ;;  %v10162_v2 = vld [vmem:[#allocation11_spill] sm:$0xff] }
 0x4a9   : > { %6529 = vmatprep.mubr.msk.f32.mxu1 %vm771_vm6, %v4250_v57  ;;  %v9312_v33 = vpop.permute.xlu0 %4895  ;;  %v10154_v57 = vld [vmem:[#allocation31_spill] sm:$0xff] }
 0x4aa   : > { %v9314_v7 = vpop.permute.xlu1 %4773  ;;  %v4225_v62 = vsel %vm231_vm0, %v9068_v47, %v10154_v57 }
 0x4ab   : > { %v4257_v32 = vsel %vm732_vm7, %v4225_v62, %v10156_v8  ;;  %v4638_v62 = vld [vmem:[#allocation2 + $0x50] sm:$0xff] }
 0x4ac   : > { %6530 = vmatmul.mubr.msk.f32.gmra.mrb[6].mxu1 %vm771_vm6, %v4251_v21 }
 0x4ad   : > { %6532 = vmatprep.mubr.msk.f32.mxu1 %vm771_vm6, %v4252_v30  ;;  %v9328_v39 = vpop.permute.xlu0 %4771  ;;  %v10158_v30 = vld [vmem:[#allocation32_spill] sm:$0xff] }
 0x4ae   : > { %v9330_v43 = vpop.permute.xlu1 %4901  ;;  %v4227_v47 = vsel %vm231_vm0, %v9094_v18, %v10158_v30  ;;  %v4229_v18 = vsel %vm231_vm0, %v9117_v4, %v10161_v16  ;;  %v4645_v16 = vld [vmem:[#allocation2 + $0xa8] sm:$0xff] }
 0x4af   : > { %v4259_v36 = vsel %vm732_vm7, %v4227_v47, %v10159_v54  ;;  %v4642_v47 = vld [vmem:[#allocation2 + $0x80] sm:$0xff] }
 0x4b0   : > { %6533 = vmatmul.mubr.msk.f32.gmra.mrb[8].mxu1 %vm771_vm6, %v4253_v19 }
 0x4b1   : > { %6535 = vmatprep.mubr.msk.f32.mxu1 %vm771_vm6, %v4254_v3  ;;  %v9344_v37 = vpop.permute.xlu0 %4899  ;;  %v4261_v3 = vsel %vm732_vm7, %v4229_v18, %v8900_v15 }
 0x4b2   : > { %v9346_v27 = vpop.permute.xlu1 %4777 }
 0x4b4   : > { %6536 = vmatmul.mubr.msk.f32.gmra.mrb[10].mxu1 %vm771_vm6, %v4255_v52 }
 0x4b5   : > { %6538 = vmatprep.mubr.msk.f32.mxu1 %vm771_vm6, %v4256_v38  ;;  %v9360_v11 = vpop.permute.xlu0 %4775  ;;  %v4637_v38 = vld [vmem:[#allocation2 + $0x48] sm:$0xff] }
 0x4b6   : > { %v9362_v55 = vpop.permute.xlu1 %4905 }
 0x4b8   : > { %6539 = vmatmul.mubr.msk.f32.gmra.mrb[12].mxu1 %vm771_vm6, %v4257_v32  ;;  %v4640_v32 = vld [vmem:[#allocation2 + $0x68] sm:$0xff] }
 0x4b9   : > { %6541 = vmatprep.mubr.msk.f32.mxu1 %vm771_vm6, %v4258_v63  ;;  %v9376_v21 = vpop.permute.xlu0 %4903  ;;  %v4641_v63 = vld [vmem:[#allocation2 + $0x78] sm:$0xff] }
 0x4ba   : > { %v9378_v23 = vpop.permute.xlu1 %4781 }
 0x4bc   : > { %6542 = vmatmul.mubr.msk.f32.gmra.mrb[14].mxu1 %vm771_vm6, %v4259_v36  ;;  %v4643_v36 = vld [vmem:[#allocation2 + $0x90] sm:$0xff] }
 0x4bd   : > { %6544 = vmatprep.mubr.msk.f32.mxu1 %vm771_vm6, %v4260_v25  ;;  %v9392_v58 = vpop.permute.xlu0 %4779 }
 0x4be   : > { %v9394_v19 = vpop.permute.xlu1 %4909 }
 0x4c0   : > { %6545 = vmatmul.mubr.msk.f32.gmra.mrb[16].mxu1 %vm771_vm6, %v4261_v3 }
 0x4c1   : > { %6547 = vmatprep.mubr.msk.f32.mxu1 %vm771_vm6, %v8977_v28  ;;  %v9404_v56 = vpop.permute.xlu0 %4907 }
 0x4c2   : > { %v9406_v14 = vpop.permute.xlu1 %4785 }
 0x4c4   : > { %6548 = vmatmul.mubr.msk.f32.gmra.mrb[18].mxu1 %vm771_vm6, %v8952_v59 }
 0x4c5   : > { %6550 = vmatprep.mubr.msk.f32.mxu1 %vm771_vm6, %v9028_v35  ;;  %v9412_v10 = vpop.permute.xlu0 %4783 }
 0x4c6   : > { %v9414_v4 = vpop.permute.xlu1 %4913 }
 0x4c8   : > { %6551 = vmatmul.mubr.msk.f32.gmra.mrb[20].mxu1 %vm771_vm6, %v9003_v26 }
 0x4c9   : > { %6553 = vmatprep.mubr.msk.f32.mxu1 %vm771_vm6, %v9079_v42  ;;  %v9420_v15 = vpop.permute.xlu0 %4911 }
 0x4ca   : > { %v9422_v28 = vpop.permute.xlu1 %4789 }
 0x4cc   : > { %6554 = vmatmul.mubr.msk.f32.gmra.mrb[22].mxu1 %vm771_vm6, %v9054_v5 }
 0x4cd   : > { %6556 = vmatprep.mubr.msk.f32.mxu1 %vm771_vm6, %v9125_v17  ;;  %v9428_v59 = vpop.permute.xlu0 %4787  ;;  %v9446_v17 = vld [vmem:[#allocation2 + $0x180] sm:$0xff] }
 0x4ce   : > { %v9430_v35 = vpop.permute.xlu1 %4917 }
 0x4d0   : > { %6557 = vmatmul.mubr.msk.f32.gmra.mrb[24].mxu1 %vm771_vm6, %v10162_v2 }
 0x4d1   : > { %6559 = vmatprep.mubr.msk.f32.mxu1 %vm771_vm6, %v9164_v41  ;;  %v9436_v26 = vpop.permute.xlu0 %4915  ;;  %v4242_v41 = vsel %vm231_vm0, %v9446_v17, %v9216_v9  ;;  %v4636_v9 = vld [vmem:[#allocation2 + $0x38] sm:$0xff] }
 0x4d2   : > { %v9438_v42 = vpop.permute.xlu1 %4793  ;;  %v4274_v34 = vsel %vm732_vm7, %v4242_v41, %v9236_v6  ;;  %v4647_v41 = vld [vmem:[#allocation2 + $0xc0] sm:$0xff] }
 0x4d4   : > { %6560 = vmatmul.mubr.msk.f32.gmra.mrb[26].mxu1 %vm771_vm6, %v9146_v29 }
 0x4d5   : > { %6562 = vmatprep.mubr.msk.f32.mxu1 %vm771_vm6, %v9200_v44  ;;  %v9444_v5 = vpop.permute.xlu0 %4791  ;;  %v4635_v44 = vld [vmem:[#allocation2 + $0x30] sm:$0xff] }
 0x4d6   : > { %v9448_v13 = vpop.permute.xlu1 %4921  ;;  %v4987_v52 = vsel %vm231_vm0, %v4635_v44, %v9255_v0  ;;  %v4648_v44 = vld [vmem:[#allocation2 + $0xc8] sm:$0xff] }
 0x4d7   : > { %v5019_v49 = vsel %vm732_vm7, %v4987_v52, %v9277_v20  ;;  %v4989_v20 = vsel %vm231_vm0, %v4637_v38, %v9295_v46  ;;  %v4991_v46 = vsel %vm231_vm0, %v4639_v50, %v9328_v39  ;;  %v4993_v39 = vsel %vm231_vm0, %v4641_v63, %v9360_v11  ;;  %v4656_v63 = vld [vmem:[#allocation2 + $0x128] sm:$0xff] }
 0x4d8   : > { %6563 = vmatmul.mubr.msk.f32.gmra.mrb[28].mxu1 %vm771_vm6, %v9182_v60  ;;  %v4988_v60 = vsel %vm231_vm0, %v4636_v9, %v9238_v61  ;;  %v4990_v61 = vsel %vm231_vm0, %v4638_v62, %v9279_v45  ;;  %v4992_v45 = vsel %vm231_vm0, %v4640_v32, %v9314_v7  ;;  %v4994_v7 = vsel %vm231_vm0, %v4642_v47, %v9346_v27 }
 0x4d9   : > { %v9457_v29 = vpop.permute.xlu0 %4919  ;;  %6565 = vmatprep.mubr.msk.f32.mxu1 %vm771_vm6, %v4274_v34  ;;  %v5020_v0 = vsel %vm732_vm7, %v4988_v60, %v9257_v53  ;;  %v5022_v53 = vsel %vm732_vm7, %v4990_v61, %v9297_v40  ;;  %v5024_v40 = vsel %vm732_vm7, %v4992_v45, %v9330_v43  ;;  %v5026_v43 = vsel %vm732_vm7, %v4994_v7, %v9362_v55  ;;  %v4650_v60 = vld [vmem:[#allocation2 + $0xe0] sm:$0xff]  ;;  %v4653_v61 = vld [vmem:[#allocation2 + $0x108] sm:$0xff] }
 0x4da   : > { %v9460_v51 = vpop.permute.xlu1 %4797  ;;  %v4995_v11 = vsel %vm231_vm0, %v4643_v36, %v9392_v58  ;;  %v4996_v27 = vsel %vm231_vm0, %v4644_v48, %v9378_v23  ;;  %v4997_v58 = vsel %vm231_vm0, %v4645_v16, %v9412_v10  ;;  %v4999_v10 = vsel %vm231_vm0, %v4647_v41, %v9428_v59  ;;  %v4658_v7 = vld [vmem:[#allocation2 + $0x140] sm:$0xff] }
 0x4db   : > { %v5028_v55 = vsel %vm732_vm7, %v4996_v27, %v9394_v19  ;;  %v5029_v3 = vsel %vm732_vm7, %v4997_v58, %v9420_v15  ;;  %v5031_v15 = vsel %vm732_vm7, %v4999_v10, %v9436_v26  ;;  %v4660_v27 = vld [vmem:[#allocation2 + $0x158] sm:$0xff]  ;;  %v10163_v41 = vld [vmem:[#allocation6_spill] sm:$0xff] }
 0x4dc   : > { %6566 = vmatmul.mubr.msk.f32.gmra.mrb[30].mxu1 %vm771_vm6, %v9222_v31  ;;  %v5021_v31 = vsel %vm732_vm7, %v4989_v20, %v9312_v33  ;;  %v5023_v33 = vsel %vm732_vm7, %v4991_v46, %v9344_v37  ;;  %v5025_v37 = vsel %vm732_vm7, %v4993_v39, %v9376_v21  ;;  %v5027_v21 = vsel %vm732_vm7, %v4995_v11, %v9404_v56  ;;  %v4646_v56 = vld [vmem:[#allocation2 + $0xb0] sm:$0xff] }
 0x4dd   : > { %v9468_v6 = vpop.permute.xlu0 %4795  ;;  %6572 = vmatprep.mubr.msk.f32.mxu1 %vm771_vm6, %v5019_v49  ;;  %v4998_v23 = vsel %vm231_vm0, %v4646_v56, %v9406_v14  ;;  %v5000_v14 = vsel %vm231_vm0, %v4648_v44, %v9422_v28  ;;  %v4649_v49 = vld [vmem:[#allocation2 + $0xd8] sm:$0xff]  ;;  %v5002_v28 = vsel %vm231_vm0, %v4650_v60, %v9438_v42  ;;  %v4659_v11 = vld [vmem:[#allocation2 + $0x150] sm:$0xff] }
 0x4de   : > { %v9473_v57 = vpop.permute.xlu1 %4925  ;;  %v5030_v19 = vsel %vm732_vm7, %v4998_v23, %v9414_v4  ;;  %v5032_v4 = vsel %vm732_vm7, %v5000_v14, %v9430_v35  ;;  %v5001_v59 = vsel %vm231_vm0, %v4649_v49, %v9444_v5  ;;  %v5034_v35 = vsel %vm732_vm7, %v5002_v28, %v9448_v13 }
 0x4df   : > { %v5033_v26 = vsel %vm732_vm7, %v5001_v59, %v9457_v29 }
 0x4e0   : > { %6573 = vmatmul.mubr.msk.f32.vlgmr.msra.gmra.mrb[0].mxu1 %vm771_vm6, %v5020_v0  ;;  %v4651_v0 = vld [vmem:[#allocation2 + $0xf0] sm:$0xff] }
 0x4e1   : > { %v9482_v12 = vpop.permute.xlu0 %4923  ;;  %6575 = vmatprep.mubr.msk.f32.mxu1 %vm771_vm6, %v5021_v31  ;;  %v5003_v5 = vsel %vm231_vm0, %v4651_v0, %v9468_v6  ;;  %v4652_v31 = vld [vmem:[#allocation2 + $0xf8] sm:$0xff] }
 0x4e2   : > { %v9487_v8 = vpop.permute.xlu1 %4801  ;;  %v5035_v29 = vsel %vm732_vm7, %v5003_v5, %v9482_v12  ;;  %v5004_v42 = vsel %vm231_vm0, %v4652_v31, %v9460_v51  ;;  %v4654_v12 = vld [vmem:[#allocation2 + $0x110] sm:$0xff]  ;;  %v4655_v51 = vld [vmem:[#allocation2 + $0x120] sm:$0xff] }
 0x4e3   : > { %v5036_v13 = vsel %vm732_vm7, %v5004_v42, %v9473_v57 }
 0x4e4   : > { %6576 = vmatmul.mubr.msk.f32.gmra.mrb[2].mxu1 %vm771_vm6, %v5022_v53 }
 0x4e5   : > { %v9496_v1 = vpop.permute.xlu0 %4799  ;;  %6578 = vmatprep.mubr.msk.f32.mxu1 %vm771_vm6, %v5023_v33  ;;  %v5006_v33 = vsel %vm231_vm0, %v4654_v12, %v9487_v8 }
 0x4e6   : > { %v9501_v30 = vpop.permute.xlu1 %4929  ;;  %v5005_v6 = vsel %vm231_vm0, %v4653_v61, %v9496_v1 }
 0x4e7   : > { %v5038_v45 = vsel %vm732_vm7, %v5006_v33, %v9501_v30 }
 0x4e8   : > { %6579 = vmatmul.mubr.msk.f32.gmra.mrb[4].mxu1 %vm771_vm6, %v5024_v40 }
 0x4e9   : > { %v4928_v54 = vpop.permute.xlu0 %4927  ;;  %6581 = vmatprep.mubr.msk.f32.mxu1 %vm771_vm6, %v5025_v37  ;;  %v4657_v37 = vld [vmem:[#allocation2 + $0x138] sm:$0xff] }
 0x4ea   : > { %v9513_v22 = vpop.permute.xlu1 %4805  ;;  %v5037_v53 = vsel %vm732_vm7, %v5005_v6, %v4928_v54 }
 0x4eb   : > { %v5008_v39 = vsel %vm231_vm0, %v4656_v63, %v9513_v22 }
 0x4ec   : > { %6582 = vmatmul.mubr.msk.f32.gmra.mrb[6].mxu1 %vm771_vm6, %v5026_v43 }
 0x4ed   : > { %v4804_v25 = vpop.permute.xlu0 %4803  ;;  %6584 = vmatprep.mubr.msk.f32.mxu1 %vm771_vm6, %v5027_v21 }
 0x4ee   : > { %v4934_v18 = vpop.permute.xlu1 %4933  ;;  %v5007_v57 = vsel %vm231_vm0, %v4655_v51, %v4804_v25 }
 0x4ef   : > { %v5040_v47 = vsel %vm732_vm7, %v5008_v39, %v4934_v18 }
 0x4f0   : > { %6585 = vmatmul.mubr.msk.f32.gmra.mrb[8].mxu1 %vm771_vm6, %v5028_v55  ;;  %v4661_v55 = vld [vmem:[#allocation2 + $0x168] sm:$0xff] }
 0x4f1   : > { %v4932_v2 = vpop.permute.xlu0 %4931  ;;  %6587 = vmatprep.mubr.msk.f32.mxu1 %vm771_vm6, %v5029_v3 }
 0x4f2   : > { %v4810_v34 = vpop.permute.xlu1 %4809  ;;  %v5039_v1 = vsel %vm732_vm7, %v5007_v57, %v4932_v2 }
 0x4f3   : > { %v5010_v43 = vsel %vm231_vm0, %v4658_v7, %v4810_v34 }
 0x4f4   : > { %6588 = vmatmul.mubr.msk.f32.gmra.mrb[10].mxu1 %vm771_vm6, %v5030_v19 }
 0x4f5   : > { %v4808_v52 = vpop.permute.xlu0 %4807  ;;  %6590 = vmatprep.mubr.msk.f32.mxu1 %vm771_vm6, %v5031_v15 }
 0x4f6   : > { %v4938_v9 = vpop.permute.xlu1 %4937  ;;  %v5009_v54 = vsel %vm231_vm0, %v4657_v37, %v4808_v52 }
 0x4f7   : > { %v5042_v22 = vsel %vm732_vm7, %v5010_v43, %v4938_v9 }
 0x4f8   : > { %6591 = vmatmul.mubr.msk.f32.gmra.mrb[12].mxu1 %vm771_vm6, %v5032_v4  ;;  %v4666_v4 = vld [vmem:[#allocation2 + $0x1a0] sm:$0xff] }
 0x4f9   : > { %v4936_v38 = vpop.permute.xlu0 %4935  ;;  %6593 = vmatprep.mubr.msk.f32.mxu1 %vm771_vm6, %v5033_v26  ;;  %v4665_v26 = vld [vmem:[#allocation2 + $0x198] sm:$0xff] }
 0x4fa   : > { %v4814_v20 = vpop.permute.xlu1 %4813  ;;  %v5041_v30 = vsel %vm732_vm7, %v5009_v54, %v4936_v38 }
 0x4fb   : > { %v5012_v18 = vsel %vm231_vm0, %v4660_v27, %v4814_v20 }
 0x4fc   : > { %6594 = vmatmul.mubr.msk.f32.gmra.mrb[14].mxu1 %vm771_vm6, %v5034_v35 }
 0x4fd   : > { %v4812_v62 = vpop.permute.xlu0 %4811  ;;  %6596 = vmatprep.mubr.msk.f32.mxu1 %vm771_vm6, %v5035_v29 }
 0x4fe   : > { %v4942_v50 = vpop.permute.xlu1 %4941  ;;  %v5011_v48 = vsel %vm231_vm0, %v4659_v11, %v4812_v62 }
 0x4ff   : > { %v5044_v3 = vsel %vm732_vm7, %v5012_v18, %v4942_v50 }
 0x500   : > { %6597 = vmatmul.mubr.msk.f32.gmra.mrb[16].mxu1 %vm771_vm6, %v5036_v13 }
 0x501   : > { %v4940_v46 = vpop.permute.xlu0 %4939  ;;  %6599 = vmatprep.mubr.msk.f32.mxu1 %vm771_vm6, %v5037_v53 }
 0x502   : > { %v4818_v32 = vpop.permute.xlu1 %4817  ;;  %v5043_v25 = vsel %vm732_vm7, %v5011_v48, %v4940_v46 }
 0x503   : > { %v5014_v34 = vsel %vm231_vm0, %v10163_v41, %v4818_v32 }
 0x504   : > { %6600 = vmatmul.mubr.msk.f32.gmra.mrb[18].mxu1 %vm771_vm6, %v5038_v45 }
 0x505   : > { %v4816_v40 = vpop.permute.xlu0 %4815  ;;  %6602 = vmatprep.mubr.msk.f32.mxu1 %vm771_vm6, %v5039_v1 }
 0x506   : > { %v4946_v8 = vpop.permute.xlu1 %4945  ;;  %v5013_v56 = vsel %vm231_vm0, %v4661_v55, %v4816_v40 }
 0x507   : > { %v5046_v10 = vsel %vm732_vm7, %v5014_v34, %v4946_v8 }
 0x508   : > { %6603 = vmatmul.mubr.msk.f32.gmra.mrb[20].mxu1 %vm771_vm6, %v5040_v47 }
 0x509   : > { %v4944_v36 = vpop.permute.xlu0 %4943  ;;  %6605 = vmatprep.mubr.msk.f32.mxu1 %vm771_vm6, %v5041_v30 }
 0x50a   : > { %v4822_v21 = vpop.permute.xlu1 %4821  ;;  %v5045_v2 = vsel %vm732_vm7, %v5013_v56, %v4944_v36 }
 0x50b   : > { %v5016_v14 = vsel %vm231_vm0, %v9210_v24, %v4822_v21  ;;  %v9620_v24 = vld [vmem:[%s9967_s3 + $0x3] ss:$0 sm:$0xff] }
 0x50c   : > { %6606 = vmatmul.mubr.msk.f32.gmra.mrb[22].mxu1 %vm771_vm6, %v5042_v22 }
 0x50d   : > { %v4820_v16 = vpop.permute.xlu0 %4819  ;;  %6608 = vmatprep.mubr.msk.f32.mxu1 %vm771_vm6, %v5043_v25 }
 0x50e   : > { %v4950_v58 = vpop.permute.xlu1 %4949  ;;  %v5015_v15 = vsel %vm231_vm0, %v9446_v17, %v4820_v16 }
 0x50f   : > { %v5048_v9 = vsel %vm732_vm7, %v5016_v14, %v4950_v58 }
 0x510   : > { %6609 = vmatmul.mubr.msk.f32.gmra.mrb[24].mxu1 %vm771_vm6, %v5044_v3 }
 0x511   : > { %v4948_v23 = vpop.permute.xlu0 %4947  ;;  %6611 = vmatprep.mubr.msk.f32.mxu1 %vm771_vm6, %v5045_v2 }
 0x512   : > { %v4826_v19 = vpop.permute.xlu1 %4825  ;;  %v5047_v44 = vsel %vm732_vm7, %v5015_v15, %v4948_v23 }
 0x513   : > { %v5018_v59 = vsel %vm231_vm0, %v4666_v4, %v4826_v19 }
 0x514   : > { %6612 = vmatmul.mubr.msk.f32.gmra.mrb[26].mxu1 %vm771_vm6, %v5046_v10 }
 0x515   : > { %v4824_v52 = vpop.permute.xlu0 %4823  ;;  %6614 = vmatprep.mubr.msk.f32.mxu1 %vm771_vm6, %v5047_v44 }
 0x516   : > { %v4954_v49 = vpop.permute.xlu1 %4953  ;;  %v5017_v17 = vsel %vm231_vm0, %v4665_v26, %v4824_v52 }
 0x517   : > { %v5050_v60 = vsel %vm732_vm7, %v5018_v59, %v4954_v49 }
 0x518   : > { %6615 = vmatmul.mubr.msk.f32.gmra.mrb[28].mxu1 %vm771_vm6, %v5048_v9 }
 0x519   : > { %v4952_v38 = vpop.permute.xlu0 %4951 }
 0x51a   : > { %v5049_v28 = vsel %vm732_vm7, %v5017_v17, %v4952_v38 }
 0x51b   : > { %6617 = vmatprep.mubr.msk.f32.mxu1 %vm771_vm6, %v5049_v28 }
 0x51c   : > { %6618 = vmatmul.mubr.msk.f32.gmra.mrb[30].mxu1 %vm771_vm6, %v5050_v60 }
 0x5b3   : > { %v6574_v0 = vpop.f32.mrb[0].mxu1 }
 0x5b4   : > { %v6688_v20 = vadd.f32 %v6574_v0, %v9620_v24  ;;  %v5219_v35 = vpop.f32.mrb[1].mxu1 }
 0x5b5   : > { %v6689_v5 = vadd.f32 %v9620_v24, %v5219_v35 }
 0x5b6   : > { %5411 = vst.msk [vmem:[#allocation3 + $0x8] sm:$0xff] %vm231_vm0, %v6688_v20  ;;  %v5443_v29 = vsel %vm231_vm0, %v6688_v20, 0.0  ;;  %v5513_v31 = vmul.f32 %v6688_v20, %v6688_v20 }
 0x5b7   : > { %5410 = vst.msk [vmem:[#allocation3] sm:$0xff] %vm231_vm0, %v6689_v5  ;;  %v5442_v62 = vsel %vm231_vm0, %v6689_v5, 0.0  ;;  %v5512_v42 = vmul.f32 %v6689_v5, %v6689_v5  ;;  %v6577_v61 = vpop.f32.mrb[2].mxu1 }
 0x5b8   : > { %v5545_v50 = vsel %vm231_vm0, %v5513_v31, 0.0  ;;  %v5444_v13 = vadd.f32 %v5443_v29, %v5442_v62  ;;  %v6690_v6 = vadd.f32 %v6577_v61, %v9620_v24  ;;  %v5229_v53 = vpop.f32.mrb[3].mxu1 }
 0x5b9   : > { %v5544_v12 = vsel %vm231_vm0, %v5512_v42, 0.0  ;;  %v6691_v46 = vadd.f32 %v9620_v24, %v5229_v53 }
 0x5ba   : > { %v5546_v33 = vadd.f32 %v5545_v50, %v5544_v12  ;;  %5413 = vst.msk [vmem:[#allocation3 + $0x18] sm:$0xff] %vm231_vm0, %v6690_v6  ;;  %v5515_v51 = vmul.f32 %v6690_v6, %v6690_v6  ;;  %v5447_v39 = vsel %vm231_vm0, %v6690_v6, 0.0 }
 0x5bb   : > { %5412 = vst.msk [vmem:[#allocation3 + $0x10] sm:$0xff] %vm231_vm0, %v6691_v46  ;;  %v5445_v32 = vsel %vm231_vm0, %v6691_v46, 0.0  ;;  %v5514_v45 = vmul.f32 %v6691_v46, %v6691_v46  ;;  %v6580_v57 = vpop.f32.mrb[4].mxu1 }
 0x5bc   : > { %v5446_v1 = vadd.f32 %v5445_v32, %v5444_v13  ;;  %v6692_v63 = vadd.f32 %v6580_v57, %v9620_v24  ;;  %v5239_v40 = vpop.f32.mrb[5].mxu1  ;;  %v5549_v30 = vsel %vm231_vm0, %v5515_v51, 0.0 }
 0x5bd   : > { %v5547_v37 = vsel %vm231_vm0, %v5514_v45, 0.0  ;;  %v6693_v8 = vadd.f32 %v9620_v24, %v5239_v40 }
 0x5be   : > { %v5548_v47 = vadd.f32 %v5547_v37, %v5546_v33  ;;  %5415 = vst.msk [vmem:[#allocation3 + $0x28] sm:$0xff] %vm231_vm0, %v6692_v63  ;;  %v5448_v54 = vadd.f32 %v5447_v39, %v5446_v1  ;;  %v5517_v7 = vmul.f32 %v6692_v63, %v6692_v63  ;;  %v5451_v27 = vsel %vm231_vm0, %v6692_v63, 0.0 }
 0x5bf   : > { %5414 = vst.msk [vmem:[#allocation3 + $0x20] sm:$0xff] %vm231_vm0, %v6693_v8  ;;  %v5449_v36 = vsel %vm231_vm0, %v6693_v8, 0.0  ;;  %v5516_v43 = vmul.f32 %v6693_v8, %v6693_v8  ;;  %v6583_v11 = vpop.f32.mrb[6].mxu1 }
 0x5c0   : > { %v5450_v21 = vadd.f32 %v5449_v36, %v5448_v54  ;;  %v5550_v22 = vadd.f32 %v5549_v30, %v5548_v47  ;;  %v6694_v48 = vadd.f32 %v6583_v11, %v9620_v24  ;;  %v5249_v25 = vpop.f32.mrb[7].mxu1  ;;  %v5553_v3 = vsel %vm231_vm0, %v5517_v7, 0.0 }
 0x5c1   : > { %v5551_v16 = vsel %vm231_vm0, %v5516_v43, 0.0  ;;  %v6695_v18 = vadd.f32 %v9620_v24, %v5249_v25 }
 0x5c2   : > { %v5552_v55 = vadd.f32 %v5551_v16, %v5550_v22  ;;  %5417 = vst.msk [vmem:[#allocation3 + $0x38] sm:$0xff] %vm231_vm0, %v6694_v48  ;;  %v5452_v58 = vadd.f32 %v5451_v27, %v5450_v21  ;;  %v5519_v56 = vmul.f32 %v6694_v48, %v6694_v48  ;;  %v5455_v44 = vsel %vm231_vm0, %v6694_v48, 0.0 }
 0x5c3   : > { %5416 = vst.msk [vmem:[#allocation3 + $0x30] sm:$0xff] %vm231_vm0, %v6695_v18  ;;  %v5453_v2 = vsel %vm231_vm0, %v6695_v18, 0.0  ;;  %v5518_v23 = vmul.f32 %v6695_v18, %v6695_v18  ;;  %v6586_v41 = vpop.f32.mrb[8].mxu1 }
 0x5c4   : > { %v5454_v34 = vadd.f32 %v5453_v2, %v5452_v58  ;;  %v5554_v19 = vadd.f32 %v5553_v3, %v5552_v55  ;;  %v6696_v10 = vadd.f32 %v6586_v41, %v9620_v24  ;;  %v5259_v15 = vpop.f32.mrb[9].mxu1  ;;  %v5557_v4 = vsel %vm231_vm0, %v5519_v56, 0.0 }
 0x5c5   : > { %v5555_v52 = vsel %vm231_vm0, %v5518_v23, 0.0  ;;  %v6697_v14 = vadd.f32 %v9620_v24, %v5259_v15 }
 0x5c6   : > { %v5556_v49 = vadd.f32 %v5555_v52, %v5554_v19  ;;  %5419 = vst.msk [vmem:[#allocation3 + $0x48] sm:$0xff] %vm231_vm0, %v6696_v10  ;;  %v5456_v9 = vadd.f32 %v5455_v44, %v5454_v34  ;;  %v5521_v59 = vmul.f32 %v6696_v10, %v6696_v10  ;;  %v5459_v35 = vsel %vm231_vm0, %v6696_v10, 0.0 }
 0x5c7   : > { %5418 = vst.msk [vmem:[#allocation3 + $0x40] sm:$0xff] %vm231_vm0, %v6697_v14  ;;  %v5457_v26 = vsel %vm231_vm0, %v6697_v14, 0.0  ;;  %v5520_v17 = vmul.f32 %v6697_v14, %v6697_v14  ;;  %v6589_v60 = vpop.f32.mrb[10].mxu1 }
 0x5c8   : > { %v5458_v38 = vadd.f32 %v5457_v26, %v5456_v9  ;;  %v5558_v28 = vadd.f32 %v5557_v4, %v5556_v49  ;;  %v6698_v0 = vadd.f32 %v6589_v60, %v9620_v24  ;;  %v5269_v20 = vpop.f32.mrb[11].mxu1  ;;  %v5561_v42 = vsel %vm231_vm0, %v5521_v59, 0.0 }
 0x5c9   : > { %v5559_v5 = vsel %vm231_vm0, %v5520_v17, 0.0  ;;  %v6699_v29 = vadd.f32 %v9620_v24, %v5269_v20 }
 0x5ca   : > { %v5560_v31 = vadd.f32 %v5559_v5, %v5558_v28  ;;  %5421 = vst.msk [vmem:[#allocation3 + $0x58] sm:$0xff] %vm231_vm0, %v6698_v0  ;;  %v5460_v62 = vadd.f32 %v5459_v35, %v5458_v38  ;;  %v5523_v61 = vmul.f32 %v6698_v0, %v6698_v0  ;;  %v5463_v51 = vsel %vm231_vm0, %v6698_v0, 0.0 }
 0x5cb   : > { %5420 = vst.msk [vmem:[#allocation3 + $0x50] sm:$0xff] %vm231_vm0, %v6699_v29  ;;  %v5461_v50 = vsel %vm231_vm0, %v6699_v29, 0.0  ;;  %v5522_v13 = vmul.f32 %v6699_v29, %v6699_v29  ;;  %v6592_v6 = vpop.f32.mrb[12].mxu1 }
 0x5cc   : > { %v5462_v53 = vadd.f32 %v5461_v50, %v5460_v62  ;;  %v5562_v12 = vadd.f32 %v5561_v42, %v5560_v31  ;;  %v6700_v46 = vadd.f32 %v6592_v6, %v9620_v24  ;;  %v5279_v33 = vpop.f32.mrb[13].mxu1  ;;  %v5565_v63 = vsel %vm231_vm0, %v5523_v61, 0.0 }
 0x5cd   : > { %v5563_v32 = vsel %vm231_vm0, %v5522_v13, 0.0  ;;  %v6701_v45 = vadd.f32 %v9620_v24, %v5279_v33 }
 0x5ce   : > { %v5564_v57 = vadd.f32 %v5563_v32, %v5562_v12  ;;  %5423 = vst.msk [vmem:[#allocation3 + $0x68] sm:$0xff] %vm231_vm0, %v6700_v46  ;;  %v5464_v1 = vadd.f32 %v5463_v51, %v5462_v53  ;;  %v5525_v40 = vmul.f32 %v6700_v46, %v6700_v46  ;;  %v5467_v36 = vsel %vm231_vm0, %v6700_v46, 0.0 }
 0x5cf   : > { %5422 = vst.msk [vmem:[#allocation3 + $0x60] sm:$0xff] %vm231_vm0, %v6701_v45  ;;  %v5465_v39 = vsel %vm231_vm0, %v6701_v45, 0.0  ;;  %v5524_v37 = vmul.f32 %v6701_v45, %v6701_v45  ;;  %v6595_v8 = vpop.f32.mrb[14].mxu1 }
 0x5d0   : > { %v5466_v47 = vadd.f32 %v5465_v39, %v5464_v1  ;;  %v5566_v54 = vadd.f32 %v5565_v63, %v5564_v57  ;;  %v6702_v30 = vadd.f32 %v6595_v8, %v9620_v24  ;;  %v5289_v7 = vpop.f32.mrb[15].mxu1  ;;  %v5569_v48 = vsel %vm231_vm0, %v5525_v40, 0.0 }
 0x5d1   : > { %v5567_v43 = vsel %vm231_vm0, %v5524_v37, 0.0  ;;  %v6703_v11 = vadd.f32 %v9620_v24, %v5289_v7 }
 0x5d2   : > { %v5568_v21 = vadd.f32 %v5567_v43, %v5566_v54  ;;  %5425 = vst.msk [vmem:[#allocation3 + $0x78] sm:$0xff] %vm231_vm0, %v6702_v30  ;;  %v5468_v22 = vadd.f32 %v5467_v36, %v5466_v47  ;;  %v5527_v25 = vmul.f32 %v6702_v30, %v6702_v30  ;;  %v5471_v2 = vsel %vm231_vm0, %v6702_v30, 0.0 }
 0x5d3   : > { %5424 = vst.msk [vmem:[#allocation3 + $0x70] sm:$0xff] %vm231_vm0, %v6703_v11  ;;  %v5469_v27 = vsel %vm231_vm0, %v6703_v11, 0.0  ;;  %v5526_v16 = vmul.f32 %v6703_v11, %v6703_v11  ;;  %v6598_v18 = vpop.f32.mrb[16].mxu1 }
 0x5d4   : > { %v5470_v55 = vadd.f32 %v5469_v27, %v5468_v22  ;;  %v5570_v58 = vadd.f32 %v5569_v48, %v5568_v21  ;;  %v6704_v3 = vadd.f32 %v6598_v18, %v9620_v24  ;;  %v5299_v56 = vpop.f32.mrb[17].mxu1  ;;  %v5573_v10 = vsel %vm231_vm0, %v5527_v25, 0.0 }
 0x5d5   : > { %v5571_v23 = vsel %vm231_vm0, %v5526_v16, 0.0  ;;  %v6705_v41 = vadd.f32 %v9620_v24, %v5299_v56 }
 0x5d6   : > { %v5572_v34 = vadd.f32 %v5571_v23, %v5570_v58  ;;  %5427 = vst.msk [vmem:[#allocation3 + $0x88] sm:$0xff] %vm231_vm0, %v6704_v3  ;;  %v5472_v19 = vadd.f32 %v5471_v2, %v5470_v55  ;;  %v5529_v15 = vmul.f32 %v6704_v3, %v6704_v3  ;;  %v5475_v26 = vsel %vm231_vm0, %v6704_v3, 0.0 }
 0x5d7   : > { %5426 = vst.msk [vmem:[#allocation3 + $0x80] sm:$0xff] %vm231_vm0, %v6705_v41  ;;  %v5473_v44 = vsel %vm231_vm0, %v6705_v41, 0.0  ;;  %v5528_v52 = vmul.f32 %v6705_v41, %v6705_v41  ;;  %v6601_v14 = vpop.f32.mrb[18].mxu1 }
 0x5d8   : > { %v5474_v49 = vadd.f32 %v5473_v44, %v5472_v19  ;;  %v5574_v9 = vadd.f32 %v5573_v10, %v5572_v34  ;;  %v6706_v4 = vadd.f32 %v6601_v14, %v9620_v24  ;;  %v5309_v59 = vpop.f32.mrb[19].mxu1  ;;  %v5577_v0 = vsel %vm231_vm0, %v5529_v15, 0.0 }
 0x5d9   : > { %v5575_v17 = vsel %vm231_vm0, %v5528_v52, 0.0  ;;  %v6707_v60 = vadd.f32 %v9620_v24, %v5309_v59 }
 0x5da   : > { %v5576_v38 = vadd.f32 %v5575_v17, %v5574_v9  ;;  %5429 = vst.msk [vmem:[#allocation3 + $0x98] sm:$0xff] %vm231_vm0, %v6706_v4  ;;  %v5476_v28 = vadd.f32 %v5475_v26, %v5474_v49  ;;  %v5531_v20 = vmul.f32 %v6706_v4, %v6706_v4  ;;  %v5479_v50 = vsel %vm231_vm0, %v6706_v4, 0.0 }
 0x5db   : > { %5428 = vst.msk [vmem:[#allocation3 + $0x90] sm:$0xff] %vm231_vm0, %v6707_v60  ;;  %v5477_v35 = vsel %vm231_vm0, %v6707_v60, 0.0  ;;  %v5530_v5 = vmul.f32 %v6707_v60, %v6707_v60  ;;  %v6604_v29 = vpop.f32.mrb[20].mxu1 }
 0x5dc   : > { %v5478_v31 = vadd.f32 %v5477_v35, %v5476_v28  ;;  %v5578_v62 = vadd.f32 %v5577_v0, %v5576_v38  ;;  %v6708_v42 = vadd.f32 %v6604_v29, %v9620_v24  ;;  %v5319_v61 = vpop.f32.mrb[21].mxu1  ;;  %v5581_v46 = vsel %vm231_vm0, %v5531_v20, 0.0 }
 0x5dd   : > { %v5579_v13 = vsel %vm231_vm0, %v5530_v5, 0.0  ;;  %v6709_v6 = vadd.f32 %v9620_v24, %v5319_v61 }
 0x5de   : > { %v5580_v53 = vadd.f32 %v5579_v13, %v5578_v62  ;;  %5431 = vst.msk [vmem:[#allocation3 + $0xa8] sm:$0xff] %vm231_vm0, %v6708_v42  ;;  %v5480_v12 = vadd.f32 %v5479_v50, %v5478_v31  ;;  %v5533_v33 = vmul.f32 %v6708_v42, %v6708_v42  ;;  %v5483_v39 = vsel %vm231_vm0, %v6708_v42, 0.0 }
 0x5df   : > { %5430 = vst.msk [vmem:[#allocation3 + $0xa0] sm:$0xff] %vm231_vm0, %v6709_v6  ;;  %v5481_v51 = vsel %vm231_vm0, %v6709_v6, 0.0  ;;  %v5532_v32 = vmul.f32 %v6709_v6, %v6709_v6  ;;  %v6607_v45 = vpop.f32.mrb[22].mxu1 }
 0x5e0   : > { %v5482_v57 = vadd.f32 %v5481_v51, %v5480_v12  ;;  %v5582_v1 = vadd.f32 %v5581_v46, %v5580_v53  ;;  %v6710_v63 = vadd.f32 %v6607_v45, %v9620_v24  ;;  %v5329_v40 = vpop.f32.mrb[23].mxu1  ;;  %v5585_v30 = vsel %vm231_vm0, %v5533_v33, 0.0 }
 0x5e1   : > { %v5583_v37 = vsel %vm231_vm0, %v5532_v32, 0.0  ;;  %v6711_v8 = vadd.f32 %v9620_v24, %v5329_v40 }
 0x5e2   : > { %v5584_v47 = vadd.f32 %v5583_v37, %v5582_v1  ;;  %5433 = vst.msk [vmem:[#allocation3 + $0xb8] sm:$0xff] %vm231_vm0, %v6710_v63  ;;  %v5484_v54 = vadd.f32 %v5483_v39, %v5482_v57  ;;  %v5535_v7 = vmul.f32 %v6710_v63, %v6710_v63  ;;  %v5487_v27 = vsel %vm231_vm0, %v6710_v63, 0.0 }
 0x5e3   : > { %5432 = vst.msk [vmem:[#allocation3 + $0xb0] sm:$0xff] %vm231_vm0, %v6711_v8  ;;  %v5485_v36 = vsel %vm231_vm0, %v6711_v8, 0.0  ;;  %v5534_v43 = vmul.f32 %v6711_v8, %v6711_v8  ;;  %v6610_v11 = vpop.f32.mrb[24].mxu1 }
 0x5e4   : > { %v5486_v21 = vadd.f32 %v5485_v36, %v5484_v54  ;;  %v5586_v22 = vadd.f32 %v5585_v30, %v5584_v47  ;;  %v6712_v48 = vadd.f32 %v6610_v11, %v9620_v24  ;;  %v5339_v25 = vpop.f32.mrb[25].mxu1  ;;  %v5589_v3 = vsel %vm231_vm0, %v5535_v7, 0.0 }
 0x5e5   : > { %v5587_v16 = vsel %vm231_vm0, %v5534_v43, 0.0  ;;  %v6713_v18 = vadd.f32 %v9620_v24, %v5339_v25 }
 0x5e6   : > { %v5588_v55 = vadd.f32 %v5587_v16, %v5586_v22  ;;  %5435 = vst.msk [vmem:[#allocation3 + $0xc8] sm:$0xff] %vm231_vm0, %v6712_v48  ;;  %v5488_v58 = vadd.f32 %v5487_v27, %v5486_v21  ;;  %v5537_v56 = vmul.f32 %v6712_v48, %v6712_v48  ;;  %v5491_v44 = vsel %vm231_vm0, %v6712_v48, 0.0 }
 0x5e7   : > { %5434 = vst.msk [vmem:[#allocation3 + $0xc0] sm:$0xff] %vm231_vm0, %v6713_v18  ;;  %v5489_v2 = vsel %vm231_vm0, %v6713_v18, 0.0  ;;  %v5536_v23 = vmul.f32 %v6713_v18, %v6713_v18  ;;  %v6613_v41 = vpop.f32.mrb[26].mxu1 }
 0x5e8   : > { %v5490_v34 = vadd.f32 %v5489_v2, %v5488_v58  ;;  %v5590_v19 = vadd.f32 %v5589_v3, %v5588_v55  ;;  %v6714_v10 = vadd.f32 %v6613_v41, %v9620_v24  ;;  %v5349_v15 = vpop.f32.mrb[27].mxu1  ;;  %v5593_v4 = vsel %vm231_vm0, %v5537_v56, 0.0 }
 0x5e9   : > { %v5591_v52 = vsel %vm231_vm0, %v5536_v23, 0.0  ;;  %v6715_v14 = vadd.f32 %v9620_v24, %v5349_v15  ;;  %v5614_v15 = vld [vmem:[%s9967_s3 + $0x4] sm:$0x1] }
 0x5ea   : > { %v5592_v49 = vadd.f32 %v5591_v52, %v5590_v19  ;;  %5437 = vst.msk [vmem:[#allocation3 + $0xd8] sm:$0xff] %vm231_vm0, %v6714_v10  ;;  %v5492_v9 = vadd.f32 %v5491_v44, %v5490_v34  ;;  %v5539_v59 = vmul.f32 %v6714_v10, %v6714_v10  ;;  %v5495_v35 = vsel %vm231_vm0, %v6714_v10, 0.0 }
 0x5eb   : > { %5436 = vst.msk [vmem:[#allocation3 + $0xd0] sm:$0xff] %vm231_vm0, %v6715_v14  ;;  %v5493_v26 = vsel %vm231_vm0, %v6715_v14, 0.0  ;;  %v5538_v17 = vmul.f32 %v6715_v14, %v6715_v14  ;;  %v6616_v60 = vpop.f32.mrb[28].mxu1  ;;  %v9756_v14 = vld [vmem:[%s9967_s3 + $0x5] sm:$0x1] }
 0x5ec   : > { %v5494_v38 = vadd.f32 %v5493_v26, %v5492_v9  ;;  %v5594_v28 = vadd.f32 %v5593_v4, %v5592_v49  ;;  %v6716_v0 = vadd.f32 %v6616_v60, %v9620_v24  ;;  %v5359_v20 = vpop.f32.mrb[29].mxu1  ;;  %v5597_v42 = vsel %vm231_vm0, %v5539_v59, 0.0  ;;  %v10164_v9 = vld [vmem:[#allocation4_spill] sm:$0xff]  ;;  %v5627_v59 = vld [vmem:[#allocation3 + $0x8] sm:$0xff]  ;;  %v5628_v60 = vld [vmem:[#allocation3 + $0x10] sm:$0xff] }
 0x5ed   : > { %v5595_v5 = vsel %vm231_vm0, %v5538_v17, 0.0  ;;  %v6717_v29 = vadd.f32 %v9620_v24, %v5359_v20  ;;  %v5626_v26 = vld [vmem:[#allocation3] sm:$0xff]  ;;  %v5629_v17 = vld [vmem:[#allocation3 + $0x18] sm:$0xff]  ;;  %v5632_v20 = vld [vmem:[#allocation3 + $0x30] sm:$0xff] }
 0x5ee   : > { %v5596_v31 = vadd.f32 %v5595_v5, %v5594_v28  ;;  %5439 = vst.msk [vmem:[#allocation3 + $0xe8] sm:$0xff] %vm231_vm0, %v6716_v0  ;;  %v5496_v62 = vadd.f32 %v5495_v35, %v5494_v38  ;;  %v5541_v61 = vmul.f32 %v6716_v0, %v6716_v0  ;;  %v5499_v51 = vsel %vm231_vm0, %v6716_v0, 0.0  ;;  %v5631_v38 = vld [vmem:[#allocation3 + $0x28] sm:$0xff]  ;;  %v5630_v28 = vld [vmem:[#allocation3 + $0x20] sm:$0xff]  ;;  %v5633_v0 = vld [vmem:[#allocation3 + $0x38] sm:$0xff] }
 0x5ef   : > { %5438 = vst.msk [vmem:[#allocation3 + $0xe0] sm:$0xff] %vm231_vm0, %v6717_v29  ;;  %v5497_v50 = vsel %vm231_vm0, %v6717_v29, 0.0  ;;  %v5540_v13 = vmul.f32 %v6717_v29, %v6717_v29  ;;  %v6619_v6 = vpop.f32.mrb[30].mxu1  ;;  %v5635_v35 = vld [vmem:[#allocation3 + $0x48] sm:$0xff]  ;;  %v5634_v5 = vld [vmem:[#allocation3 + $0x40] sm:$0xff]  ;;  %v5637_v29 = vld [vmem:[#allocation3 + $0x58] sm:$0xff] }
 0x5f0   : > { %v5498_v53 = vadd.f32 %v5497_v50, %v5496_v62  ;;  %v5598_v12 = vadd.f32 %v5597_v42, %v5596_v31  ;;  %v6718_v46 = vadd.f32 %v6619_v6, %v9620_v24  ;;  %v5369_v33 = vpop.f32.mrb[31].mxu1  ;;  %v5601_v63 = vsel %vm231_vm0, %v5541_v61, 0.0  ;;  %v5636_v42 = vld [vmem:[#allocation3 + $0x50] sm:$0xff]  ;;  %v5639_v61 = vld [vmem:[#allocation3 + $0x68] sm:$0xff]  ;;  %v5638_v50 = vld [vmem:[#allocation3 + $0x60] sm:$0xff] }
 0x5f1   : > { %v5599_v32 = vsel %vm231_vm0, %v5540_v13, 0.0  ;;  %v6719_v45 = vadd.f32 %v9620_v24, %v5369_v33  ;;  %v5640_v33 = vld [vmem:[#allocation3 + $0x70] sm:$0xff] }
 0x5f2   : > { %v5600_v57 = vadd.f32 %v5599_v32, %v5598_v12  ;;  %5441 = vst.msk [vmem:[#allocation3 + $0xf8] sm:$0xff] %vm231_vm0, %v6718_v46  ;;  %v5500_v1 = vadd.f32 %v5499_v51, %v5498_v53  ;;  %v5543_v40 = vmul.f32 %v6718_v46, %v6718_v46  ;;  %v5503_v54 = vsel %vm231_vm0, %v6718_v46, 0.0  ;;  %v5641_v46 = vld [vmem:[#allocation3 + $0x78] sm:$0xff]  ;;  %v5643_v51 = vld [vmem:[#allocation3 + $0x88] sm:$0xff] }
 0x5f3   : > { %5440 = vst.msk [vmem:[#allocation3 + $0xf0] sm:$0xff] %vm231_vm0, %v6719_v45  ;;  %v5501_v39 = vsel %vm231_vm0, %v6719_v45, 0.0  ;;  %v5542_v37 = vmul.f32 %v6719_v45, %v6719_v45 }
 0x5f4   : > { %v5502_v8 = vadd.f32 %v5501_v39, %v5500_v1  ;;  %v5602_v47 = vadd.f32 %v5601_v63, %v5600_v57  ;;  %v5605_v36 = vsel %vm231_vm0, %v5543_v40, 0.0  ;;  %v5642_v63 = vld [vmem:[#allocation3 + $0x80] sm:$0xff]  ;;  %v5645_v40 = vld [vmem:[#allocation3 + $0x98] sm:$0xff]  ;;  %v5644_v39 = vld [vmem:[#allocation3 + $0x90] sm:$0xff] }
 0x5f5   : > { %v5603_v30 = vsel %vm231_vm0, %v5542_v37, 0.0 }
 0x5f6   : > { %v5504_v7 = vadd.f32 %v5503_v54, %v5502_v8  ;;  %v5604_v24 = vadd.f32 %v5603_v30, %v5602_v47  ;;  %v5647_v30 = vld [vmem:[#allocation3 + $0xa8] sm:$0xff] }
 0x5f8   : > { %v5505_v43 = vrot.slane %v5504_v7, 4  ;;  %v5606_v11 = vadd.f32 %v5605_v36, %v5604_v24  ;;  %v5649_v24 = vld [vmem:[#allocation3 + $0xb8] sm:$0xff] }
 0x5fa   : > { %v5506_v21 = vadd.f32 %v5505_v43, %v5504_v7  ;;  %v5607_v22 = vrot.slane %v5606_v11, 4  ;;  %v5646_v7 = vld [vmem:[#allocation3 + $0xa0] sm:$0xff] }
 0x5fc   : > { %v5507_v48 = vrot.slane %v5506_v21, 2  ;;  %v5608_v25 = vadd.f32 %v5607_v22, %v5606_v11  ;;  %v5648_v22 = vld [vmem:[#allocation3 + $0xb0] sm:$0xff] }
 0x5fe   : > { %v5508_v27 = vadd.f32 %v5507_v48, %v5506_v21  ;;  %v5609_v16 = vrot.slane %v5608_v25, 2  ;;  %v5651_v48 = vld [vmem:[#allocation3 + $0xc8] sm:$0xff] }
 0x600   : > { %v5509_v18 = vrot.slane %v5508_v27, 1  ;;  %v5610_v55 = vadd.f32 %v5609_v16, %v5608_v25  ;;  %v5650_v25 = vld [vmem:[#allocation3 + $0xc0] sm:$0xff] }
 0x602   : > { %v5510_v58 = vadd.f32 %v5509_v18, %v5508_v27  ;;  %v5611_v3 = vrot.slane %v5610_v55, 1 }
 0x604   : > { %v5612_v56 = vadd.f32 %v5611_v3, %v5610_v55  ;;  %v5616_v2 = vmul.f32 0.00390625, %v5510_v58  ;;  %v5653_v58 = vld [vmem:[#allocation3 + $0xd8] sm:$0xff]  ;;  %v5652_v3 = vld [vmem:[#allocation3 + $0xd0] sm:$0xff] }
 0x606   : > { %v5617_v23 = vmul.f32 0.00390625, %v5612_v56  ;;  %v5618_v41 = vmul.f32 %v5616_v2, %v5616_v2  ;;  %v5655_v56 = vld [vmem:[#allocation3 + $0xe8] sm:$0xff] }
 0x608   : > { %v5619_v34 = vsub.f32 %v5617_v23, %v5618_v41 }
 0x60a   : > { %v5620_v19 = vmax.f32 %v5619_v34, 0.0 }
 0x60c   : > { %v5621_v10 = vadd.f32 1e-05, %v5620_v19  ;;  %v5654_v19 = vld [vmem:[#allocation3 + $0xe0] sm:$0xff] }
 0x60e   : > { %6861 = vrsqrt.f32 %v5621_v10  ;;  %v5657_v10 = vld [vmem:[#allocation3 + $0xf8] sm:$0xff] }
 0x618   : > { %v6862_v44 = vpop.eup %6861 }
 0x619   : > { %v5623_v52 = vmul.f32 %v6862_v44, %v5614_v15  ;;  %v5656_v15 = vld [vmem:[#allocation3 + $0xf0] sm:$0xff] }
 0x61b   : > { %v9758_v49 = vmul.f32 %v5623_v52, %v5616_v2  ;;  %v9761_v4 = vrot.slane %v5623_v52, %v10164_v9 }
 0x61d   : > { %v5625_v31 = vsub.f32 %v9756_v14, %v9758_v49  ;;  %v5662_v62 = vmul.f32 %v9761_v4, %v5626_v26  ;;  %v5663_v13 = vmul.f32 %v9761_v4, %v5627_v59  ;;  %v5664_v6 = vmul.f32 %v9761_v4, %v5628_v60 }
 0x61e   : > { %v5665_v53 = vmul.f32 %v9761_v4, %v5629_v17  ;;  %v5666_v12 = vmul.f32 %v9761_v4, %v5630_v28  ;;  %v5667_v32 = vmul.f32 %v9761_v4, %v5631_v38  ;;  %v5668_v45 = vmul.f32 %v9761_v4, %v5632_v20 }
 0x61f   : > { %v5669_v57 = vmul.f32 %v9761_v4, %v5633_v0  ;;  %v5670_v1 = vmul.f32 %v9761_v4, %v5634_v5  ;;  %v5671_v37 = vmul.f32 %v9761_v4, %v5635_v35  ;;  %v5672_v8 = vmul.f32 %v9761_v4, %v5636_v42 }
 0x620   : > { %v5673_v47 = vmul.f32 %v9761_v4, %v5637_v29  ;;  %v5674_v54 = vmul.f32 %v9761_v4, %v5638_v50  ;;  %v5675_v36 = vmul.f32 %v9761_v4, %v5639_v61  ;;  %v5676_v43 = vmul.f32 %v9761_v4, %v5640_v33  ;;  %v5733_v33 = vld [vmem:[%s6915_s20 + $0x18] sm:$0xff] }
 0x621   : > { %v5677_v11 = vmul.f32 %v9761_v4, %v5641_v46  ;;  %v5678_v21 = vmul.f32 %v9761_v4, %v5642_v63  ;;  %v5679_v27 = vmul.f32 %v9761_v4, %v5643_v51  ;;  %v5680_v16 = vmul.f32 %v9761_v4, %v5644_v39  ;;  %v5732_v46 = vld [vmem:[%s6915_s20 + $0x10] sm:$0xff]  ;;  %v5735_v63 = vld [vmem:[%s6915_s20 + $0x28] sm:$0xff]  ;;  %v5737_v39 = vld [vmem:[%s6915_s20 + $0x38] sm:$0xff] }
 0x622   : > { %v5681_v18 = vmul.f32 %v9761_v4, %v5645_v40  ;;  %v5682_v55 = vmul.f32 %v9761_v4, %v5646_v7  ;;  %v5683_v2 = vmul.f32 %v9761_v4, %v5647_v30  ;;  %v5684_v23 = vmul.f32 %v9761_v4, %v5648_v22  ;;  %v5736_v40 = vld [vmem:[%s6915_s20 + $0x30] sm:$0xff]  ;;  %v5738_v30 = vld [vmem:[%s6915_s20 + $0x40] sm:$0xff]  ;;  %v5739_v7 = vld [vmem:[%s6915_s20 + $0x48] sm:$0xff] }
 0x623   : > { %v5685_v41 = vmul.f32 %v9761_v4, %v5649_v24  ;;  %v5686_v34 = vmul.f32 %v9761_v4, %v5650_v25  ;;  %v5687_v44 = vmul.f32 %v9761_v4, %v5651_v48  ;;  %v5688_v52 = vmul.f32 %v9761_v4, %v5652_v3  ;;  %v5740_v24 = vld [vmem:[%s6915_s20 + $0x50] sm:$0xff]  ;;  %v5741_v22 = vld [vmem:[%s6915_s20 + $0x58] sm:$0xff]  ;;  %v5742_v48 = vld [vmem:[%s6915_s20 + $0x60] sm:$0xff] }
 0x624   : > { %v5689_v14 = vmul.f32 %v9761_v4, %v5653_v58  ;;  %v5697_v49 = vrot.slane %v5625_v31, %v10164_v9  ;;  %v5690_v59 = vmul.f32 %v9761_v4, %v5654_v19  ;;  %v5691_v26 = vmul.f32 %v9761_v4, %v5655_v56  ;;  %v5743_v25 = vld [vmem:[%s6915_s20 + $0x68] sm:$0xff]  ;;  %v5744_v58 = vld [vmem:[%s6915_s20 + $0x70] sm:$0xff]  ;;  %v5745_v3 = vld [vmem:[%s6915_s20 + $0x78] sm:$0xff] }
 0x625   : > { %v5692_v17 = vmul.f32 %v9761_v4, %v5656_v15  ;;  %v5693_v60 = vmul.f32 %v9761_v4, %v5657_v10  ;;  %v5746_v56 = vld [vmem:[%s6915_s20 + $0x80] sm:$0xff] }
 0x626   : > { %v5698_v38 = vadd.f32 %v5697_v49, %v5662_v62  ;;  %v5699_v28 = vadd.f32 %v5697_v49, %v5663_v13  ;;  %v5700_v0 = vadd.f32 %v5697_v49, %v5664_v6  ;;  %v5701_v20 = vadd.f32 %v5697_v49, %v5665_v53  ;;  %v5730_v53 = vld [vmem:[%s6915_s20] sm:$0xff] }
 0x627   : > { %v5702_v35 = vadd.f32 %v5697_v49, %v5666_v12  ;;  %v5703_v5 = vadd.f32 %v5697_v49, %v5667_v32  ;;  %v5704_v29 = vadd.f32 %v5697_v49, %v5668_v45  ;;  %v5705_v9 = vadd.f32 %v5697_v49, %v5669_v57  ;;  %v5731_v12 = vld [vmem:[%s6915_s20 + $0x8] sm:$0xff] }
 0x628   : > { %v5706_v31 = vadd.f32 %v5697_v49, %v5670_v1  ;;  %v5707_v42 = vadd.f32 %v5697_v49, %v5671_v37  ;;  %v5708_v61 = vadd.f32 %v5697_v49, %v5672_v8  ;;  %v5709_v50 = vadd.f32 %v5697_v49, %v5673_v47  ;;  %v5734_v1 = vld [vmem:[%s6915_s20 + $0x20] sm:$0xff] }
 0x629   : > { %v9798_v4 = vadd.f32 %v5697_v49, %v5674_v54  ;;  %v9800_v62 = vadd.f32 %v5697_v49, %v5675_v36  ;;  %v9802_v13 = vadd.f32 %v5697_v49, %v5676_v43  ;;  %v9804_v6 = vadd.f32 %v5697_v49, %v5677_v11 }
 0x62a   : > { %v9810_v51 = vadd.f32 %v5697_v49, %v5678_v21  ;;  %v9812_v32 = vadd.f32 %v5697_v49, %v5679_v27  ;;  %v9814_v45 = vadd.f32 %v5697_v49, %v5680_v16  ;;  %v9816_v57 = vadd.f32 %v5697_v49, %v5681_v18 }
 0x62b   : > { %v9822_v37 = vadd.f32 %v5697_v49, %v5682_v55  ;;  %v9824_v8 = vadd.f32 %v5697_v49, %v5683_v2  ;;  %v9826_v47 = vadd.f32 %v5697_v49, %v5684_v23  ;;  %v9828_v54 = vadd.f32 %v5697_v49, %v5685_v41  ;;  %v5747_v2 = vld [vmem:[%s6915_s20 + $0x88] sm:$0xff]  ;;  %v5748_v23 = vld [vmem:[%s6915_s20 + $0x90] sm:$0xff]  ;;  %v5749_v41 = vld [vmem:[%s6915_s20 + $0x98] sm:$0xff] }
 0x62c   : > { %v9833_v36 = vadd.f32 %v5697_v49, %v5686_v34  ;;  %v9835_v43 = vadd.f32 %v5697_v49, %v5687_v44  ;;  %v9837_v11 = vadd.f32 %v5697_v49, %v5688_v52  ;;  %v9839_v21 = vadd.f32 %v5697_v49, %v5689_v14  ;;  %v5750_v44 = vld [vmem:[%s6915_s20 + $0xa0] sm:$0xff]  ;;  %v5751_v52 = vld [vmem:[%s6915_s20 + $0xa8] sm:$0xff]  ;;  %v5752_v14 = vld [vmem:[%s6915_s20 + $0xb0] sm:$0xff] }
 0x62d   : > { %v9851_v27 = vadd.f32 %v5697_v49, %v5690_v59  ;;  %v9853_v16 = vadd.f32 %v5697_v49, %v5691_v26  ;;  %v9855_v18 = vadd.f32 %v5697_v49, %v5692_v17  ;;  %v9857_v55 = vadd.f32 %v5697_v49, %v5693_v60  ;;  %v5753_v60 = vld [vmem:[%s6915_s20 + $0xb8] sm:$0xff] }
 0x62e   : > { %v5762_v34 = vadd.f32 %v5730_v53, %v5698_v38  ;;  %v5763_v19 = vadd.f32 %v5731_v12, %v5699_v28  ;;  %v5764_v10 = vadd.f32 %v5732_v46, %v5700_v0  ;;  %v5765_v15 = vadd.f32 %v5733_v33, %v5701_v20  ;;  %v5755_v38 = vld [vmem:[%s6915_s20 + $0xc8] sm:$0xff] }
 0x62f   : > { %10165 = vst [vmem:[#allocation15_spill] sm:$0xff] %v9857_v55  ;;  %v5766_v49 = vadd.f32 %v5734_v1, %v5702_v35  ;;  %v5767_v59 = vadd.f32 %v5735_v63, %v5703_v5  ;;  %v5768_v26 = vadd.f32 %v5736_v40, %v5704_v29  ;;  %v5769_v17 = vadd.f32 %v5737_v39, %v5705_v9  ;;  %v5754_v55 = vld [vmem:[%s6915_s20 + $0xc0] sm:$0xff]  ;;  %v5756_v35 = vld [vmem:[%s6915_s20 + $0xd0] sm:$0xff]  ;;  %v5757_v5 = vld [vmem:[%s6915_s20 + $0xd8] sm:$0xff] }
 0x630   : > { %v5770_v28 = vadd.f32 %v5738_v30, %v5706_v31  ;;  %v5771_v0 = vadd.f32 %v5739_v7, %v5707_v42  ;;  %v5772_v20 = vadd.f32 %v5740_v24, %v5708_v61  ;;  %v5773_v53 = vadd.f32 %v5741_v22, %v5709_v50  ;;  %5794 = vst.msk [vmem:[%s9849_s13] sm:$0xff] %vm231_vm0, %v5762_v34  ;;  %v5758_v29 = vld [vmem:[%s6915_s20 + $0xe0] sm:$0xff]  ;;  %v5759_v50 = vld [vmem:[%s6915_s20 + $0xe8] sm:$0xff] }
 0x631   : > { %5795 = vst.msk [vmem:[%s9849_s13 + $0x8] sm:$0xff] %vm231_vm0, %v5763_v19  ;;  %5796 = vst.msk [vmem:[%s9849_s13 + $0x10] sm:$0xff] %vm231_vm0, %v5764_v10  ;;  %v5774_v9 = vadd.f32 %v5742_v48, %v9798_v4  ;;  %v5775_v31 = vadd.f32 %v5743_v25, %v9800_v62  ;;  %v5776_v42 = vadd.f32 %v5744_v58, %v9802_v13  ;;  %v5760_v4 = vld [vmem:[%s6915_s20 + $0xf0] sm:$0xff]  ;;  %v5761_v62 = vld [vmem:[%s6915_s20 + $0xf8] sm:$0xff] }
 0x632   : > { %5797 = vst.msk [vmem:[%s9849_s13 + $0x18] sm:$0xff] %vm231_vm0, %v5765_v15  ;;  %v5777_v61 = vadd.f32 %v5745_v3, %v9804_v6  ;;  %5798 = vst.msk [vmem:[%s9849_s13 + $0x20] sm:$0xff] %vm231_vm0, %v5766_v49  ;;  %v5778_v13 = vadd.f32 %v5746_v56, %v9810_v51  ;;  %v5779_v12 = vadd.f32 %v5747_v2, %v9812_v32 }
 0x633   : > { %5799 = vst.msk [vmem:[%s9849_s13 + $0x28] sm:$0xff] %vm231_vm0, %v5767_v59  ;;  %5800 = vst.msk [vmem:[%s9849_s13 + $0x30] sm:$0xff] %vm231_vm0, %v5768_v26  ;;  %v5780_v6 = vadd.f32 %v5748_v23, %v9814_v45  ;;  %v5781_v46 = vadd.f32 %v5749_v41, %v9816_v57  ;;  %v5782_v33 = vadd.f32 %v5750_v44, %v9822_v37 }
 0x634   : > { %5801 = vst.msk [vmem:[%s9849_s13 + $0x38] sm:$0xff] %vm231_vm0, %v5769_v17  ;;  %5802 = vst.msk [vmem:[%s9849_s13 + $0x40] sm:$0xff] %vm231_vm0, %v5770_v28  ;;  %v5783_v51 = vadd.f32 %v5751_v52, %v9824_v8  ;;  %v5784_v32 = vadd.f32 %v5752_v14, %v9826_v47  ;;  %v5785_v45 = vadd.f32 %v5753_v60, %v9828_v54 }
 0x635   : > { %5803 = vst.msk [vmem:[%s9849_s13 + $0x48] sm:$0xff] %vm231_vm0, %v5771_v0  ;;  %5804 = vst.msk [vmem:[%s9849_s13 + $0x50] sm:$0xff] %vm231_vm0, %v5772_v20  ;;  %v5786_v57 = vadd.f32 %v5754_v55, %v9833_v36  ;;  %v5787_v1 = vadd.f32 %v5755_v38, %v9835_v43  ;;  %v5788_v63 = vadd.f32 %v5756_v35, %v9837_v11 }
 0x636   : > { %5805 = vst.msk [vmem:[%s9849_s13 + $0x58] sm:$0xff] %vm231_vm0, %v5773_v53  ;;  %5806 = vst.msk [vmem:[%s9849_s13 + $0x60] sm:$0xff] %vm231_vm0, %v5774_v9  ;;  %v5789_v40 = vadd.f32 %v5757_v5, %v9839_v21  ;;  %v5790_v39 = vadd.f32 %v5758_v29, %v9851_v27  ;;  %v5791_v37 = vadd.f32 %v5759_v50, %v9853_v16  ;;  %v10166_v47 = vld [vmem:[#allocation15_spill] sm:$0xff] }
 0x637   : > { %5807 = vst.msk [vmem:[%s9849_s13 + $0x68] sm:$0xff] %vm231_vm0, %v5775_v31  ;;  %5808 = vst.msk [vmem:[%s9849_s13 + $0x70] sm:$0xff] %vm231_vm0, %v5776_v42  ;;  %v5792_v8 = vadd.f32 %v5760_v4, %v9855_v18  ;;  %v5793_v54 = vadd.f32 %v5761_v62, %v10166_v47 }
 0x638   : > { %5809 = vst.msk [vmem:[%s9849_s13 + $0x78] sm:$0xff] %vm231_vm0, %v5777_v61  ;;  %5810 = vst.msk [vmem:[%s9849_s13 + $0x80] sm:$0xff] %vm231_vm0, %v5778_v13 }
 0x639   : > { %5811 = vst.msk [vmem:[%s9849_s13 + $0x88] sm:$0xff] %vm231_vm0, %v5779_v12  ;;  %5812 = vst.msk [vmem:[%s9849_s13 + $0x90] sm:$0xff] %vm231_vm0, %v5780_v6 }
 0x63a   : > { %5813 = vst.msk [vmem:[%s9849_s13 + $0x98] sm:$0xff] %vm231_vm0, %v5781_v46  ;;  %5814 = vst.msk [vmem:[%s9849_s13 + $0xa0] sm:$0xff] %vm231_vm0, %v5782_v33 }
 0x63b   : > { %5815 = vst.msk [vmem:[%s9849_s13 + $0xa8] sm:$0xff] %vm231_vm0, %v5783_v51  ;;  %5816 = vst.msk [vmem:[%s9849_s13 + $0xb0] sm:$0xff] %vm231_vm0, %v5784_v32 }
 0x63c   : > { %5817 = vst.msk [vmem:[%s9849_s13 + $0xb8] sm:$0xff] %vm231_vm0, %v5785_v45  ;;  %5818 = vst.msk [vmem:[%s9849_s13 + $0xc0] sm:$0xff] %vm231_vm0, %v5786_v57 }
 0x63d   : > { %5819 = vst.msk [vmem:[%s9849_s13 + $0xc8] sm:$0xff] %vm231_vm0, %v5787_v1  ;;  %5820 = vst.msk [vmem:[%s9849_s13 + $0xd0] sm:$0xff] %vm231_vm0, %v5788_v63 }
 0x63e   : > { %5821 = vst.msk [vmem:[%s9849_s13 + $0xd8] sm:$0xff] %vm231_vm0, %v5789_v40  ;;  %5822 = vst.msk [vmem:[%s9849_s13 + $0xe0] sm:$0xff] %vm231_vm0, %v5790_v39 }
 0x63f   : > { %5823 = vst.msk [vmem:[%s9849_s13 + $0xe8] sm:$0xff] %vm231_vm0, %v5791_v37  ;;  %5824 = vst.msk [vmem:[%s9849_s13 + $0xf0] sm:$0xff] %vm231_vm0, %v5792_v8 }
 0x640   : > { %5825 = vst.msk [vmem:[%s9849_s13 + $0xf8] sm:$0xff] %vm231_vm0, %v5793_v54 }
 0x641 PF: > { %s14_s15 = sadd.s32 1, %s6869_s15  }
 0x642   : > { %p11_p4 = scmp.ge.s32.totalorder %s14_s15, 4  }
 0x644   :  { %13 = sbr.rel (!%p11_p4) target bundleno = 1 (0x1), region = 77 }

</bundles_post_ra>
